<compile_context>
chip_gen: v7x
topology: tpu7x:2x2x1
jax: 0.10.0
libtpu: 0.0.40
codegen_flags: <defaults>
</compile_context>

<pallas_src>
import jax
import jax.numpy as jnp
from jax import lax
from jax.experimental import pallas as pl
from jax.experimental.pallas import tpu as pltpu


def _round_up(x, m):
    return (x + m - 1) // m * m


def _make_fused_kernel(S, M1, M2, M3):
    """S = padded row stride (W+2); M1/M2/M3 = flat row counts for conv1/conv2/pool."""

    def kernel(x_ref, w1_ref, b1_ref, w2_ref, b2_ref, o_ref, y1_ref):
        # x_ref : (1, P1, Cin)  bf16   flattened, spatially padded (pad=1) input
        # w1_ref: (9, Cin, C1)  bf16   conv1 taps (kh*3+kw, Cin, Cout)
        # b1_ref: (1, C1)       f32
        # w2_ref: (9, C1, C2)   bf16
        # b2_ref: (1, C2)       f32
        # o_ref : (1, M3, C2)   f32    flat pooled output (junk cols dropped outside)
        # y1_ref: (M1, C1)      bf16   VMEM scratch holding the conv1 activation

        # ---- conv1 (pad=1) + bias + ReLU: 9 row-offset tap matmuls ----
        C1 = w1_ref.shape[2]
        acc1 = jnp.zeros((M1, C1), jnp.float32)
        for kh in range(3):
            for kw in range(3):
                xs = x_ref[0, pl.ds(kh * S + kw, M1), :]          # (M1, Cin) bf16
                acc1 = acc1 + jnp.dot(xs, w1_ref[kh * 3 + kw],
                                      preferred_element_type=jnp.float32)
        y1_ref[...] = jnp.maximum(acc1 + b1_ref[...], 0.0).astype(y1_ref.dtype)

        # ---- conv2 (valid) + bias + ReLU, reading y1 from VMEM scratch ----
        C2 = w2_ref.shape[2]
        acc2 = jnp.zeros((M2, C2), jnp.float32)
        for kh in range(3):
            for kw in range(3):
                ys = y1_ref[pl.ds(kh * S + kw, M2), :]            # (M2, C1) bf16
                acc2 = acc2 + jnp.dot(ys, w2_ref[kh * 3 + kw],
                                      preferred_element_type=jnp.float32)
        y2 = jnp.maximum(acc2 + b2_ref[...], 0.0)                 # (M2, C2) f32

        # ---- maxpool 3x3 stride 1, separable: 1x3 over W then 3x1 over H ----
        L = M3 + 2 * S
        mw = jnp.maximum(jnp.maximum(y2[0:L, :], y2[1:L + 1, :]), y2[2:L + 2, :])
        pooled = jnp.maximum(jnp.maximum(mw[0:M3, :], mw[S:S + M3, :]),
                             mw[2 * S:2 * S + M3, :])             # (M3, C2)
        o_ref[...] = pooled[None].astype(o_ref.dtype)

    return kernel


def encoder_transition_block(x_nchw, w1, b1, w2, b2):
    """x_nchw: (N, 512, H, W) f32; w1/w2 in torch OIHW layout; returns NCHW f32."""
    N, Cin, H, W = x_nchw.shape
    C1 = w1.shape[0]
    C2 = w2.shape[0]
    S = W + 2                      # row stride of the padded / flat layout
    Hp, Wp = H - 4, W - 4          # final output spatial size

    # Flat-layout row counts (each includes 2 junk columns per image row, plus
    # a small sublane-aligned slack so every offset slice stays in bounds).
    M3 = _round_up(Hp * S, 8)                  # pooled rows computed
    M2 = _round_up(M3 + 2 * S + 2, 8)          # conv2 rows computed
    M1 = _round_up(M2 + 2 * S + 2, 8)          # conv1 rows computed
    P1 = _round_up(M1 + 2 * S + 2, 8)          # padded-input rows provided

    # NCHW -> NHWC, cast to bf16 for the MXU, add the pad=1 halo and flatten
    # (H+2, W+2) into rows so in-kernel taps are plain row-offset slices.
    x = jnp.transpose(x_nchw, (0, 2, 3, 1)).astype(jnp.bfloat16)
    xpad = jnp.pad(x, ((0, 0), (1, 1), (1, 1), (0, 0)))
    x_flat = xpad.reshape(N, (H + 2) * S, Cin)
    x_flat = jnp.pad(x_flat, ((0, 0), (0, P1 - (H + 2) * S), (0, 0)))

    # Torch OIHW -> (tap, Cin, Cout) with tap = kh*3 + kw; bf16 operands.
    w1k = jnp.transpose(w1, (2, 3, 1, 0)).reshape(9, Cin, C1).astype(jnp.bfloat16)
    w2k = jnp.transpose(w2, (2, 3, 1, 0)).reshape(9, C1, C2).astype(jnp.bfloat16)
    b1k = b1.reshape(1, C1).astype(jnp.float32)
    b2k = b2.reshape(1, C2).astype(jnp.float32)

    kernel = _make_fused_kernel(S, M1, M2, M3)
    out_flat = pl.pallas_call(
        kernel,
        out_shape=jax.ShapeDtypeStruct((N, M3, C2), jnp.float32),
        grid=(N,),
        in_specs=[
            pl.BlockSpec((1, P1, Cin), lambda n: (n, 0, 0)),
            pl.BlockSpec((9, Cin, C1), lambda n: (0, 0, 0)),
            pl.BlockSpec((1, C1), lambda n: (0, 0)),
            pl.BlockSpec((9, C1, C2), lambda n: (0, 0, 0)),
            pl.BlockSpec((1, C2), lambda n: (0, 0)),
        ],
        out_specs=pl.BlockSpec((1, M3, C2), lambda n: (n, 0, 0)),
        scratch_shapes=[pltpu.VMEM((M1, C1), jnp.bfloat16)],
        compiler_params=pltpu.CompilerParams(
            dimension_semantics=("parallel",)),
    )(x_flat, w1k, b1k, w2k, b2k)

    # Drop the junk columns kept during flat-offset compute, back to NCHW.
    out = out_flat[:, :Hp * S, :].reshape(N, Hp, S, C2)[:, :, :Wp, :]
    return jnp.transpose(out, (0, 3, 1, 2))


# ----------------------- reference for checking (same bf16 MXU operands) -----------------------
def _reference(x_nchw, w1, b1, w2, b2):
    dn = ("NCHW", "OIHW", "NCHW")
    xb, w1b, w2b = (t.astype(jnp.bfloat16) for t in (x_nchw, w1, w2))
    y = lax.conv_general_dilated(xb, w1b, (1, 1), ((1, 1), (1, 1)),
                                 dimension_numbers=dn,
                                 preferred_element_type=jnp.float32)
    y = jnp.maximum(y + b1[None, :, None, None], 0.0)
    y = lax.conv_general_dilated(y.astype(jnp.bfloat16), w2b, (1, 1), ((0, 0), (0, 0)),
                                 dimension_numbers=dn,
                                 preferred_element_type=jnp.float32)
    y = jnp.maximum(y + b2[None, :, None, None], 0.0)
    y = lax.reduce_window(y, -jnp.inf, lax.max,
                          (1, 1, 3, 3), (1, 1, 1, 1), "VALID")
    return y


if __name__ == "__main__":
    key = jax.random.PRNGKey(0)
    k_x, k_w1, k_b1, k_w2, k_b2 = jax.random.split(key, 5)

    N, Cin, H, W = 2, 512, 8, 8          # small spatial; channels fixed by the module
    x = jax.random.normal(k_x, (N, Cin, H, W), jnp.float32)

    # Deterministic parameter init (torch OIHW layout), ~kaiming scale.
    fan1 = Cin * 9
    w1 = jax.random.normal(k_w1, (256, Cin, 3, 3), jnp.float32) / jnp.sqrt(fan1)
    b1 = jax.random.normal(k_b1, (256,), jnp.float32) * 0.01
    fan2 = 256 * 9
    w2 = jax.random.normal(k_w2, (128, 256, 3, 3), jnp.float32) / jnp.sqrt(fan2)
    b2 = jax.random.normal(k_b2, (128,), jnp.float32) * 0.01

    out = jax.jit(encoder_transition_block)(x, w1, b1, w2, b2)
    out = jax.block_until_ready(out)

    ref = _reference(x, w1, b1, w2, b2)
    assert out.shape == (N, 128, H - 4, W - 4), out.shape
    assert jnp.allclose(out, ref, atol=1e-2, rtol=1e-2), \
        float(jnp.max(jnp.abs(out - ref)))

    print("KERNEL_OK")
</pallas_src>

<mosaic_0001>
module attributes {stable_mosaic.version = 11 : i64} {
  func.func @kernel(%arg0: i32, %arg1: memref<1x112x512xbf16, #tpu.memory_space<vmem>>, %arg2: memref<9x512x256xbf16, #tpu.memory_space<vmem>>, %arg3: memref<1x256xf32, #tpu.memory_space<vmem>>, %arg4: memref<9x256x128xbf16, #tpu.memory_space<vmem>>, %arg5: memref<1x128xf32, #tpu.memory_space<vmem>>, %arg6: memref<1x40x128xf32, #tpu.memory_space<vmem>>, %arg7: memref<88x256xbf16, #tpu.memory_space<vmem>>) attributes {dimension_semantics = [#tpu.dimension_semantics<parallel>], iteration_bounds = array<i64: 2>, scalar_prefetch = 0 : i64, scratch_operands = 1 : i64, tpu.core_type = #tpu.core_type<tc>, window_params = [{transform_indices = @transform_0, window_bounds = array<i64: 1, 112, 512>}, {pipeline_mode = #tpu.pipeline_mode<synchronous>, transform_indices = @transform_1, window_bounds = array<i64: 9, 512, 256>}, {pipeline_mode = #tpu.pipeline_mode<synchronous>, transform_indices = @transform_2, window_bounds = array<i64: 1, 256>}, {pipeline_mode = #tpu.pipeline_mode<synchronous>, transform_indices = @transform_3, window_bounds = array<i64: 9, 256, 128>}, {pipeline_mode = #tpu.pipeline_mode<synchronous>, transform_indices = @transform_4, window_bounds = array<i64: 1, 128>}, {transform_indices = @transform_5, window_bounds = array<i64: 1, 40, 128>}]} {
    %cst = arith.constant 0.000000e+00 : f32
    %0 = vector.broadcast %cst : f32 to vector<88x256xf32>
    %c0 = arith.constant 0 : index
    %c0_0 = arith.constant 0 : index
    %c0_1 = arith.constant 0 : index
    %1 = vector.load %arg1[%c0, %c0_0, %c0_1] : memref<1x112x512xbf16, #tpu.memory_space<vmem>>, vector<1x88x512xbf16>
    %2 = vector.shape_cast %1 : vector<1x88x512xbf16> to vector<88x512xbf16>
    %c0_2 = arith.constant 0 : index
    %c0_3 = arith.constant 0 : index
    %c0_4 = arith.constant 0 : index
    %3 = vector.load %arg2[%c0_2, %c0_3, %c0_4] : memref<9x512x256xbf16, #tpu.memory_space<vmem>>, vector<1x512x256xbf16>
    %4 = vector.shape_cast %3 : vector<1x512x256xbf16> to vector<512x256xbf16>
    %cst_5 = arith.constant dense<0.000000e+00> : vector<88x256xf32>
    %5 = tpu.matmul %2, %4, %cst_5 {dimension_numbers = #tpu.dot_dimension_numbers<[1], [0], [0], [1], [0, 0, 1, 1], [], []>} : vector<88x512xbf16>, vector<512x256xbf16>, vector<88x256xf32> -> vector<88x256xf32>
    %6 = arith.addf %0, %5 : vector<88x256xf32>
    %c0_6 = arith.constant 0 : index
    %c1 = arith.constant 1 : index
    %c0_7 = arith.constant 0 : index
    %7 = vector.load %arg1[%c0_6, %c1, %c0_7] : memref<1x112x512xbf16, #tpu.memory_space<vmem>>, vector<1x88x512xbf16>
    %8 = vector.shape_cast %7 : vector<1x88x512xbf16> to vector<88x512xbf16>
    %c1_8 = arith.constant 1 : index
    %c0_9 = arith.constant 0 : index
    %c0_10 = arith.constant 0 : index
    %9 = vector.load %arg2[%c1_8, %c0_9, %c0_10] : memref<9x512x256xbf16, #tpu.memory_space<vmem>>, vector<1x512x256xbf16>
    %10 = vector.shape_cast %9 : vector<1x512x256xbf16> to vector<512x256xbf16>
    %cst_11 = arith.constant dense<0.000000e+00> : vector<88x256xf32>
    %11 = tpu.matmul %8, %10, %cst_11 {dimension_numbers = #tpu.dot_dimension_numbers<[1], [0], [0], [1], [0, 0, 1, 1], [], []>} : vector<88x512xbf16>, vector<512x256xbf16>, vector<88x256xf32> -> vector<88x256xf32>
    %12 = arith.addf %6, %11 : vector<88x256xf32>
    %c0_12 = arith.constant 0 : index
    %c2 = arith.constant 2 : index
    %c0_13 = arith.constant 0 : index
    %13 = vector.load %arg1[%c0_12, %c2, %c0_13] : memref<1x112x512xbf16, #tpu.memory_space<vmem>>, vector<1x88x512xbf16>
    %14 = vector.shape_cast %13 : vector<1x88x512xbf16> to vector<88x512xbf16>
    %c2_14 = arith.constant 2 : index
    %c0_15 = arith.constant 0 : index
    %c0_16 = arith.constant 0 : index
    %15 = vector.load %arg2[%c2_14, %c0_15, %c0_16] : memref<9x512x256xbf16, #tpu.memory_space<vmem>>, vector<1x512x256xbf16>
    %16 = vector.shape_cast %15 : vector<1x512x256xbf16> to vector<512x256xbf16>
    %cst_17 = arith.constant dense<0.000000e+00> : vector<88x256xf32>
    %17 = tpu.matmul %14, %16, %cst_17 {dimension_numbers = #tpu.dot_dimension_numbers<[1], [0], [0], [1], [0, 0, 1, 1], [], []>} : vector<88x512xbf16>, vector<512x256xbf16>, vector<88x256xf32> -> vector<88x256xf32>
    %18 = arith.addf %12, %17 : vector<88x256xf32>
    %c0_18 = arith.constant 0 : index
    %c10 = arith.constant 10 : index
    %c0_19 = arith.constant 0 : index
    %19 = vector.load %arg1[%c0_18, %c10, %c0_19] : memref<1x112x512xbf16, #tpu.memory_space<vmem>>, vector<1x88x512xbf16>
    %20 = vector.shape_cast %19 : vector<1x88x512xbf16> to vector<88x512xbf16>
    %c3 = arith.constant 3 : index
    %c0_20 = arith.constant 0 : index
    %c0_21 = arith.constant 0 : index
    %21 = vector.load %arg2[%c3, %c0_20, %c0_21] : memref<9x512x256xbf16, #tpu.memory_space<vmem>>, vector<1x512x256xbf16>
    %22 = vector.shape_cast %21 : vector<1x512x256xbf16> to vector<512x256xbf16>
    %cst_22 = arith.constant dense<0.000000e+00> : vector<88x256xf32>
    %23 = tpu.matmul %20, %22, %cst_22 {dimension_numbers = #tpu.dot_dimension_numbers<[1], [0], [0], [1], [0, 0, 1, 1], [], []>} : vector<88x512xbf16>, vector<512x256xbf16>, vector<88x256xf32> -> vector<88x256xf32>
    %24 = arith.addf %18, %23 : vector<88x256xf32>
    %c0_23 = arith.constant 0 : index
    %c11 = arith.constant 11 : index
    %c0_24 = arith.constant 0 : index
    %25 = vector.load %arg1[%c0_23, %c11, %c0_24] : memref<1x112x512xbf16, #tpu.memory_space<vmem>>, vector<1x88x512xbf16>
    %26 = vector.shape_cast %25 : vector<1x88x512xbf16> to vector<88x512xbf16>
    %c4 = arith.constant 4 : index
    %c0_25 = arith.constant 0 : index
    %c0_26 = arith.constant 0 : index
    %27 = vector.load %arg2[%c4, %c0_25, %c0_26] : memref<9x512x256xbf16, #tpu.memory_space<vmem>>, vector<1x512x256xbf16>
    %28 = vector.shape_cast %27 : vector<1x512x256xbf16> to vector<512x256xbf16>
    %cst_27 = arith.constant dense<0.000000e+00> : vector<88x256xf32>
    %29 = tpu.matmul %26, %28, %cst_27 {dimension_numbers = #tpu.dot_dimension_numbers<[1], [0], [0], [1], [0, 0, 1, 1], [], []>} : vector<88x512xbf16>, vector<512x256xbf16>, vector<88x256xf32> -> vector<88x256xf32>
    %30 = arith.addf %24, %29 : vector<88x256xf32>
    %c0_28 = arith.constant 0 : index
    %c12 = arith.constant 12 : index
    %c0_29 = arith.constant 0 : index
    %31 = vector.load %arg1[%c0_28, %c12, %c0_29] : memref<1x112x512xbf16, #tpu.memory_space<vmem>>, vector<1x88x512xbf16>
    %32 = vector.shape_cast %31 : vector<1x88x512xbf16> to vector<88x512xbf16>
    %c5 = arith.constant 5 : index
    %c0_30 = arith.constant 0 : index
    %c0_31 = arith.constant 0 : index
    %33 = vector.load %arg2[%c5, %c0_30, %c0_31] : memref<9x512x256xbf16, #tpu.memory_space<vmem>>, vector<1x512x256xbf16>
    %34 = vector.shape_cast %33 : vector<1x512x256xbf16> to vector<512x256xbf16>
    %cst_32 = arith.constant dense<0.000000e+00> : vector<88x256xf32>
    %35 = tpu.matmul %32, %34, %cst_32 {dimension_numbers = #tpu.dot_dimension_numbers<[1], [0], [0], [1], [0, 0, 1, 1], [], []>} : vector<88x512xbf16>, vector<512x256xbf16>, vector<88x256xf32> -> vector<88x256xf32>
    %36 = arith.addf %30, %35 : vector<88x256xf32>
    %c0_33 = arith.constant 0 : index
    %c20 = arith.constant 20 : index
    %c0_34 = arith.constant 0 : index
    %37 = vector.load %arg1[%c0_33, %c20, %c0_34] : memref<1x112x512xbf16, #tpu.memory_space<vmem>>, vector<1x88x512xbf16>
    %38 = vector.shape_cast %37 : vector<1x88x512xbf16> to vector<88x512xbf16>
    %c6 = arith.constant 6 : index
    %c0_35 = arith.constant 0 : index
    %c0_36 = arith.constant 0 : index
    %39 = vector.load %arg2[%c6, %c0_35, %c0_36] : memref<9x512x256xbf16, #tpu.memory_space<vmem>>, vector<1x512x256xbf16>
    %40 = vector.shape_cast %39 : vector<1x512x256xbf16> to vector<512x256xbf16>
    %cst_37 = arith.constant dense<0.000000e+00> : vector<88x256xf32>
    %41 = tpu.matmul %38, %40, %cst_37 {dimension_numbers = #tpu.dot_dimension_numbers<[1], [0], [0], [1], [0, 0, 1, 1], [], []>} : vector<88x512xbf16>, vector<512x256xbf16>, vector<88x256xf32> -> vector<88x256xf32>
    %42 = arith.addf %36, %41 : vector<88x256xf32>
    %c0_38 = arith.constant 0 : index
    %c21 = arith.constant 21 : index
    %c0_39 = arith.constant 0 : index
    %43 = vector.load %arg1[%c0_38, %c21, %c0_39] : memref<1x112x512xbf16, #tpu.memory_space<vmem>>, vector<1x88x512xbf16>
    %44 = vector.shape_cast %43 : vector<1x88x512xbf16> to vector<88x512xbf16>
    %c7 = arith.constant 7 : index
    %c0_40 = arith.constant 0 : index
    %c0_41 = arith.constant 0 : index
    %45 = vector.load %arg2[%c7, %c0_40, %c0_41] : memref<9x512x256xbf16, #tpu.memory_space<vmem>>, vector<1x512x256xbf16>
    %46 = vector.shape_cast %45 : vector<1x512x256xbf16> to vector<512x256xbf16>
    %cst_42 = arith.constant dense<0.000000e+00> : vector<88x256xf32>
    %47 = tpu.matmul %44, %46, %cst_42 {dimension_numbers = #tpu.dot_dimension_numbers<[1], [0], [0], [1], [0, 0, 1, 1], [], []>} : vector<88x512xbf16>, vector<512x256xbf16>, vector<88x256xf32> -> vector<88x256xf32>
    %48 = arith.addf %42, %47 : vector<88x256xf32>
    %c0_43 = arith.constant 0 : index
    %c22 = arith.constant 22 : index
    %c0_44 = arith.constant 0 : index
    %49 = vector.load %arg1[%c0_43, %c22, %c0_44] : memref<1x112x512xbf16, #tpu.memory_space<vmem>>, vector<1x88x512xbf16>
    %50 = vector.shape_cast %49 : vector<1x88x512xbf16> to vector<88x512xbf16>
    %c8 = arith.constant 8 : index
    %c0_45 = arith.constant 0 : index
    %c0_46 = arith.constant 0 : index
    %51 = vector.load %arg2[%c8, %c0_45, %c0_46] : memref<9x512x256xbf16, #tpu.memory_space<vmem>>, vector<1x512x256xbf16>
    %52 = vector.shape_cast %51 : vector<1x512x256xbf16> to vector<512x256xbf16>
    %cst_47 = arith.constant dense<0.000000e+00> : vector<88x256xf32>
    %53 = tpu.matmul %50, %52, %cst_47 {dimension_numbers = #tpu.dot_dimension_numbers<[1], [0], [0], [1], [0, 0, 1, 1], [], []>} : vector<88x512xbf16>, vector<512x256xbf16>, vector<88x256xf32> -> vector<88x256xf32>
    %54 = arith.addf %48, %53 : vector<88x256xf32>
    %c0_48 = arith.constant 0 : index
    %c0_49 = arith.constant 0 : index
    %55 = vector.load %arg3[%c0_48, %c0_49] : memref<1x256xf32, #tpu.memory_space<vmem>>, vector<1x256xf32>
    %56 = vector.broadcast %55 : vector<1x256xf32> to vector<88x256xf32>
    %57 = arith.addf %54, %56 : vector<88x256xf32>
    %cst_50 = arith.constant 0.000000e+00 : f32
    %58 = vector.broadcast %cst_50 : f32 to vector<88x256xf32>
    %59 = arith.maximumf %57, %58 : vector<88x256xf32>
    %60 = arith.truncf %59 : vector<88x256xf32> to vector<88x256xbf16>
    %c0_51 = arith.constant 0 : index
    %c0_52 = arith.constant 0 : index
    %61 = vector.load %arg7[%c0_51, %c0_52] : memref<88x256xbf16, #tpu.memory_space<vmem>>, vector<88x256xbf16>
    tpu.vector_store %arg7[%c0_51, %c0_52], %60 {strides = array<i32>} : memref<88x256xbf16, #tpu.memory_space<vmem>>, vector<88x256xbf16>,
    %cst_53 = arith.constant 0.000000e+00 : f32
    %62 = vector.broadcast %cst_53 : f32 to vector<64x128xf32>
    %c0_54 = arith.constant 0 : index
    %c0_55 = arith.constant 0 : index
    %63 = vector.load %arg7[%c0_54, %c0_55] : memref<88x256xbf16, #tpu.memory_space<vmem>>, vector<64x256xbf16>
    %c0_56 = arith.constant 0 : index
    %c0_57 = arith.constant 0 : index
    %c0_58 = arith.constant 0 : index
    %64 = vector.load %arg4[%c0_56, %c0_57, %c0_58] : memref<9x256x128xbf16, #tpu.memory_space<vmem>>, vector<1x256x128xbf16>
    %65 = vector.shape_cast %64 : vector<1x256x128xbf16> to vector<256x128xbf16>
    %cst_59 = arith.constant dense<0.000000e+00> : vector<64x128xf32>
    %66 = tpu.matmul %63, %65, %cst_59 {dimension_numbers = #tpu.dot_dimension_numbers<[1], [0], [0], [1], [0, 0, 1, 1], [], []>} : vector<64x256xbf16>, vector<256x128xbf16>, vector<64x128xf32> -> vector<64x128xf32>
    %67 = arith.addf %62, %66 : vector<64x128xf32>
    %c1_60 = arith.constant 1 : index
    %c0_61 = arith.constant 0 : index
    %68 = vector.load %arg7[%c1_60, %c0_61] : memref<88x256xbf16, #tpu.memory_space<vmem>>, vector<64x256xbf16>
    %c1_62 = arith.constant 1 : index
    %c0_63 = arith.constant 0 : index
    %c0_64 = arith.constant 0 : index
    %69 = vector.load %arg4[%c1_62, %c0_63, %c0_64] : memref<9x256x128xbf16, #tpu.memory_space<vmem>>, vector<1x256x128xbf16>
    %70 = vector.shape_cast %69 : vector<1x256x128xbf16> to vector<256x128xbf16>
    %cst_65 = arith.constant dense<0.000000e+00> : vector<64x128xf32>
    %71 = tpu.matmul %68, %70, %cst_65 {dimension_numbers = #tpu.dot_dimension_numbers<[1], [0], [0], [1], [0, 0, 1, 1], [], []>} : vector<64x256xbf16>, vector<256x128xbf16>, vector<64x128xf32> -> vector<64x128xf32>
    %72 = arith.addf %67, %71 : vector<64x128xf32>
    %c2_66 = arith.constant 2 : index
    %c0_67 = arith.constant 0 : index
    %73 = vector.load %arg7[%c2_66, %c0_67] : memref<88x256xbf16, #tpu.memory_space<vmem>>, vector<64x256xbf16>
    %c2_68 = arith.constant 2 : index
    %c0_69 = arith.constant 0 : index
    %c0_70 = arith.constant 0 : index
    %74 = vector.load %arg4[%c2_68, %c0_69, %c0_70] : memref<9x256x128xbf16, #tpu.memory_space<vmem>>, vector<1x256x128xbf16>
    %75 = vector.shape_cast %74 : vector<1x256x128xbf16> to vector<256x128xbf16>
    %cst_71 = arith.constant dense<0.000000e+00> : vector<64x128xf32>
    %76 = tpu.matmul %73, %75, %cst_71 {dimension_numbers = #tpu.dot_dimension_numbers<[1], [0], [0], [1], [0, 0, 1, 1], [], []>} : vector<64x256xbf16>, vector<256x128xbf16>, vector<64x128xf32> -> vector<64x128xf32>
    %77 = arith.addf %72, %76 : vector<64x128xf32>
    %c10_72 = arith.constant 10 : index
    %c0_73 = arith.constant 0 : index
    %78 = vector.load %arg7[%c10_72, %c0_73] : memref<88x256xbf16, #tpu.memory_space<vmem>>, vector<64x256xbf16>
    %c3_74 = arith.constant 3 : index
    %c0_75 = arith.constant 0 : index
    %c0_76 = arith.constant 0 : index
    %79 = vector.load %arg4[%c3_74, %c0_75, %c0_76] : memref<9x256x128xbf16, #tpu.memory_space<vmem>>, vector<1x256x128xbf16>
    %80 = vector.shape_cast %79 : vector<1x256x128xbf16> to vector<256x128xbf16>
    %cst_77 = arith.constant dense<0.000000e+00> : vector<64x128xf32>
    %81 = tpu.matmul %78, %80, %cst_77 {dimension_numbers = #tpu.dot_dimension_numbers<[1], [0], [0], [1], [0, 0, 1, 1], [], []>} : vector<64x256xbf16>, vector<256x128xbf16>, vector<64x128xf32> -> vector<64x128xf32>
    %82 = arith.addf %77, %81 : vector<64x128xf32>
    %c11_78 = arith.constant 11 : index
    %c0_79 = arith.constant 0 : index
    %83 = vector.load %arg7[%c11_78, %c0_79] : memref<88x256xbf16, #tpu.memory_space<vmem>>, vector<64x256xbf16>
    %c4_80 = arith.constant 4 : index
    %c0_81 = arith.constant 0 : index
    %c0_82 = arith.constant 0 : index
    %84 = vector.load %arg4[%c4_80, %c0_81, %c0_82] : memref<9x256x128xbf16, #tpu.memory_space<vmem>>, vector<1x256x128xbf16>
    %85 = vector.shape_cast %84 : vector<1x256x128xbf16> to vector<256x128xbf16>
    %cst_83 = arith.constant dense<0.000000e+00> : vector<64x128xf32>
    %86 = tpu.matmul %83, %85, %cst_83 {dimension_numbers = #tpu.dot_dimension_numbers<[1], [0], [0], [1], [0, 0, 1, 1], [], []>} : vector<64x256xbf16>, vector<256x128xbf16>, vector<64x128xf32> -> vector<64x128xf32>
    %87 = arith.addf %82, %86 : vector<64x128xf32>
    %c12_84 = arith.constant 12 : index
    %c0_85 = arith.constant 0 : index
    %88 = vector.load %arg7[%c12_84, %c0_85] : memref<88x256xbf16, #tpu.memory_space<vmem>>, vector<64x256xbf16>
    %c5_86 = arith.constant 5 : index
    %c0_87 = arith.constant 0 : index
    %c0_88 = arith.constant 0 : index
    %89 = vector.load %arg4[%c5_86, %c0_87, %c0_88] : memref<9x256x128xbf16, #tpu.memory_space<vmem>>, vector<1x256x128xbf16>
    %90 = vector.shape_cast %89 : vector<1x256x128xbf16> to vector<256x128xbf16>
    %cst_89 = arith.constant dense<0.000000e+00> : vector<64x128xf32>
    %91 = tpu.matmul %88, %90, %cst_89 {dimension_numbers = #tpu.dot_dimension_numbers<[1], [0], [0], [1], [0, 0, 1, 1], [], []>} : vector<64x256xbf16>, vector<256x128xbf16>, vector<64x128xf32> -> vector<64x128xf32>
    %92 = arith.addf %87, %91 : vector<64x128xf32>
    %c20_90 = arith.constant 20 : index
    %c0_91 = arith.constant 0 : index
    %93 = vector.load %arg7[%c20_90, %c0_91] : memref<88x256xbf16, #tpu.memory_space<vmem>>, vector<64x256xbf16>
    %c6_92 = arith.constant 6 : index
    %c0_93 = arith.constant 0 : index
    %c0_94 = arith.constant 0 : index
    %94 = vector.load %arg4[%c6_92, %c0_93, %c0_94] : memref<9x256x128xbf16, #tpu.memory_space<vmem>>, vector<1x256x128xbf16>
    %95 = vector.shape_cast %94 : vector<1x256x128xbf16> to vector<256x128xbf16>
    %cst_95 = arith.constant dense<0.000000e+00> : vector<64x128xf32>
    %96 = tpu.matmul %93, %95, %cst_95 {dimension_numbers = #tpu.dot_dimension_numbers<[1], [0], [0], [1], [0, 0, 1, 1], [], []>} : vector<64x256xbf16>, vector<256x128xbf16>, vector<64x128xf32> -> vector<64x128xf32>
    %97 = arith.addf %92, %96 : vector<64x128xf32>
    %c21_96 = arith.constant 21 : index
    %c0_97 = arith.constant 0 : index
    %98 = vector.load %arg7[%c21_96, %c0_97] : memref<88x256xbf16, #tpu.memory_space<vmem>>, vector<64x256xbf16>
    %c7_98 = arith.constant 7 : index
    %c0_99 = arith.constant 0 : index
    %c0_100 = arith.constant 0 : index
    %99 = vector.load %arg4[%c7_98, %c0_99, %c0_100] : memref<9x256x128xbf16, #tpu.memory_space<vmem>>, vector<1x256x128xbf16>
    %100 = vector.shape_cast %99 : vector<1x256x128xbf16> to vector<256x128xbf16>
    %cst_101 = arith.constant dense<0.000000e+00> : vector<64x128xf32>
    %101 = tpu.matmul %98, %100, %cst_101 {dimension_numbers = #tpu.dot_dimension_numbers<[1], [0], [0], [1], [0, 0, 1, 1], [], []>} : vector<64x256xbf16>, vector<256x128xbf16>, vector<64x128xf32> -> vector<64x128xf32>
    %102 = arith.addf %97, %101 : vector<64x128xf32>
    %c22_102 = arith.constant 22 : index
    %c0_103 = arith.constant 0 : index
    %103 = vector.load %arg7[%c22_102, %c0_103] : memref<88x256xbf16, #tpu.memory_space<vmem>>, vector<64x256xbf16>
    %c8_104 = arith.constant 8 : index
    %c0_105 = arith.constant 0 : index
    %c0_106 = arith.constant 0 : index
    %104 = vector.load %arg4[%c8_104, %c0_105, %c0_106] : memref<9x256x128xbf16, #tpu.memory_space<vmem>>, vector<1x256x128xbf16>
    %105 = vector.shape_cast %104 : vector<1x256x128xbf16> to vector<256x128xbf16>
    %cst_107 = arith.constant dense<0.000000e+00> : vector<64x128xf32>
    %106 = tpu.matmul %103, %105, %cst_107 {dimension_numbers = #tpu.dot_dimension_numbers<[1], [0], [0], [1], [0, 0, 1, 1], [], []>} : vector<64x256xbf16>, vector<256x128xbf16>, vector<64x128xf32> -> vector<64x128xf32>
    %107 = arith.addf %102, %106 : vector<64x128xf32>
    %c0_108 = arith.constant 0 : index
    %c0_109 = arith.constant 0 : index
    %108 = vector.load %arg5[%c0_108, %c0_109] : memref<1x128xf32, #tpu.memory_space<vmem>>, vector<1x128xf32>
    %109 = vector.broadcast %108 : vector<1x128xf32> to vector<64x128xf32>
    %110 = arith.addf %107, %109 : vector<64x128xf32>
    %cst_110 = arith.constant 0.000000e+00 : f32
    %111 = vector.broadcast %cst_110 : f32 to vector<64x128xf32>
    %112 = arith.maximumf %110, %111 : vector<64x128xf32>
    %113 = vector.extract_strided_slice %112 {offsets = [0, 0], sizes = [60, 128], strides = [1, 1]} : vector<64x128xf32> to vector<60x128xf32>
    %114 = vector.extract_strided_slice %112 {offsets = [1, 0], sizes = [60, 128], strides = [1, 1]} : vector<64x128xf32> to vector<60x128xf32>
    %115 = arith.maximumf %113, %114 : vector<60x128xf32>
    %116 = vector.extract_strided_slice %112 {offsets = [2, 0], sizes = [60, 128], strides = [1, 1]} : vector<64x128xf32> to vector<60x128xf32>
    %117 = arith.maximumf %115, %116 : vector<60x128xf32>
    %118 = vector.extract_strided_slice %117 {offsets = [0, 0], sizes = [40, 128], strides = [1, 1]} : vector<60x128xf32> to vector<40x128xf32>
    %119 = vector.extract_strided_slice %117 {offsets = [10, 0], sizes = [40, 128], strides = [1, 1]} : vector<60x128xf32> to vector<40x128xf32>
    %120 = arith.maximumf %118, %119 : vector<40x128xf32>
    %121 = vector.extract_strided_slice %117 {offsets = [20, 0], sizes = [40, 128], strides = [1, 1]} : vector<60x128xf32> to vector<40x128xf32>
    %122 = arith.maximumf %120, %121 : vector<40x128xf32>
    %123 = vector.shape_cast %122 : vector<40x128xf32> to vector<1x40x128xf32>
    %c0_111 = arith.constant 0 : index
    %c0_112 = arith.constant 0 : index
    %c0_113 = arith.constant 0 : index
    %124 = vector.load %arg6[%c0_111, %c0_112, %c0_113] : memref<1x40x128xf32, #tpu.memory_space<vmem>>, vector<1x40x128xf32>
    tpu.vector_store %arg6[%c0_111, %c0_112, %c0_113], %123 {strides = array<i32>} : memref<1x40x128xf32, #tpu.memory_space<vmem>>, vector<1x40x128xf32>,
    return
  }
  func.func @transform_0(%arg0: i32) -> (i32, i32, i32) {
    %c0_i32 = arith.constant 0 : i32
    %c0_i32_0 = arith.constant 0 : i32
    %c0_i32_1 = arith.constant 0 : i32
    return %arg0, %c0_i32, %c0_i32_0 : i32, i32, i32
  }
  func.func @transform_1(%arg0: i32) -> (i32, i32, i32) {
    %c0_i32 = arith.constant 0 : i32
    %c0_i32_0 = arith.constant 0 : i32
    %c0_i32_1 = arith.constant 0 : i32
    %c0_i32_2 = arith.constant 0 : i32
    return %c0_i32, %c0_i32_0, %c0_i32_1 : i32, i32, i32
  }
  func.func @transform_2(%arg0: i32) -> (i32, i32) {
    %c0_i32 = arith.constant 0 : i32
    %c0_i32_0 = arith.constant 0 : i32
    %c0_i32_1 = arith.constant 0 : i32
    return %c0_i32, %c0_i32_0 : i32, i32
  }
  func.func @transform_3(%arg0: i32) -> (i32, i32, i32) {
    %c0_i32 = arith.constant 0 : i32
    %c0_i32_0 = arith.constant 0 : i32
    %c0_i32_1 = arith.constant 0 : i32
    %c0_i32_2 = arith.constant 0 : i32
    return %c0_i32, %c0_i32_0, %c0_i32_1 : i32, i32, i32
  }
  func.func @transform_4(%arg0: i32) -> (i32, i32) {
    %c0_i32 = arith.constant 0 : i32
    %c0_i32_0 = arith.constant 0 : i32
    %c0_i32_1 = arith.constant 0 : i32
    return %c0_i32, %c0_i32_0 : i32, i32
  }
  func.func @transform_5(%arg0: i32) -> (i32, i32, i32) {
    %c0_i32 = arith.constant 0 : i32
    %c0_i32_0 = arith.constant 0 : i32
    %c0_i32_1 = arith.constant 0 : i32
    return %arg0, %c0_i32, %c0_i32_0 : i32, i32, i32
  }
}

</mosaic_0001>

<bundles_post_ra>
// kernel: encoder_transition_block.1
= control target key start
LH: loop header
LB: loop body
LE: loop exit
PB: predicated region body
PF: predicated region fallthrough
CT: control target
= control target key end

     0   :  { %s13288_s18 = smov 0   ;;  %s17096_s0 = inlined_call_operand.vmem [shape: bf16[2,112,512], index: 0, kind: input, shape index: {}]   ;;  %s17097_s1 = inlined_call_operand.vmem [shape: bf16[9,512,256], index: 1, kind: input, shape index: {}]   ;;  %s17098_s2 = inlined_call_operand.vmem [shape: f32[1,256], index: 2, kind: input, shape index: {}]   ;;  %s17099_s3 = inlined_call_operand.vmem [shape: bf16[9,256,128], index: 3, kind: input, shape index: {}]   ;;  %s17100_s4 = inlined_call_operand.vmem [shape: f32[1,128], index: 4, kind: input, shape index: {}]   ;;  %s17101_s5 = inlined_call_operand.vmem [shape: f32[2,40,128], index: 5, kind: output, shape index: {}]  }
   0x1 LB: > { %s9679_s19 = sadd.s32 4294967295, %s13256_s18   ;;  %p9683_p0 = scmp.ge.s32.totalorder %s13256_s18, 1  ;;  %s13256_s18 = sphi %s13288_s18, %s15_s18  }
   0x2   : > { %p187_p1 = scmp.lt.s32.totalorder %s13256_s18, 3 }
   0x4   : > { %p188_p2 = pnand %p9683_p0, %p187_p1 }
   0x6   : > { %191 = sbr.rel (%p188_p2) target bundleno = 1534 (0x5fe), region = 40 }
   0xd   : > { %v12077_v0 = vld [vmem:[%s17097_s1 + $0x204] ss:$8 sps:$4 sm:$0xff]   ;;  %v12081_v2 = vld [vmem:[%s17097_s1 + $0x200] ss:$8 sps:$4 sm:$0xff]   ;;  %v12083_v4 = vld [vmem:[%s17097_s1 + $0x214] ss:$8 sps:$4 sm:$0xff]  }
   0xe   : > { %v12079_v1 = vld [vmem:[%s17097_s1 + $0x604] ss:$8 sps:$4 sm:$0xff]   ;;  %1008 = vmatprep.subr.bf16.mxu1 %v12077_v0  ;;  %v12082_v3 = vld [vmem:[%s17097_s1 + $0x600] ss:$8 sps:$4 sm:$0xff]   ;;  %v12085_v5 = vld [vmem:[%s17097_s1 + $0x614] ss:$8 sps:$4 sm:$0xff]  }
   0xf   : > { %2963 = vmatprep.subr.bf16.mxu0 %v12079_v1  ;;  %1009 = vmatpush1.bf16.msra.mxu1 %v12081_v2  ;;  %v12087_v6 = vld [vmem:[%s17097_s1 + $0x210] ss:$8 sps:$4 sm:$0xff]   ;;  %v12089_v8 = vld [vmem:[%s17097_s1 + $0x224] ss:$8 sps:$4 sm:$0xff]   ;;  %v12093_v10 = vld [vmem:[%s17097_s1 + $0x220] ss:$8 sps:$4 sm:$0xff]  }
  0x10   : > { %2964 = vmatpush1.bf16.msra.mxu0 %v12082_v3  ;;  %1010 = vmatprep.subr.bf16.mxu1 %v12083_v4  ;;  %v12088_v7 = vld [vmem:[%s17097_s1 + $0x610] ss:$8 sps:$4 sm:$0xff]   ;;  %v12091_v9 = vld [vmem:[%s17097_s1 + $0x624] ss:$8 sps:$4 sm:$0xff]   ;;  %v12094_v11 = vld [vmem:[%s17097_s1 + $0x620] ss:$8 sps:$4 sm:$0xff]  }
  0x11   : > { %2965 = vmatprep.subr.bf16.mxu0 %v12085_v5  ;;  %v12095_v12 = vld [vmem:[%s17097_s1 + $0x234] ss:$8 sps:$4 sm:$0xff]   ;;  %v12099_v14 = vld [vmem:[%s17097_s1 + $0x230] ss:$8 sps:$4 sm:$0xff]   ;;  %v12101_v16 = vld [vmem:[%s17097_s1 + $0x244] ss:$8 sps:$4 sm:$0xff]  }
  0x12   : > { %v12097_v13 = vld [vmem:[%s17097_s1 + $0x634] ss:$8 sps:$4 sm:$0xff]   ;;  %v12100_v15 = vld [vmem:[%s17097_s1 + $0x630] ss:$8 sps:$4 sm:$0xff]   ;;  %v12103_v17 = vld [vmem:[%s17097_s1 + $0x644] ss:$8 sps:$4 sm:$0xff]  }
  0x13   : > { %1011 = vmatpush1.bf16.msra.mxu1 %v12087_v6  ;;  %v12105_v18 = vld [vmem:[%s17097_s1 + $0x240] ss:$8 sps:$4 sm:$0xff]   ;;  %v12107_v20 = vld [vmem:[%s17097_s1 + $0x254] ss:$8 sps:$4 sm:$0xff]   ;;  %v12111_v22 = vld [vmem:[%s17097_s1 + $0x250] ss:$8 sps:$4 sm:$0xff]  }
  0x14   : > { %2966 = vmatpush1.bf16.msra.mxu0 %v12088_v7  ;;  %1012 = vmatprep.subr.bf16.mxu1 %v12089_v8  ;;  %v12106_v19 = vld [vmem:[%s17097_s1 + $0x640] ss:$8 sps:$4 sm:$0xff]   ;;  %v12109_v21 = vld [vmem:[%s17097_s1 + $0x654] ss:$8 sps:$4 sm:$0xff]   ;;  %v12112_v23 = vld [vmem:[%s17097_s1 + $0x650] ss:$8 sps:$4 sm:$0xff]  }
  0x15   : > { %2967 = vmatprep.subr.bf16.mxu0 %v12091_v9  ;;  %v12113_v24 = vld [vmem:[%s17097_s1 + $0x264] ss:$8 sps:$4 sm:$0xff]   ;;  %v12117_v26 = vld [vmem:[%s17097_s1 + $0x260] ss:$8 sps:$4 sm:$0xff]   ;;  %v12119_v28 = vld [vmem:[%s17097_s1 + $0x274] ss:$8 sps:$4 sm:$0xff]  }
  0x16   : > { %v12115_v25 = vld [vmem:[%s17097_s1 + $0x664] ss:$8 sps:$4 sm:$0xff]   ;;  %v12118_v27 = vld [vmem:[%s17097_s1 + $0x660] ss:$8 sps:$4 sm:$0xff]   ;;  %v12121_v29 = vld [vmem:[%s17097_s1 + $0x674] ss:$8 sps:$4 sm:$0xff]  }
  0x17   : > { %1013 = vmatpush1.bf16.msra.mxu1 %v12093_v10  ;;  %v12123_v30 = vld [vmem:[%s17097_s1 + $0x270] ss:$8 sps:$4 sm:$0xff]   ;;  %p215_p3 = scmp.lt.s32.totalorder %s9679_s19, 1  ;;  %v12125_v32 = vld [vmem:[%s17097_s1 + $0x284] ss:$8 sps:$4 sm:$0xff]   ;;  %vm1797_vm0 = vcmask 1046528  }
  0x18   : > { %2968 = vmatpush1.bf16.msra.mxu0 %v12094_v11  ;;  %1014 = vmatprep.subr.bf16.mxu1 %v12095_v12  ;;  %v12124_v31 = vld [vmem:[%s17097_s1 + $0x670] ss:$8 sps:$4 sm:$0xff]   ;;  %v12127_v33 = vld [vmem:[%s17097_s1 + $0x684] ss:$8 sps:$4 sm:$0xff]   ;;  %v12129_v34 = vld [vmem:[%s17097_s1 + $0x280] ss:$8 sps:$4 sm:$0xff]  }
  0x19   : > { %2969 = vmatprep.subr.bf16.mxu0 %v12097_v13  ;;  %v12130_v35 = vld [vmem:[%s17097_s1 + $0x680] ss:$8 sps:$4 sm:$0xff]   ;;  %s17201_s19 = smov (!%p215_p3, %s9679_s19), 1  ;;  %v12131_v36 = vld [vmem:[%s17097_s1 + $0x294] ss:$8 sps:$4 sm:$0xff]   ;;  %vm4082_vm3 = vcmask 1045504  }
  0x1a   : > { %v12133_v37 = vld [vmem:[%s17097_s1 + $0x694] ss:$8 sps:$4 sm:$0xff]   ;;  %v12135_v38 = vld [vmem:[%s17097_s1 + $0x290] ss:$8 sps:$4 sm:$0xff]   ;;  %s12067_s29 = smul.u32 224, %s17201_s19  ;;  %vm6367_vm5 = vcmask 1044480  }
  0x1b   : > { %1015 = vmatpush1.bf16.msra.mxu1 %v12099_v14  ;;  %v12136_v39 = vld [vmem:[%s17097_s1 + $0x690] ss:$8 sps:$4 sm:$0xff]   ;;  %v12137_v40 = vld [vmem:[%s17097_s1 + $0x2a4] ss:$8 sps:$4 sm:$0xff]   ;;  %v12141_v42 = vld [vmem:[%s17097_s1 + $0x2a0] ss:$8 sps:$4 sm:$0xff]  }
  0x1c   : > { %2970 = vmatpush1.bf16.msra.mxu0 %v12100_v15  ;;  %1016 = vmatprep.subr.bf16.mxu1 %v12101_v16  ;;  %v12139_v41 = vld [vmem:[%s17097_s1 + $0x6a4] ss:$8 sps:$4 sm:$0xff]   ;;  %v12142_v43 = vld [vmem:[%s17097_s1 + $0x6a0] ss:$8 sps:$4 sm:$0xff]   ;;  %s13438_s17 = scalar_lea.vmem %s17096_s0, %s12067_s29  ;;  %v12143_v44 = vld [vmem:[%s17097_s1 + $0x2b4] ss:$8 sps:$4 sm:$0xff]  }
  0x1d   : > { %2971 = vmatprep.subr.bf16.mxu0 %v12103_v17  ;;  %v12145_v45 = vld [vmem:[%s17097_s1 + $0x6b4] ss:$8 sps:$4 sm:$0xff]   ;;  %v12147_v46 = vld [vmem:[%s17097_s1 + $0x2b0] ss:$8 sps:$4 sm:$0xff]   ;;  %v226_v48 = vld [vmem:[%s13438_s17] sm:$0xff]  ;;  %s12068_s8 = smul.u32 40, %s17201_s19 }
  0x1e   : > { %v12148_v47 = vld [vmem:[%s17097_s1 + $0x6b0] ss:$8 sps:$4 sm:$0xff]   ;;  %v230_v50 = vld [vmem:[%s13438_s17 + $0x20] sm:$0xff]  ;;  %vm475_vm1 = vsmask.f32 7424  ;;  %vm9597_vm6 = vcmask 1043456  }
  0x1f   : > { %1017 = vmatpush1.bf16.msra.mxu1 %v12105_v18  ;;  %v228_v49 = vld [vmem:[%s13438_s17 + $0x10] sm:$0xff]  ;;  %v12149_v52 = vld [vmem:[%s17097_s1 + $0x2c4] ss:$8 sps:$4 sm:$0xff]   ;;  %v12153_v62 = vld [vmem:[%s17097_s1 + $0x2c0] ss:$8 sps:$4 sm:$0xff]   ;;  %s17074_s10 = scalar_lea.vmem %s17101_s5, %s12068_s8 }
  0x20   : > { %2972 = vmatpush1.bf16.msra.mxu0 %v12106_v19  ;;  %1018 = vmatprep.subr.bf16.mxu1 %v12107_v20  ;;  %v232_v51 = vld [vmem:[%s13438_s17 + $0x30] sm:$0xff]  ;;  %v13459_v53 = vcombine.high %v226_v48, %v228_v49  ;;  %v12151_v55 = vld [vmem:[%s17097_s1 + $0x6c4] ss:$8 sps:$4 sm:$0xff]   ;;  %v12154_v63 = vld [vmem:[%s17097_s1 + $0x6c0] ss:$8 sps:$4 sm:$0xff]   ;;  %v13487_v4 = vcombine.low %v226_v48, %v228_v49 }
  0x21   : > { %2973 = vmatprep.subr.bf16.mxu0 %v12109_v21  ;;  %v13461_v54 = vcombine.high %v230_v50, %v232_v51  ;;  %v2390_v56 = vld [vmem:[%s13438_s17 + $0x10] sm:$0xee]  ;;  %v13468_v57 = vld [vmem:[%s13438_s17 + $0x40] sm:$0xff]  ;;  %v13507_v13 = vcombine.low %v230_v50, %v232_v51  ;;  %vm3244_vm2 = vsmask.f32 6400 }
  0x22   : > { %v489_v58 = vshrl.u32 %v13459_v53, 16  ;;  %v491_v59 = vshll.u32 %v13459_v53, 16  ;;  %v13473_v61 = vcombine.high %v2390_v56, %v230_v50  ;;  %v13482_v0 = vcombine.high %v232_v51, %v13468_v57  ;;  %v12155_v5 = vld [vmem:[%s17097_s1 + $0x2d4] ss:$8 sps:$4 sm:$0xff]   ;;  %v12159_v9 = vld [vmem:[%s17097_s1 + $0x2d0] ss:$8 sps:$4 sm:$0xff]  }
  0x23   : > { %1019 = vmatpush1.bf16.msra.mxu1 %v12111_v22  ;;  %v496_v60 = vshll.u32 %v13461_v54, 16  ;;  %v12157_v6 = vld [vmem:[%s17097_s1 + $0x6d4] ss:$8 sps:$4 sm:$0xff]   ;;  %v12160_v11 = vld [vmem:[%s17097_s1 + $0x6d0] ss:$8 sps:$4 sm:$0xff]   ;;  %v479_v14 = vshll.u32 %v13487_v4, 16  ;;  %v13522_v19 = vcombine.low %v2390_v56, %v230_v50 }
  0x24   : > { %2974 = vmatpush1.bf16.msra.mxu0 %v12112_v23  ;;  %1020 = vmatprep.subr.bf16.mxu1 %v12113_v24  ;;  %v493_v1 = vrot.slane %v491_v59, 1  ;;  %v2578_v3 = vrot.slane %v13473_v61, 1  ;;  %v2579_v7 = vrot.slane %v13482_v0, 1  ;;  %v12161_v15 = vld [vmem:[%s17097_s1 + $0x2e4] ss:$8 sps:$4 sm:$0xff]   ;;  %v477_v20 = vshrl.u32 %v13487_v4, 16 }
  0x25   : > { %2975 = vmatprep.subr.bf16.mxu0 %v12115_v25  ;;  %v13484_v2 = vrot.slane %v496_v60, 1  ;;  %v12163_v16 = vld [vmem:[%s17097_s1 + $0x6e4] ss:$8 sps:$4 sm:$0xff]   ;;  %v12165_v17 = vld [vmem:[%s17097_s1 + $0x2e0] ss:$8 sps:$4 sm:$0xff]   ;;  %v481_v21 = vrot.slane %v479_v14, 1  ;;  %v13527_v23 = vcombine.low %v232_v51, %v13468_v57 }
  0x26   : > { %v494_v8 = vor.u32 %v493_v1, %v489_v58  ;;  %v2580_v10 = vsel %vm1797_vm0, %v2578_v3, %v2579_v7  ;;  %v12166_v18 = vld [vmem:[%s17097_s1 + $0x6e0] ss:$8 sps:$4 sm:$0xff]   ;;  %v484_v22 = vshll.u32 %v13507_v13, 16  ;;  %v12167_v24 = vld [vmem:[%s17097_s1 + $0x2f4] ss:$8 sps:$4 sm:$0xff]  }
  0x27   : > { %1021 = vmatpush1.bf16.msra.mxu1 %v12117_v26  ;;  %2995 = vmatprep.mubr.bf16.mxu0 %v2580_v10  ;;  %v12169_v25 = vld [vmem:[%s17097_s1 + $0x6f4] ss:$8 sps:$4 sm:$0xff]   ;;  %v12171_v26 = vld [vmem:[%s17097_s1 + $0x2f0] ss:$8 sps:$4 sm:$0xff]   ;;  %v2404_v1 = vld [vmem:[%s13438_s17 + $0x80] sm:$0xff] }
  0x28   : > { %2976 = vmatpush1.bf16.msra.mxu0 %v12118_v27  ;;  %1022 = vmatprep.subr.bf16.mxu1 %v12119_v28  ;;  %v499_v12 = vsel %vm475_vm1, %v494_v8, %v13484_v2  ;;  %v12172_v27 = vld [vmem:[%s17097_s1 + $0x6f0] ss:$8 sps:$4 sm:$0xff]   ;;  %v2575_v28 = vrot.slane %v13522_v19, 1  ;;  %vm5529_vm4 = vsmask.f32 5376 }
  0x29   : > { %2977 = vmatprep.subr.bf16.mxu0 %v12121_v29  ;;  %1040 = vmatprep.mubr.bf16.mxu1 %v499_v12  ;;  %v482_v29 = vor.u32 %v481_v21, %v477_v20  ;;  %v12190_v56 = vld [vmem:[%s17097_s1 + $0x710] ss:$8 sps:$4 sm:$0xff]  }
  0x2b   : > { %1023 = vmatpush1.bf16.msra.mxu1 %v12123_v30  ;;  %v486_v30 = vrot.slane %v484_v22, 1  ;;  %v12201_v22 = vld [vmem:[%s17097_s1 + $0x334] ss:$8 sps:$4 sm:$0xff]  }
  0x2c   : > { %2978 = vmatpush1.bf16.msra.mxu0 %v12124_v31  ;;  %1024 = vmatprep.subr.bf16.mxu1 %v12125_v32  ;;  %v2576_v31 = vrot.slane %v13527_v23, 1  ;;  %v532_v32 = vshrl.u32 %v13461_v54, 16 }
  0x2d   : > { %2979 = vmatprep.subr.bf16.mxu0 %v12127_v33  ;;  %v12177_v33 = vld [vmem:[%s17097_s1 + $0x304] ss:$8 sps:$4 sm:$0xff]  }
  0x2e   : > { %v534_v48 = vor.u32 %v532_v32, %v13484_v2 }
  0x2f   : > { %1025 = vmatpush1.bf16.msra.mxu1 %v12129_v34  ;;  %v12182_v34 = vld [vmem:[%s17097_s1 + $0x704] ss:$8 sps:$4 sm:$0xff]  }
  0x30   : > { %2980 = vmatpush1.bf16.msra.mxu0 %v12130_v35  ;;  %1026 = vmatprep.subr.bf16.mxu1 %v12131_v36  ;;  %v2398_v35 = vld [vmem:[%s13438_s17 + $0x50] sm:$0xff]  ;;  %v2400_v36 = vld [vmem:[%s13438_s17 + $0x60] sm:$0xff] }
  0x31   : > { %2981 = vmatprep.subr.bf16.mxu0 %v12133_v37  ;;  %v13553_v37 = vcombine.high %v13468_v57, %v2398_v35 }
  0x33   : > { %1027 = vmatpush1.bf16.msra.mxu1 %v12135_v38  ;;  %v13556_v38 = vcombine.low %v13468_v57, %v2398_v35  ;;  %v536_v49 = vshll.u32 %v13553_v37, 16  ;;  %v564_v3 = vshrl.u32 %v13553_v37, 16 }
  0x34   : > { %2982 = vmatpush1.bf16.msra.mxu0 %v12136_v39  ;;  %1028 = vmatprep.subr.bf16.mxu1 %v12137_v40  ;;  %v12175_v39 = vld [vmem:[%s17097_s1 + $0x300] ss:$8 sps:$4 sm:$0xff]  }
  0x35   : > { %2983 = vmatprep.subr.bf16.mxu0 %v12139_v41  ;;  %v12180_v40 = vld [vmem:[%s17097_s1 + $0x700] ss:$8 sps:$4 sm:$0xff]   ;;  %v13564_v41 = vcombine.high %v2398_v35, %v2400_v36  ;;  %v528_v51 = vshll.u32 %v13556_v38, 16  ;;  %v556_v20 = vshrl.u32 %v13556_v38, 16 }
  0x37   : > { %1029 = vmatpush1.bf16.msra.mxu1 %v12141_v42  ;;  %v13566_v42 = vcombine.low %v2398_v35, %v2400_v36  ;;  %v2589_v50 = vrot.slane %v13564_v41, 1  ;;  %v530_v60 = vrot.slane %v528_v51, 1 }
  0x38   : > { %2984 = vmatpush1.bf16.msra.mxu0 %v12142_v43  ;;  %1030 = vmatprep.subr.bf16.mxu1 %v12143_v44  ;;  %v524_v43 = vshrl.u32 %v13507_v13, 16  ;;  %v487_v44 = vsel %vm475_vm1, %v482_v29, %v486_v30 }
  0x39   : > { %2985 = vmatprep.subr.bf16.mxu0 %v12145_v45  ;;  %v2577_v45 = vsel %vm1797_vm0, %v2575_v28, %v2576_v31  ;;  %v2590_v57 = vsel %vm1797_vm0, %v2579_v7, %v2589_v50  ;;  %v2587_v58 = vrot.slane %v13566_v42, 1  ;;  %v12198_v7 = vld [vmem:[%s17097_s1 + $0x724] ss:$8 sps:$4 sm:$0xff]  }
  0x3a   : > { %v526_v59 = vor.u32 %v524_v43, %v486_v30  ;;  %v2408_v28 = vld [vmem:[%s13438_s17 + $0xa0] sm:$0xff]  ;;  %v12202_v30 = vld [vmem:[%s17097_s1 + $0x730] ss:$8 sps:$4 sm:$0xff]  }
  0x3b   : > { %1031 = vmatpush1.bf16.msra.mxu1 %v12147_v46  ;;  %v12189_v46 = vld [vmem:[%s17097_s1 + $0x314] ss:$8 sps:$4 sm:$0xff]   ;;  %v2588_v12 = vsel %vm1797_vm0, %v2576_v31, %v2587_v58  ;;  %v12207_v31 = vld [vmem:[%s17097_s1 + $0x344] ss:$8 sps:$4 sm:$0xff]  }
  0x3c   : > { %2986 = vmatpush1.bf16.msra.mxu0 %v12148_v47  ;;  %1032 = vmatprep.subr.bf16.mxu1 %v12149_v52  ;;  %v12192_v47 = vld [vmem:[%s17097_s1 + $0x714] ss:$8 sps:$4 sm:$0xff]   ;;  %v12187_v52 = vld [vmem:[%s17097_s1 + $0x310] ss:$8 sps:$4 sm:$0xff]  }
  0x3d   : > { %2987 = vmatprep.subr.bf16.mxu0 %v12151_v55  ;;  %v538_v55 = vrot.slane %v536_v49, 1 }
  0x3f   : > { %1033 = vmatpush1.bf16.msra.mxu1 %v12153_v62  ;;  %v2402_v62 = vld [vmem:[%s13438_s17 + $0x70] sm:$0xff] }
  0x40   : > { %2988 = vmatpush1.bf16.msra.mxu0 %v12154_v63  ;;  %1034 = vmatprep.subr.bf16.mxu1 %v12155_v5  ;;  %v539_v63 = vsel %vm475_vm1, %v534_v48, %v538_v55  ;;  %v13594_v2 = vcombine.high %v2400_v36, %v2402_v62  ;;  %v13597_v5 = vcombine.low %v2400_v36, %v2402_v62  ;;  %v12210_v36 = vld [vmem:[%s17097_s1 + $0x744] ss:$8 sps:$4 sm:$0xff]  }
  0x41   : > { %2989 = vmatprep.subr.bf16.mxu0 %v12157_v6  ;;  %v12195_v6 = vld [vmem:[%s17097_s1 + $0x324] ss:$8 sps:$4 sm:$0xff]   ;;  %v13605_v8 = vcombine.high %v2402_v62, %v2404_v1  ;;  %v13610_v10 = vcombine.low %v2402_v62, %v2404_v1  ;;  %v12213_v62 = vld [vmem:[%s17097_s1 + $0x354] ss:$8 sps:$4 sm:$0xff]  }
  0x42   : > { %v560_v21 = vshll.u32 %v13597_v5, 16  ;;  %v596_v35 = vshrl.u32 %v13594_v2, 16  ;;  %v588_v51 = vshrl.u32 %v13597_v5, 16 }
  0x43   : > { %1035 = vmatpush1.bf16.msra.mxu1 %v12159_v9  ;;  %v12193_v9 = vld [vmem:[%s17097_s1 + $0x320] ss:$8 sps:$4 sm:$0xff]   ;;  %v2597_v14 = vrot.slane %v13605_v8, 1 }
  0x44   : > { %2990 = vmatpush1.bf16.msra.mxu0 %v12160_v11  ;;  %1036 = vmatprep.subr.bf16.mxu1 %v12161_v15  ;;  %v568_v11 = vshll.u32 %v13594_v2, 16  ;;  %v566_v15 = vor.u32 %v564_v3, %v538_v55 }
  0x45   : > { %2991 = vmatprep.subr.bf16.mxu0 %v12163_v16  ;;  %v12196_v16 = vld [vmem:[%s17097_s1 + $0x720] ss:$8 sps:$4 sm:$0xff]   ;;  %v2598_v32 = vsel %vm1797_vm0, %v2589_v50, %v2597_v14 }
  0x47   : > { %1037 = vmatpush1.bf16.msra.mxu1 %v12165_v17  ;;  %v531_v17 = vsel %vm475_vm1, %v526_v59, %v530_v60  ;;  %v2412_v59 = vld [vmem:[%s13438_s17 + $0xc0] sm:$0x11] }
  0x48   : > { %2992 = vmatpush1.bf16.msra.mxu0 %v12166_v18  ;;  %1038 = vmatprep.subr.bf16.mxu1 %v12167_v24  ;;  %v570_v18 = vrot.slane %v568_v11, 1  ;;  %v12204_v24 = vld [vmem:[%s17097_s1 + $0x734] ss:$8 sps:$4 sm:$0xff]  }
  0x49   : > { %2993 = vmatprep.subr.bf16.mxu0 %v12169_v25  ;;  %v2406_v25 = vld [vmem:[%s13438_s17 + $0x90] sm:$0xff] }
  0x4a   : > { %v13635_v29 = vcombine.high %v2404_v1, %v2406_v25  ;;  %v598_v49 = vor.u32 %v596_v35, %v570_v18 }
  0x4b   : > { %1039 = vmatpush1.bf16.msra.mxu1 %v12171_v26  ;;  %v12199_v26 = vld [vmem:[%s17097_s1 + $0x330] ss:$8 sps:$4 sm:$0xff]  }
  0x4c   : > { %2994 = vmatpush1.bf16.msra.mxu0 %v12172_v27  ;;  %1099 = vmatprep.subr.bf16.mxu1 %v12177_v33  ;;  %v2595_v27 = vrot.slane %v13610_v10, 1  ;;  %v571_v33 = vsel %vm475_vm1, %v566_v15, %v570_v18  ;;  %v600_v43 = vshll.u32 %v13635_v29, 16  ;;  %v628_v11 = vshrl.u32 %v13635_v29, 16  ;;  %v12222_v15 = vld [vmem:[%s17097_s1 + $0x364] ss:$8 sps:$4 sm:$0xff]  }
  0x4d   : > { %3054 = vmatprep.subr.bf16.mxu0 %v12182_v34  ;;  %v13645_v34 = vcombine.high %v2406_v25, %v2408_v28 }
  0x4e   : > { %1041 = vmatmul.mubr.bf16.vlgmr.msra.gmra.mrb[0].mxu1 %v487_v44  ;;  %v13652_v44 = vcombine.low %v2404_v1, %v2406_v25  ;;  %v602_v50 = vrot.slane %v600_v43, 1  ;;  %v2596_v55 = vsel %vm1797_vm0, %v2587_v58, %v2595_v27  ;;  %v12211_v58 = vld [vmem:[%s17097_s1 + $0x350] ss:$8 sps:$4 sm:$0xff]  }
  0x4f   : > { %2996 = vmatmul.mubr.bf16.vlgmr.msra.gmra.mrb[0].mxu0 %v2577_v45  ;;  %1100 = vmatpush1.bf16.msra.mxu1 %v12175_v39  ;;  %v558_v39 = vor.u32 %v556_v20, %v530_v60  ;;  %v12205_v45 = vld [vmem:[%s17097_s1 + $0x340] ss:$8 sps:$4 sm:$0xff]   ;;  %v2605_v48 = vrot.slane %v13645_v34, 1  ;;  %v312_v60 = vld [vmem:[%s13438_s17 + $0xb0] sm:$0x11] }
  0x50   : > { %3055 = vmatpush1.bf16.msra.mxu0 %v12180_v40  ;;  %1101 = vmatprep.subr.bf16.mxu1 %v12189_v46  ;;  %v562_v40 = vrot.slane %v560_v21, 1  ;;  %v13657_v46 = vcombine.low %v2406_v25, %v2408_v28  ;;  %v13681_v3 = vcombine.high %v2408_v28, %v312_v60  ;;  %v12225_v20 = vld [vmem:[%s17097_s1 + $0x764] ss:$8 sps:$4 sm:$0xff]   ;;  %v12220_v21 = vld [vmem:[%s17097_s1 + $0x360] ss:$8 sps:$4 sm:$0xff]  }
  0x51   : > { %3056 = vmatprep.subr.bf16.mxu0 %v12192_v47  ;;  %3005 = vmatprep.mubr.bf16.mxu0 %v2590_v57  ;;  %v12208_v47 = vld [vmem:[%s17097_s1 + $0x740] ss:$8 sps:$4 sm:$0xff]   ;;  %v592_v57 = vshll.u32 %v13652_v44, 16 }
  0x52   : > { %1050 = vmatprep.mubr.bf16.mxu1 %v539_v63  ;;  %v12216_v63 = vld [vmem:[%s17097_s1 + $0x754] ss:$8 sps:$4 sm:$0xff]   ;;  %v2603_v1 = vrot.slane %v13657_v46, 1  ;;  %17128 = vst [vmem:[#allocation3_spill] sm:$0xff] %v13681_v3  ;;  %v632_v18 = vshll.u32 %v13681_v3, 16 }
  0x53   : > { %1102 = vmatpush1.bf16.msra.mxu1 %v12187_v52  ;;  %v2410_v52 = vld [vmem:[%s13438_s17 + $0xb0] sm:$0xff] }
  0x54   : > { %3057 = vmatpush1.bf16.msra.mxu0 %v12190_v56  ;;  %1103 = vmatprep.subr.bf16.mxu1 %v12195_v6  ;;  %v563_v56 = vsel %vm475_vm1, %v558_v39, %v562_v40  ;;  %v2606_v6 = vsel %vm1797_vm0, %v2597_v14, %v2605_v48  ;;  %v13696_v14 = vcombine.low %v2408_v28, %v312_v60  ;;  %v634_v28 = vrot.slane %v632_v18, 1  ;;  %v12230_v39 = vld [vmem:[%s17097_s1 + $0x770] ss:$8 sps:$4 sm:$0xff]  }
  0x55   : > { %3058 = vmatprep.subr.bf16.mxu0 %v12198_v7  ;;  %v603_v7 = vsel %vm475_vm1, %v598_v49, %v602_v50 }
  0x56   : > { %1051 = vmatmul.mubr.bf16.gmra.mrb[4].mxu1 %v531_v17  ;;  %v594_v17 = vrot.slane %v592_v57, 1  ;;  %17129 = vst [vmem:[#allocation4_spill] sm:$0xff] %v13696_v14  ;;  %v624_v35 = vshll.u32 %v13696_v14, 16  ;;  %v12236_v57 = vld [vmem:[%s17097_s1 + $0x380] ss:$8 sps:$4 sm:$0xff]  }
  0x57   : > { %3006 = vmatmul.mubr.bf16.gmra.mrb[4].mxu0 %v2588_v12  ;;  %1104 = vmatpush1.bf16.msra.mxu1 %v12193_v9  ;;  %v10123_v9 = vcombine.high %v2410_v52, %v2412_v59  ;;  %v12214_v12 = vld [vmem:[%s17097_s1 + $0x750] ss:$8 sps:$4 sm:$0xff]  }
  0x58   : > { %3059 = vmatpush1.bf16.msra.mxu0 %v12196_v16  ;;  %1105 = vmatprep.subr.bf16.mxu1 %v12201_v22  ;;  %v590_v16 = vor.u32 %v588_v51, %v562_v40  ;;  %v12223_v22 = vld [vmem:[%s17097_s1 + $0x760] ss:$8 sps:$4 sm:$0xff]   ;;  %v12238_v40 = vld [vmem:[%s17097_s1 + $0x384] ss:$8 sps:$4 sm:$0xff]   ;;  %v626_v51 = vrot.slane %v624_v35, 1 }
  0x59   : > { %3060 = vmatprep.subr.bf16.mxu0 %v12204_v24  ;;  %3015 = vmatprep.mubr.bf16.mxu0 %v2598_v32  ;;  %v2604_v24 = vsel %vm1797_vm0, %v2595_v27, %v2603_v1  ;;  %v13712_v25 = vrot.slane %v10123_v9, 1  ;;  %v10122_v32 = vcombine.low %v2410_v52, %v2412_v59  ;;  %v12232_v27 = vld [vmem:[%s17097_s1 + $0x774] ss:$8 sps:$4 sm:$0xff]   ;;  %v13739_v52 = vld [vmem:[%s13438_s17 + $0x28] sm:$0xff]  ;;  %v655_v59 = vshrl.u32 %v13681_v3, 16 }
  0x5a   : > { %1060 = vmatprep.mubr.bf16.mxu1 %v571_v33  ;;  %v620_v33 = vshrl.u32 %v13652_v44, 16 }
  0x5b   : > { %1106 = vmatpush1.bf16.msra.mxu1 %v12199_v26  ;;  %v630_v26 = vor.u32 %v628_v11, %v602_v50  ;;  %v2614_v43 = vsel %vm1797_vm0, %v2605_v48, %v13712_v25  ;;  %v2611_v49 = vrot.slane %v10122_v32, 1  ;;  %v13745_v48 = vld [vmem:[%s13438_s17 + $0x8] sm:$0xff] }
  0x5c   : > { %3061 = vmatpush1.bf16.msra.mxu0 %v12202_v30  ;;  %1107 = vmatprep.subr.bf16.mxu1 %v12207_v31  ;;  %v12229_v30 = vld [vmem:[%s17097_s1 + $0x374] ss:$8 sps:$4 sm:$0xff]   ;;  %v595_v31 = vsel %vm475_vm1, %v590_v16, %v594_v17  ;;  %v622_v50 = vor.u32 %v620_v33, %v594_v17  ;;  %v13776_v11 = vld [vmem:[%s13438_s17 + $0x48] sm:$0xff]  ;;  %v657_v16 = vor.u32 %v655_v59, %v634_v28  ;;  %v652_v17 = vshrl.u32 %v13696_v14, 16 }
  0x5d   : > { %3062 = vmatprep.subr.bf16.mxu0 %v12210_v36  ;;  %v12227_v36 = vld [vmem:[%s17097_s1 + $0x370] ss:$8 sps:$4 sm:$0xff]   ;;  %v12255_v33 = vld [vmem:[%s17097_s1 + $0x7a0] ss:$8 sps:$4 sm:$0xff]  }
  0x5e   : > { %1061 = vmatmul.mubr.bf16.gmra.mrb[8].mxu1 %v563_v56  ;;  %v13748_v56 = vld [vmem:[%s13438_s17 + $0x18] sm:$0xff]  ;;  %v627_v9 = vsel %vm475_vm1, %v622_v50, %v626_v51  ;;  %v654_v32 = vor.u32 %v652_v17, %v626_v51  ;;  %v12273_v51 = vld [vmem:[%s17097_s1 + $0x7c4] ss:$8 sps:$4 sm:$0xff]   ;;  %v12271_v59 = vld [vmem:[%s17097_s1 + $0x7c0] ss:$8 sps:$4 sm:$0xff]  }
  0x5f   : > { %3016 = vmatmul.mubr.bf16.gmra.mrb[8].mxu0 %v2596_v55  ;;  %1108 = vmatpush1.bf16.msra.mxu1 %v12205_v45  ;;  %v635_v45 = vsel %vm475_vm1, %v630_v26, %v634_v28  ;;  %v13742_v55 = vld [vmem:[%s13438_s17 + $0x38] sm:$0xff]  ;;  %v13756_v60 = vcombine.high %v13745_v48, %v13748_v56  ;;  %v12254_v28 = vld [vmem:[%s17097_s1 + $0x3a4] ss:$8 sps:$4 sm:$0xff]   ;;  %v12281_v17 = vld [vmem:[%s17097_s1 + $0x3e0] ss:$8 sps:$4 sm:$0xff]  }
  0x60   : > { %3063 = vmatpush1.bf16.msra.mxu0 %v12208_v47  ;;  %1109 = vmatprep.subr.bf16.mxu1 %v12213_v62  ;;  %v12241_v47 = vld [vmem:[%s17097_s1 + $0x784] ss:$8 sps:$4 sm:$0xff]   ;;  %v13759_v62 = vld [vmem:[%s13438_s17 + $0x18] sm:$0xee] }
  0x61   : > { %3064 = vmatprep.subr.bf16.mxu0 %v12216_v63  ;;  %3025 = vmatprep.mubr.bf16.mxu0 %v2606_v6  ;;  %v13763_v63 = vcombine.high %v13739_v52, %v13742_v55  ;;  %v12245_v6 = vld [vmem:[%s17097_s1 + $0x394] ss:$8 sps:$4 sm:$0xff]   ;;  %v13785_v18 = vcombine.high %v13759_v62, %v13739_v52  ;;  %v12246_v26 = vld [vmem:[%s17097_s1 + $0x790] ss:$8 sps:$4 sm:$0xff]  }
  0x62   : > { %1070 = vmatprep.mubr.bf16.mxu1 %v603_v7  ;;  %v2612_v7 = vsel %vm1797_vm0, %v2603_v1, %v2611_v49  ;;  %v13789_v1 = vcombine.high %v13742_v55, %v13776_v11  ;;  %v12262_v50 = vld [vmem:[%s17097_s1 + $0x7b0] ss:$8 sps:$4 sm:$0xff]  }
  0x63   : > { %1110 = vmatpush1.bf16.msra.mxu1 %v12211_v58  ;;  %v12239_v58 = vld [vmem:[%s17097_s1 + $0x780] ss:$8 sps:$4 sm:$0xff]   ;;  %v2584_v35 = vrot.slane %v13785_v18, 1 }
  0x64   : > { %3065 = vmatpush1.bf16.msra.mxu0 %v12214_v12  ;;  %1111 = vmatprep.subr.bf16.mxu1 %v12222_v15  ;;  %v515_v12 = vshll.u32 %v13756_v60, 16  ;;  %v12248_v15 = vld [vmem:[%s17097_s1 + $0x794] ss:$8 sps:$4 sm:$0xff]  }
  0x65   : > { %3066 = vmatprep.subr.bf16.mxu0 %v12225_v20  ;;  %v513_v20 = vshrl.u32 %v13756_v60, 16 }
  0x66   : > { %1071 = vmatmul.mubr.bf16.gmra.mrb[12].mxu1 %v595_v31  ;;  %v12252_v31 = vld [vmem:[%s17097_s1 + $0x3a0] ss:$8 sps:$4 sm:$0xff]  }
  0x67   : > { %3026 = vmatmul.mubr.bf16.gmra.mrb[12].mxu0 %v2604_v24  ;;  %1112 = vmatpush1.bf16.msra.mxu1 %v12220_v21  ;;  %v517_v21 = vrot.slane %v515_v12, 1  ;;  %v12243_v24 = vld [vmem:[%s17097_s1 + $0x390] ss:$8 sps:$4 sm:$0xff]  }
  0x68   : > { %3067 = vmatpush1.bf16.msra.mxu0 %v12223_v22  ;;  %1113 = vmatprep.subr.bf16.mxu1 %v12229_v30  ;;  %v520_v22 = vshll.u32 %v13763_v63, 16  ;;  %v12257_v30 = vld [vmem:[%s17097_s1 + $0x7a4] ss:$8 sps:$4 sm:$0xff]   ;;  %v12278_v12 = vld [vmem:[%s17097_s1 + $0x7d0] ss:$8 sps:$4 sm:$0xff]  }
  0x69   : > { %3068 = vmatprep.subr.bf16.mxu0 %v12232_v27  ;;  %3035 = vmatprep.mubr.bf16.mxu0 %v2614_v43  ;;  %v2585_v27 = vrot.slane %v13789_v1, 1 }
  0x6a   : > { %1080 = vmatprep.mubr.bf16.mxu1 %v635_v45 }
  0x6b   : > { %1114 = vmatpush1.bf16.msra.mxu1 %v12227_v36  ;;  %v518_v36 = vor.u32 %v517_v21, %v513_v20  ;;  %v2586_v43 = vsel %vm1797_vm0, %v2584_v35, %v2585_v27  ;;  %v2399_v20 = vld [vmem:[%s13438_s17 + $0x58] sm:$0xff]  ;;  %v12284_v21 = vld [vmem:[%s17097_s1 + $0x7e0] ss:$8 sps:$4 sm:$0xff]  }
  0x6c   : > { %3069 = vmatpush1.bf16.msra.mxu0 %v12230_v39  ;;  %1115 = vmatprep.subr.bf16.mxu1 %v12238_v40  ;;  %v13814_v39 = vrot.slane %v520_v22, 1  ;;  %v12261_v40 = vld [vmem:[%s17097_s1 + $0x3b4] ss:$8 sps:$4 sm:$0xff]   ;;  %v13881_v22 = vcombine.low %v13759_v62, %v13739_v52 }
  0x6d   : > { %3070 = vmatprep.subr.bf16.mxu0 %v12241_v47  ;;  %v12259_v47 = vld [vmem:[%s17097_s1 + $0x3b0] ss:$8 sps:$4 sm:$0xff]   ;;  %v12292_v62 = vld [vmem:[%s17097_s1 + $0x7f4] ss:$8 sps:$4 sm:$0xff]  }
  0x6e   : > { %1081 = vmatmul.mubr.bf16.gmra.mrb[16].mxu1 %v627_v9  ;;  %v523_v45 = vsel %vm475_vm1, %v518_v36, %v13814_v39  ;;  %v12275_v9 = vld [vmem:[%s17097_s1 + $0x3d0] ss:$8 sps:$4 sm:$0xff]   ;;  %v548_v36 = vshrl.u32 %v13763_v63, 16 }
  0x6f   : > { %3036 = vmatmul.mubr.bf16.gmra.mrb[16].mxu0 %v2612_v7  ;;  %1116 = vmatpush1.bf16.msra.mxu1 %v12236_v57  ;;  %v12268_v57 = vld [vmem:[%s17097_s1 + $0x3c0] ss:$8 sps:$4 sm:$0xff]   ;;  %v12280_v7 = vld [vmem:[%s17097_s1 + $0x7d4] ss:$8 sps:$4 sm:$0xff]  }
  0x70   : > { %3071 = vmatpush1.bf16.msra.mxu0 %v12239_v58  ;;  %1117 = vmatprep.subr.bf16.mxu1 %v12245_v6  ;;  %v12277_v58 = vld [vmem:[%s17097_s1 + $0x3d4] ss:$8 sps:$4 sm:$0xff]   ;;  %v13850_v6 = vcombine.low %v13745_v48, %v13748_v56  ;;  %v12283_v48 = vld [vmem:[%s17097_s1 + $0x3e4] ss:$8 sps:$4 sm:$0xff]   ;;  %v13866_v56 = vcombine.low %v13739_v52, %v13742_v55 }
  0x71   : > { %3072 = vmatprep.subr.bf16.mxu0 %v12248_v15  ;;  %3045 = vmatprep.mubr.bf16.mxu0 %v13712_v25  ;;  %v12264_v25 = vld [vmem:[%s17097_s1 + $0x7b4] ss:$8 sps:$4 sm:$0xff]  }
  0x72   : > { %1090 = vmatprep.mubr.bf16.mxu1 %v657_v16  ;;  %17130 = vst [vmem:[#allocation5_spill] sm:$0xff] %v13866_v56  ;;  %v503_v15 = vshll.u32 %v13850_v6, 16  ;;  %v12286_v16 = vld [vmem:[%s17097_s1 + $0x7e4] ss:$8 sps:$4 sm:$0xff]   ;;  %v12289_v52 = vld [vmem:[%s17097_s1 + $0x3f4] ss:$8 sps:$4 sm:$0xff]  }
  0x73   : > { %1118 = vmatpush1.bf16.msra.mxu1 %v12243_v24  ;;  %v13884_v24 = vcombine.high %v13776_v11, %v2399_v20 }
  0x74   : > { %3073 = vmatpush1.bf16.msra.mxu0 %v12246_v26  ;;  %1119 = vmatprep.subr.bf16.mxu1 %v12254_v28  ;;  %v13888_v26 = vcombine.low %v13742_v55, %v13776_v11  ;;  %v501_v28 = vshrl.u32 %v13850_v6, 16  ;;  %v12287_v55 = vld [vmem:[%s17097_s1 + $0x3f0] ss:$8 sps:$4 sm:$0xff]  }
  0x75   : > { %3074 = vmatprep.subr.bf16.mxu0 %v12257_v30  ;;  %17131 = vst [vmem:[#allocation6_spill] sm:$0xff] %v13884_v24  ;;  %v505_v30 = vrot.slane %v503_v15, 1  ;;  %v12304_v15 = vld [vmem:[%s17097_s1 + $0x800] ss:$8 sps:$4 sm:$0xff]  }
  0x76   : > { %1091 = vmatmul.mubr.bf16.gmra.mrb[20].mxu1 %v654_v32  ;;  %v2401_v32 = vld [vmem:[%s13438_s17 + $0x68] sm:$0xff] }
  0x77   : > { %3046 = vmatmul.mubr.bf16.gmra.mrb[20].mxu0 %v2611_v49  ;;  %1120 = vmatpush1.bf16.msra.mxu1 %v12252_v31  ;;  %v12270_v49 = vld [vmem:[%s17097_s1 + $0x3c4] ss:$8 sps:$4 sm:$0xff]   ;;  %v508_v31 = vshll.u32 %v13866_v56, 16  ;;  %v13903_v35 = vcombine.high %v2399_v20, %v2401_v32 }
  0x78   : > { %3075 = vmatpush1.bf16.msra.mxu0 %v12255_v33  ;;  %1121 = vmatprep.subr.bf16.mxu1 %v12261_v40  ;;  %v2581_v33 = vrot.slane %v13881_v22, 1  ;;  %v552_v40 = vshll.u32 %v13884_v24, 16 }
  0x79   : > { %3076 = vmatprep.subr.bf16.mxu0 %v12264_v25  ;;  %3086 = vmatprep.mubr.bf16.mxu0 %v2586_v43  ;;  %v12290_v25 = vld [vmem:[%s17097_s1 + $0x7f0] ss:$8 sps:$4 sm:$0xff]   ;;  %v2582_v43 = vrot.slane %v13888_v26, 1 }
  0x7a   : > { %1131 = vmatprep.mubr.bf16.mxu1 %v523_v45  ;;  %v506_v45 = vor.u32 %v505_v30, %v501_v28  ;;  %v12312_v28 = vld [vmem:[%s17097_s1 + $0x814] ss:$8 sps:$4 sm:$0xff]  }
  0x7b   : > { %1122 = vmatpush1.bf16.msra.mxu1 %v12259_v47  ;;  %v510_v47 = vrot.slane %v508_v31, 1  ;;  %v580_v31 = vshrl.u32 %v13884_v24, 16 }
  0x7c   : > { %3077 = vmatpush1.bf16.msra.mxu0 %v12262_v50  ;;  %1123 = vmatprep.subr.bf16.mxu1 %v12270_v49  ;;  %v13912_v50 = vcombine.low %v13776_v11, %v2399_v20  ;;  %v12303_v49 = vld [vmem:[%s17097_s1 + $0x4] ss:$8 sps:$4 sm:$0xff]   ;;  %v2593_v11 = vrot.slane %v13903_v35, 1 }
  0x7d   : > { %3078 = vmatprep.subr.bf16.mxu0 %v12273_v51  ;;  %v12306_v51 = vld [vmem:[%s17097_s1 + $0x804] ss:$8 sps:$4 sm:$0xff]  }
  0x7e   : > { %17132 = vst [vmem:[#allocation7_spill] sm:$0xff] %v13912_v50 }
  0x7f   : > { %1124 = vmatpush1.bf16.msra.mxu1 %v12268_v57  ;;  %v13920_v57 = vcombine.low %v2399_v20, %v2401_v32  ;;  %v540_v20 = vshrl.u32 %v13866_v56, 16 }
  0x80   : > { %3079 = vmatpush1.bf16.msra.mxu0 %v12271_v59  ;;  %1125 = vmatprep.subr.bf16.mxu1 %v12277_v58  ;;  %v2403_v59 = vld [vmem:[%s13438_s17 + $0x78] sm:$0xff]  ;;  %v12301_v58 = vld [vmem:[%s17097_s1] ss:$8 sps:$4 sm:$0xff]  }
  0x81   : > { %3080 = vmatprep.subr.bf16.mxu0 %v12280_v7  ;;  %v550_v7 = vor.u32 %v548_v36, %v13814_v39  ;;  %v12309_v39 = vld [vmem:[%s17097_s1 + $0x14] ss:$8 sps:$4 sm:$0xff]   ;;  %v17102_v30 = vrot.slane %v13920_v57, 1 }
  0x83   : > { %1126 = vmatpush1.bf16.msra.mxu1 %v12275_v9  ;;  %v554_v9 = vrot.slane %v552_v40, 1  ;;  %v12310_v40 = vld [vmem:[%s17097_s1 + $0x810] ss:$8 sps:$4 sm:$0xff]  }
  0x84   : > { %3081 = vmatpush1.bf16.msra.mxu0 %v12278_v12  ;;  %1127 = vmatprep.subr.bf16.mxu1 %v12283_v48  ;;  %v13928_v12 = vcombine.high %v2401_v32, %v2403_v59  ;;  %v2583_v48 = vsel %vm1797_vm0, %v2581_v33, %v2582_v43 }
  0x85   : > { %3082 = vmatprep.subr.bf16.mxu0 %v12286_v16  ;;  %v511_v16 = vsel %vm475_vm1, %v506_v45, %v510_v47  ;;  %v555_v33 = vsel %vm475_vm1, %v550_v7, %v554_v9  ;;  %v542_v45 = vor.u32 %v540_v20, %v510_v47  ;;  %v2592_v7 = vsel %vm1797_vm0, %v2582_v43, %v17102_v30  ;;  %v12323_v43 = vld [vmem:[%s17097_s1 + $0x34] ss:$8 sps:$4 sm:$0xff]  }
  0x86   : > { %17133 = vst [vmem:[#allocation8_spill] sm:$0xff] %v13928_v12  ;;  %v584_v36 = vshll.u32 %v13928_v12, 16 }
  0x87   : > { %1128 = vmatpush1.bf16.msra.mxu1 %v12281_v17  ;;  %v2405_v17 = vld [vmem:[%s13438_s17 + $0x88] sm:$0xff] }
  0x88   : > { %3083 = vmatpush1.bf16.msra.mxu0 %v12284_v21  ;;  %1129 = vmatprep.subr.bf16.mxu1 %v12289_v52  ;;  %v544_v21 = vshll.u32 %v13912_v50, 16  ;;  %v12307_v52 = vld [vmem:[%s17097_s1 + $0x10] ss:$8 sps:$4 sm:$0xff]   ;;  %v586_v20 = vrot.slane %v584_v36, 1 }
  0x89   : > { %3084 = vmatprep.subr.bf16.mxu0 %v12292_v62  ;;  %v2594_v62 = vsel %vm1797_vm0, %v2585_v27, %v2593_v11 }
  0x8a   : > { %v546_v27 = vrot.slane %v544_v21, 1 }
  0x8b   : > { %1130 = vmatpush1.bf16.msra.mxu1 %v12287_v55  ;;  %v13952_v55 = vcombine.high %v2403_v59, %v2405_v17 }
  0x8c   : > { %3085 = vmatpush1.bf16.msra.mxu0 %v12290_v25  ;;  %1538 = vmatprep.subr.bf16.mxu1 %v12303_v49  ;;  %v12316_v25 = vld [vmem:[%s17097_s1 + $0x24] ss:$8 sps:$4 sm:$0xff]   ;;  %v13962_v49 = vcombine.low %v2401_v32, %v2403_v59  ;;  %v12318_v32 = vld [vmem:[%s17097_s1 + $0x820] ss:$8 sps:$4 sm:$0xff]  }
  0x8d   : > { %3801 = vmatprep.subr.bf16.mxu0 %v12306_v51  ;;  %v12320_v51 = vld [vmem:[%s17097_s1 + $0x824] ss:$8 sps:$4 sm:$0xff]   ;;  %v2601_v47 = vrot.slane %v13952_v55, 1 }
  0x8e   : > { %1132 = vmatmul.mubr.bf16.vlgmr.msra.gmra.mrb[0].mxu1 %v511_v16  ;;  %17134 = vst [vmem:[#allocation9_spill] sm:$0xff] %v13962_v49  ;;  %v582_v16 = vor.u32 %v580_v31, %v554_v9  ;;  %v12326_v9 = vld [vmem:[%s17097_s1 + $0x834] ss:$8 sps:$4 sm:$0xff]   ;;  %v12321_v31 = vld [vmem:[%s17097_s1 + $0x30] ss:$8 sps:$4 sm:$0xff]  }
  0x8f   : > { %3087 = vmatmul.mubr.bf16.vlgmr.msra.gmra.mrb[0].mxu0 %v2583_v48  ;;  %1539 = vmatpush1.bf16.msra.mxu1 %v12301_v58  ;;  %v12314_v58 = vld [vmem:[%s17097_s1 + $0x20] ss:$8 sps:$4 sm:$0xff]   ;;  %v2407_v48 = vld [vmem:[%s13438_s17 + $0x98] sm:$0xff]  ;;  %v2602_v36 = vsel %vm1797_vm0, %v2593_v11, %v2601_v47 }
  0x90   : > { %3802 = vmatpush1.bf16.msra.mxu0 %v12304_v15  ;;  %1540 = vmatprep.subr.bf16.mxu1 %v12309_v39  ;;  %v13979_v15 = vld [vmem:[%s13438_s17 + $0xa8] sm:$0xff]  ;;  %v13981_v21 = vcombine.high %v2405_v17, %v2407_v48  ;;  %v13986_v39 = vcombine.low %v2403_v59, %v2405_v17  ;;  %v12324_v59 = vld [vmem:[%s17097_s1 + $0x830] ss:$8 sps:$4 sm:$0xff]   ;;  %v14011_v3 = vcombine.low %v2405_v17, %v2407_v48 }
  0x91   : > { %3803 = vmatprep.subr.bf16.mxu0 %v12312_v28  ;;  %3096 = vmatprep.mubr.bf16.mxu0 %v2594_v62  ;;  %v547_v28 = vsel %vm475_vm1, %v542_v45, %v546_v27  ;;  %v572_v62 = vshrl.u32 %v13912_v50, 16  ;;  %v612_v45 = vshrl.u32 %v13928_v12, 16  ;;  %v313_v11 = vld [vmem:[%s13438_s17 + $0xb8] sm:$0x11]  ;;  %v2413_v50 = vld [vmem:[%s13438_s17 + $0xc8] sm:$0x11] }
  0x92   : > { %1141 = vmatprep.mubr.bf16.mxu1 %v555_v33  ;;  %v576_v33 = vshll.u32 %v13962_v49, 16  ;;  %v2599_v30 = vrot.slane %v13986_v39, 1  ;;  %v608_v24 = vshll.u32 %v14011_v3, 16  ;;  %v14059_v56 = vcombine.low %v13979_v15, %v313_v11 }
  0x93   : > { %1541 = vmatpush1.bf16.msra.mxu1 %v12307_v52  ;;  %v14001_v52 = vcombine.high %v2407_v48, %v13979_v15  ;;  %v574_v14 = vor.u32 %v572_v62, %v546_v27  ;;  %v12332_v27 = vld [vmem:[%s17097_s1 + $0x840] ss:$8 sps:$4 sm:$0xff]   ;;  %v614_v62 = vor.u32 %v612_v45, %v586_v20 }
  0x94   : > { %3804 = vmatpush1.bf16.msra.mxu0 %v12310_v40  ;;  %1542 = vmatprep.subr.bf16.mxu1 %v12316_v25  ;;  %v12330_v40 = vld [vmem:[%s17097_s1 + $0x44] ss:$8 sps:$4 sm:$0xff]   ;;  %v587_v25 = vsel %vm475_vm1, %v582_v16, %v586_v20  ;;  %v12340_v20 = vld [vmem:[%s17097_s1 + $0x854] ss:$8 sps:$4 sm:$0xff]  }
  0x95   : > { %3805 = vmatprep.subr.bf16.mxu0 %v12320_v51  ;;  %v616_v51 = vshll.u32 %v13981_v21, 16  ;;  %v12334_v16 = vld [vmem:[%s17097_s1 + $0x844] ss:$8 sps:$4 sm:$0xff]   ;;  %v2609_v17 = vrot.slane %v14001_v52, 1 }
  0x96   : > { %1142 = vmatmul.mubr.bf16.gmra.mrb[4].mxu1 %v547_v28  ;;  %v2411_v28 = vld [vmem:[%s13438_s17 + $0xb8] sm:$0xff] }
  0x97   : > { %3097 = vmatmul.mubr.bf16.gmra.mrb[4].mxu0 %v2592_v7  ;;  %1543 = vmatpush1.bf16.msra.mxu1 %v12314_v58  ;;  %v578_v7 = vrot.slane %v576_v33, 1  ;;  %v12328_v58 = vld [vmem:[%s17097_s1 + $0x40] ss:$8 sps:$4 sm:$0xff]   ;;  %v618_v33 = vrot.slane %v616_v51, 1  ;;  %v10125_v51 = vcombine.high %v2411_v28, %v2413_v50 }
  0x98   : > { %3806 = vmatpush1.bf16.msra.mxu0 %v12318_v32  ;;  %1544 = vmatprep.subr.bf16.mxu1 %v12323_v43  ;;  %v14025_v32 = vcombine.low %v2407_v48, %v13979_v15  ;;  %v12337_v43 = vld [vmem:[%s17097_s1 + $0x54] ss:$8 sps:$4 sm:$0xff]  }
  0x99   : > { %3807 = vmatprep.subr.bf16.mxu0 %v12326_v9  ;;  %3106 = vmatprep.mubr.bf16.mxu0 %v2602_v36  ;;  %v14032_v9 = vcombine.high %v13979_v15, %v313_v11  ;;  %v17135_v36 = vrot.slane %v13920_v57, 1  ;;  %v579_v48 = vsel %vm475_vm1, %v574_v14, %v578_v7  ;;  %v12338_v14 = vld [vmem:[%s17097_s1 + $0x850] ss:$8 sps:$4 sm:$0xff]   ;;  %v2617_v15 = vrot.slane %v10125_v51, 1 }
  0x9a   : > { %1151 = vmatprep.mubr.bf16.mxu1 %v587_v25  ;;  %v604_v25 = vshrl.u32 %v13962_v49, 16  ;;  %v2607_v45 = vrot.slane %v14025_v32, 1 }
  0x9b   : > { %1545 = vmatpush1.bf16.msra.mxu1 %v12321_v31  ;;  %v2600_v12 = vsel %vm1797_vm0, %v17135_v36, %v2599_v30  ;;  %v12335_v31 = vld [vmem:[%s17097_s1 + $0x50] ss:$8 sps:$4 sm:$0xff]   ;;  %v648_v36 = vshll.u32 %v14032_v9, 16 }
  0x9c   : > { %3808 = vmatpush1.bf16.msra.mxu0 %v12324_v59  ;;  %1546 = vmatprep.subr.bf16.mxu1 %v12330_v40  ;;  %v2610_v59 = vsel %vm1797_vm0, %v2601_v47, %v2609_v17  ;;  %v619_v40 = vsel %vm475_vm1, %v614_v62, %v618_v33  ;;  %v12345_v47 = vld [vmem:[%s17097_s1 + $0x64] ss:$8 sps:$4 sm:$0xff]   ;;  %v606_v49 = vor.u32 %v604_v25, %v578_v7 }
  0x9d   : > { %3809 = vmatprep.subr.bf16.mxu0 %v12334_v16  ;;  %v644_v16 = vshrl.u32 %v13981_v21, 16  ;;  %v12349_v62 = vld [vmem:[%s17097_s1 + $0x864] ss:$8 sps:$4 sm:$0xff]   ;;  %v650_v11 = vrot.slane %v648_v36, 1  ;;  %v661_v36 = vshrl.u32 %v14032_v9, 16 }
  0x9e   : > { %1152 = vmatmul.mubr.bf16.gmra.mrb[8].mxu1 %v579_v48  ;;  %v10124_v48 = vcombine.low %v2411_v28, %v2413_v50  ;;  %v12354_v50 = vld [vmem:[%s17097_s1 + $0x870] ss:$8 sps:$4 sm:$0xff]  }
  0x9f   : > { %3107 = vmatmul.mubr.bf16.gmra.mrb[8].mxu0 %v2600_v12  ;;  %1547 = vmatpush1.bf16.msra.mxu1 %v12328_v58  ;;  %v610_v12 = vrot.slane %v608_v24, 1  ;;  %v12343_v58 = vld [vmem:[%s17097_s1 + $0x60] ss:$8 sps:$4 sm:$0xff]   ;;  %v646_v7 = vor.u32 %v644_v16, %v618_v33  ;;  %v12356_v33 = vld [vmem:[%s17097_s1 + $0x874] ss:$8 sps:$4 sm:$0xff]  }
  0xa0   : > { %3810 = vmatpush1.bf16.msra.mxu0 %v12332_v27  ;;  %1548 = vmatprep.subr.bf16.mxu1 %v12337_v43  ;;  %v2608_v27 = vsel %vm1797_vm0, %v2599_v30, %v2607_v45  ;;  %v12347_v24 = vld [vmem:[%s17097_s1 + $0x860] ss:$8 sps:$4 sm:$0xff]   ;;  %v12353_v43 = vld [vmem:[%s17097_s1 + $0x74] ss:$8 sps:$4 sm:$0xff]   ;;  %v640_v30 = vshll.u32 %v14059_v56, 16 }
  0xa1   : > { %3811 = vmatprep.subr.bf16.mxu0 %v12340_v20  ;;  %3116 = vmatprep.mubr.bf16.mxu0 %v2610_v59  ;;  %v611_v25 = vsel %vm475_vm1, %v606_v49, %v610_v12  ;;  %v636_v20 = vshrl.u32 %v14011_v3, 16  ;;  %v2618_v49 = vsel %vm1797_vm0, %v2609_v17, %v2617_v15  ;;  %v651_v28 = vsel %vm475_vm1, %v646_v7, %v650_v11  ;;  %v12361_v59 = vld [vmem:[%s17097_s1 + $0x84] ss:$8 sps:$4 sm:$0xff]  }
  0xa2   : > { %1161 = vmatprep.mubr.bf16.mxu1 %v619_v40  ;;  %v642_v40 = vrot.slane %v640_v30, 1  ;;  %v12365_v16 = vld [vmem:[%s17097_s1 + $0x884] ss:$8 sps:$4 sm:$0xff]   ;;  %v3263_v17 = vshrl.u32 %v13473_v61, 16 }
  0xa3   : > { %1549 = vmatpush1.bf16.msra.mxu1 %v12335_v31  ;;  %v12351_v31 = vld [vmem:[%s17097_s1 + $0x70] ss:$8 sps:$4 sm:$0xff]   ;;  %v638_v51 = vor.u32 %v636_v20, %v610_v12  ;;  %v12359_v12 = vld [vmem:[%s17097_s1 + $0x80] ss:$8 sps:$4 sm:$0xff]  }
  0xa4   : > { %3812 = vmatpush1.bf16.msra.mxu0 %v12338_v14  ;;  %1550 = vmatprep.subr.bf16.mxu1 %v12345_v47  ;;  %v2615_v14 = vrot.slane %v10124_v48, 1  ;;  %v3266_v47 = vshll.u32 %v13473_v61, 16  ;;  %v12369_v61 = vld [vmem:[%s17097_s1 + $0x94] ss:$8 sps:$4 sm:$0xff]   ;;  %v3265_v48 = vrot.slane %v3263_v17, 1 }
  0xa5   : > { %3813 = vmatprep.subr.bf16.mxu0 %v12349_v62  ;;  %v3271_v62 = vshrl.u32 %v13482_v0, 16  ;;  %v643_v7 = vsel %vm475_vm1, %v638_v51, %v642_v40 }
  0xa6   : > { %1162 = vmatmul.mubr.bf16.gmra.mrb[12].mxu1 %v611_v25  ;;  %v663_v25 = vor.u32 %v661_v36, %v650_v11  ;;  %v3268_v20 = vrot.slane %v3266_v47, 2  ;;  %v12376_v11 = vld [vmem:[%s17097_s1 + $0xa4] ss:$8 sps:$4 sm:$0xff]   ;;  %v12383_v36 = vld [vmem:[%s17097_s1 + $0xb4] ss:$8 sps:$4 sm:$0xff]  }
  0xa7   : > { %3117 = vmatmul.mubr.bf16.gmra.mrb[12].mxu0 %v2608_v27  ;;  %1551 = vmatpush1.bf16.msra.mxu1 %v12343_v58  ;;  %v3274_v58 = vshll.u32 %v13482_v0, 16  ;;  %v12363_v27 = vld [vmem:[%s17097_s1 + $0x880] ss:$8 sps:$4 sm:$0xff]   ;;  %v3273_v30 = vrot.slane %v3271_v62, 1  ;;  %v12384_v62 = vld [vmem:[%s17097_s1 + $0x8b0] ss:$8 sps:$4 sm:$0xff]  }
  0xa8   : > { %3814 = vmatpush1.bf16.msra.mxu0 %v12347_v24  ;;  %1552 = vmatprep.subr.bf16.mxu1 %v12353_v43  ;;  %v2616_v24 = vsel %vm1797_vm0, %v2607_v45, %v2615_v14  ;;  %v12372_v43 = vld [vmem:[%s17097_s1 + $0x894] ss:$8 sps:$4 sm:$0xff]   ;;  %v12367_v45 = vld [vmem:[%s17097_s1 + $0x90] ss:$8 sps:$4 sm:$0xff]  }
  0xa9   : > { %3815 = vmatprep.subr.bf16.mxu0 %v12356_v33  ;;  %3126 = vmatprep.mubr.bf16.mxu0 %v2618_v49  ;;  %v3276_v33 = vrot.slane %v3274_v58, 2  ;;  %v12379_v49 = vld [vmem:[%s17097_s1 + $0x8a4] ss:$8 sps:$4 sm:$0xff]  }
  0xaa   : > { %1171 = vmatprep.mubr.bf16.mxu1 %v651_v28  ;;  %v12374_v28 = vld [vmem:[%s17097_s1 + $0xa0] ss:$8 sps:$4 sm:$0xff]   ;;  %v12393_v58 = vld [vmem:[%s17097_s1 + $0x8c4] ss:$8 sps:$4 sm:$0xff]  }
  0xab   : > { %1553 = vmatpush1.bf16.msra.mxu1 %v12351_v31  ;;  %v12370_v31 = vld [vmem:[%s17097_s1 + $0x890] ss:$8 sps:$4 sm:$0xff]   ;;  %v14132_v17 = vor.u32 %v3276_v33, %v3273_v30  ;;  %v12406_v30 = vld [vmem:[%s17097_s1 + $0x8e4] ss:$8 sps:$4 sm:$0xff]  }
  0xac   : > { %3816 = vmatpush1.bf16.msra.mxu0 %v12354_v50  ;;  %1554 = vmatprep.subr.bf16.mxu1 %v12361_v59  ;;  %v658_v50 = vshrl.u32 %v14059_v56, 16  ;;  %v12377_v59 = vld [vmem:[%s17097_s1 + $0x8a0] ss:$8 sps:$4 sm:$0xff]  }
  0xad   : > { %3817 = vmatprep.subr.bf16.mxu0 %v12365_v16  ;;  %v3269_v16 = vor.u32 %v3268_v20, %v3265_v48  ;;  %v12398_v48 = vld [vmem:[%s17097_s1 + $0x8d0] ss:$8 sps:$4 sm:$0xff]   ;;  %v3257_v20 = vshll.u32 %v13527_v23, 16 }
  0xae   : > { %1172 = vmatmul.mubr.bf16.gmra.mrb[16].mxu1 %v643_v7  ;;  %v660_v51 = vor.u32 %v658_v50, %v642_v40  ;;  %v12381_v40 = vld [vmem:[%s17097_s1 + $0xb0] ss:$8 sps:$4 sm:$0xff]   ;;  %v3249_v7 = vshll.u32 %v13522_v19, 16  ;;  %v3323_v50 = vshrl.u32 %v13564_v41, 16 }
  0xaf   : > { %3127 = vmatmul.mubr.bf16.gmra.mrb[16].mxu0 %v2616_v24  ;;  %1555 = vmatpush1.bf16.msra.mxu1 %v12359_v12  ;;  %v3278_v47 = vsel %vm3244_vm2, %v3269_v16, %v14132_v17  ;;  %v12388_v12 = vld [vmem:[%s17097_s1 + $0xc0] ss:$8 sps:$4 sm:$0xff]   ;;  %v12397_v24 = vld [vmem:[%s17097_s1 + $0xd4] ss:$8 sps:$4 sm:$0xff]  }
  0xb0   : > { %3818 = vmatpush1.bf16.msra.mxu0 %v12363_v27  ;;  %1556 = vmatprep.subr.bf16.mxu1 %v12369_v61  ;;  %v12391_v27 = vld [vmem:[%s17097_s1 + $0x8c0] ss:$8 sps:$4 sm:$0xff]   ;;  %v3246_v61 = vshrl.u32 %v13522_v19, 16  ;;  %v12403_v19 = vld [vmem:[%s17097_s1 + $0xe4] ss:$8 sps:$4 sm:$0xff]  }
  0xb1   : > { %3819 = vmatprep.subr.bf16.mxu0 %v12372_v43  ;;  %3136 = vmatprep.mubr.bf16.mxu0 %v2617_v15  ;;  %v12386_v15 = vld [vmem:[%s17097_s1 + $0x8b4] ss:$8 sps:$4 sm:$0xff]   ;;  %v12395_v43 = vld [vmem:[%s17097_s1 + $0xd0] ss:$8 sps:$4 sm:$0xff]  }
  0xb2   : > { %1181 = vmatprep.mubr.bf16.mxu1 %v663_v25  ;;  %v3254_v25 = vshrl.u32 %v13527_v23, 16  ;;  %v3248_v33 = vrot.slane %v3246_v61, 1  ;;  %v12412_v16 = vld [vmem:[%s17097_s1 + $0x8f4] ss:$8 sps:$4 sm:$0xff]  }
  0xb3   : > { %1557 = vmatpush1.bf16.msra.mxu1 %v12367_v45  ;;  %v3251_v45 = vrot.slane %v3249_v7, 2  ;;  %v3359_v7 = vshrl.u32 %v13605_v8, 16 }
  0xb4   : > { %3820 = vmatpush1.bf16.msra.mxu0 %v12370_v31  ;;  %1558 = vmatprep.subr.bf16.mxu1 %v12376_v11  ;;  %v12401_v31 = vld [vmem:[%s17097_s1 + $0xe0] ss:$8 sps:$4 sm:$0xff]   ;;  %v3326_v11 = vshll.u32 %v13564_v41, 16 }
  0xb5   : > { %3821 = vmatprep.subr.bf16.mxu0 %v12379_v49  ;;  %v12404_v49 = vld [vmem:[%s17097_s1 + $0x8e0] ss:$8 sps:$4 sm:$0xff]  }
  0xb6   : > { %1182 = vmatmul.mubr.bf16.gmra.mrb[24].mxu1 %v660_v51  ;;  %v12409_v51 = vld [vmem:[%s17097_s1 + $0xf4] ss:$8 sps:$4 sm:$0xff]  }
  0xb7   : > { %3137 = vmatmul.mubr.bf16.gmra.mrb[24].mxu0 %v2615_v14  ;;  %1559 = vmatpush1.bf16.msra.mxu1 %v12374_v28  ;;  %v12390_v14 = vld [vmem:[%s17097_s1 + $0xc4] ss:$8 sps:$4 sm:$0xff]   ;;  %v3256_v28 = vrot.slane %v3254_v25, 1 }
  0xb8   : > { %3822 = vmatpush1.bf16.msra.mxu0 %v12377_v59  ;;  %1560 = vmatprep.subr.bf16.mxu1 %v12383_v36  ;;  %v3259_v59 = vrot.slane %v3257_v20, 2  ;;  %v12407_v36 = vld [vmem:[%s17097_s1 + $0xf0] ss:$8 sps:$4 sm:$0xff]  }
  0xb9   : > { %3823 = vmatprep.subr.bf16.mxu0 %v12386_v15  ;;  %1570 = vmatprep.mubr.bf16.mxu1 %v13459_v53  ;;  %v12400_v53 = vld [vmem:[%s17097_s1 + $0x8d4] ss:$8 sps:$4 sm:$0xff]   ;;  %v3325_v15 = vrot.slane %v3323_v50, 1  ;;  %v3361_v50 = vrot.slane %v3359_v7, 1 }
  0xba   : > { %3833 = vmatprep.mubr.bf16.mxu0 %v3278_v47  ;;  %v12410_v47 = vld [vmem:[%s17097_s1 + $0x8f0] ss:$8 sps:$4 sm:$0xff]  }
  0xbb   : > { %1561 = vmatpush1.bf16.msra.mxu1 %v12381_v40  ;;  %v3328_v40 = vrot.slane %v3326_v11, 2 }
  0xbc   : > { %3824 = vmatpush1.bf16.msra.mxu0 %v12384_v62  ;;  %1562 = vmatprep.subr.bf16.mxu1 %v12390_v14  ;;  %v3252_v62 = vor.u32 %v3251_v45, %v3248_v33  ;;  %v3260_v14 = vor.u32 %v3259_v59, %v3256_v28  ;;  %v12424_v33 = vld [vmem:[%s17097_s1 + $0x914] ss:$8 sps:$4 sm:$0xff]   ;;  %v12419_v45 = vld [vmem:[%s17097_s1 + $0x110] ss:$8 sps:$4 sm:$0xff]   ;;  %v3350_v59 = vshrl.u32 %v13610_v10, 16 }
  0xbd   : > { %3825 = vmatprep.subr.bf16.mxu0 %v12393_v58  ;;  %v3314_v58 = vshrl.u32 %v13566_v42, 16  ;;  %v3329_v61 = vor.u32 %v3328_v40, %v3325_v15  ;;  %v12428_v15 = vld [vmem:[%s17097_s1 + $0x920] ss:$8 sps:$4 sm:$0xff]  }
  0xbe   : > { %v3261_v25 = vsel %vm3244_vm2, %v3252_v62, %v3260_v14 }
  0xbf   : > { %1563 = vmatpush1.bf16.msra.mxu1 %v12388_v12  ;;  %v3317_v12 = vshll.u32 %v13566_v42, 16  ;;  %v3316_v20 = vrot.slane %v3314_v58, 1  ;;  %v3352_v58 = vrot.slane %v3350_v59, 1 }
  0xc0   : > { %3826 = vmatpush1.bf16.msra.mxu0 %v12391_v27  ;;  %1564 = vmatprep.subr.bf16.mxu1 %v12397_v24  ;;  %v12415_v27 = vld [vmem:[%s17097_s1 + $0x104] ss:$8 sps:$4 sm:$0xff]  }
  0xc1   : > { %3827 = vmatprep.subr.bf16.mxu0 %v12400_v53  ;;  %v12418_v24 = vld [vmem:[%s17097_s1 + $0x904] ss:$8 sps:$4 sm:$0xff]   ;;  %v12413_v53 = vld [vmem:[%s17097_s1 + $0x100] ss:$8 sps:$4 sm:$0xff]  }
  0xc3   : > { %1565 = vmatpush1.bf16.msra.mxu1 %v12395_v43  ;;  %v3362_v43 = vshll.u32 %v13605_v8, 16 }
  0xc4   : > { %3828 = vmatpush1.bf16.msra.mxu0 %v12398_v48  ;;  %1566 = vmatprep.subr.bf16.mxu1 %v12403_v19  ;;  %v12416_v48 = vld [vmem:[%s17097_s1 + $0x900] ss:$8 sps:$4 sm:$0xff]   ;;  %v3319_v19 = vrot.slane %v3317_v12, 2 }
  0xc5   : > { %3829 = vmatprep.subr.bf16.mxu0 %v12406_v30  ;;  %v12421_v30 = vld [vmem:[%s17097_s1 + $0x114] ss:$8 sps:$4 sm:$0xff]   ;;  %v3364_v11 = vrot.slane %v3362_v43, 2  ;;  %v12431_v43 = vld [vmem:[%s17097_s1 + $0x130] ss:$8 sps:$4 sm:$0xff]  }
  0xc6   : > { %v3320_v28 = vor.u32 %v3319_v19, %v3316_v20  ;;  %v13212_v20 = vld [vmem:[%s13438_s17 + $0xb0] sm:$0xff] }
  0xc7   : > { %1567 = vmatpush1.bf16.msra.mxu1 %v12401_v31  ;;  %v3330_v31 = vsel %vm3244_vm2, %v14132_v17, %v3329_v61  ;;  %v12427_v17 = vld [vmem:[%s17097_s1 + $0x124] ss:$8 sps:$4 sm:$0xff]   ;;  %v3365_v40 = vor.u32 %v3364_v11, %v3361_v50 }
  0xc8   : > { %3830 = vmatpush1.bf16.msra.mxu0 %v12404_v49  ;;  %1568 = vmatprep.subr.bf16.mxu1 %v12409_v51  ;;  %v12422_v49 = vld [vmem:[%s17097_s1 + $0x910] ss:$8 sps:$4 sm:$0xff]   ;;  %v12430_v51 = vld [vmem:[%s17097_s1 + $0x924] ss:$8 sps:$4 sm:$0xff]   ;;  %v3321_v62 = vsel %vm3244_vm2, %v3260_v14, %v3320_v28 }
  0xc9   : > { %3831 = vmatprep.subr.bf16.mxu0 %v12412_v16  ;;  %v12425_v16 = vld [vmem:[%s17097_s1 + $0x120] ss:$8 sps:$4 sm:$0xff]   ;;  %v3366_v14 = vsel %vm3244_vm2, %v3329_v61, %v3365_v40  ;;  %v12439_v61 = vld [vmem:[%s17097_s1 + $0x144] ss:$8 sps:$4 sm:$0xff]  }
  0xcb   : > { %1569 = vmatpush1.bf16.msra.mxu1 %v12407_v36  ;;  %v3395_v36 = vshrl.u32 %v13645_v34, 16 }
  0xcc   : > { %3832 = vmatpush1.bf16.msra.mxu0 %v12410_v47  ;;  %1629 = vmatprep.subr.bf16.mxu1 %v12415_v27  ;;  %v3398_v47 = vshll.u32 %v13645_v34, 16  ;;  %v3167_v27 = vld [vmem:[%s13438_s17 + $0xc0] sm:$0x33] }
  0xcd   : > { %3892 = vmatprep.subr.bf16.mxu0 %v12418_v24  ;;  %v12433_v24 = vld [vmem:[%s17097_s1 + $0x134] ss:$8 sps:$4 sm:$0xff]   ;;  %v3397_v7 = vrot.slane %v3395_v36, 1  ;;  %v14267_v19 = vcombine.high %v13212_v20, %v3167_v27  ;;  %v14289_v36 = vcombine.low %v13212_v20, %v3167_v27  ;;  %v12446_v27 = vld [vmem:[%s17097_s1 + $0x950] ss:$8 sps:$4 sm:$0xff]  }
  0xce   : > { %1571 = vmatmul.mubr.bf16.vlgmr.msra.gmra.mrb[0].mxu1 %v13487_v4  ;;  %v3353_v4 = vshll.u32 %v13610_v10, 16  ;;  %v12457_v20 = vld [vmem:[%s17097_s1 + $0x174] ss:$8 sps:$4 sm:$0xff]  }
  0xcf   : > { %3834 = vmatmul.mubr.bf16.vlgmr.msra.gmra.mrb[0].mxu0 %v3261_v25  ;;  %1630 = vmatpush1.bf16.msra.mxu1 %v12413_v53  ;;  %v12436_v53 = vld [vmem:[%s17097_s1 + $0x934] ss:$8 sps:$4 sm:$0xff]   ;;  %v3386_v25 = vshrl.u32 %v13657_v46, 16  ;;  %v3434_v59 = vshll.u32 %v14267_v19, 16 }
  0xd0   : > { %3893 = vmatpush1.bf16.msra.mxu0 %v12416_v48  ;;  %1631 = vmatprep.subr.bf16.mxu1 %v12421_v30  ;;  %v3355_v12 = vrot.slane %v3353_v4, 2  ;;  %v3400_v48 = vrot.slane %v3398_v47, 2  ;;  %v12434_v30 = vld [vmem:[%s17097_s1 + $0x930] ss:$8 sps:$4 sm:$0xff]   ;;  %v12437_v4 = vld [vmem:[%s17097_s1 + $0x140] ss:$8 sps:$4 sm:$0xff]  }
  0xd1   : > { %3894 = vmatprep.subr.bf16.mxu0 %v12424_v33  ;;  %3843 = vmatprep.mubr.bf16.mxu0 %v3330_v31  ;;  %v12442_v31 = vld [vmem:[%s17097_s1 + $0x944] ss:$8 sps:$4 sm:$0xff]   ;;  %v3388_v11 = vrot.slane %v3386_v25, 1  ;;  %v12448_v47 = vld [vmem:[%s17097_s1 + $0x954] ss:$8 sps:$4 sm:$0xff]  }
  0xd2   : > { %1580 = vmatprep.mubr.bf16.mxu1 %v13461_v54  ;;  %v3356_v33 = vor.u32 %v3355_v12, %v3352_v58  ;;  %v3401_v50 = vor.u32 %v3400_v48, %v3397_v7  ;;  %v3436_v12 = vrot.slane %v3434_v59, 2  ;;  %v3425_v7 = vshll.u32 %v14289_v36, 16  ;;  %v12452_v48 = vld [vmem:[%s17097_s1 + $0x960] ss:$8 sps:$4 sm:$0xff]   ;;  %v12463_v59 = vld [vmem:[%s17097_s1 + $0x184] ss:$8 sps:$4 sm:$0xff]  }
  0xd3   : > { %1632 = vmatpush1.bf16.msra.mxu1 %v12419_v45  ;;  %v3389_v45 = vshll.u32 %v13657_v46, 16 }
  0xd4   : > { %3895 = vmatpush1.bf16.msra.mxu0 %v12422_v49  ;;  %1633 = vmatprep.subr.bf16.mxu1 %v12427_v17  ;;  %v3431_v49 = vshrl.u32 %v14267_v19, 16  ;;  %v12440_v17 = vld [vmem:[%s17097_s1 + $0x940] ss:$8 sps:$4 sm:$0xff]  }
  0xd5   : > { %3896 = vmatprep.subr.bf16.mxu0 %v12430_v51  ;;  %v3357_v51 = vsel %vm3244_vm2, %v3320_v28, %v3356_v33  ;;  %v3402_v28 = vsel %vm3244_vm2, %v3365_v40, %v3401_v50  ;;  %v12454_v40 = vld [vmem:[%s17097_s1 + $0x964] ss:$8 sps:$4 sm:$0xff]  }
  0xd6   : > { %1581 = vmatmul.mubr.bf16.gmra.mrb[4].mxu1 %v13507_v13  ;;  %v3433_v58 = vrot.slane %v3431_v49, 1  ;;  %v12458_v49 = vld [vmem:[%s17097_s1 + $0x970] ss:$8 sps:$4 sm:$0xff]  }
  0xd7   : > { %3844 = vmatmul.mubr.bf16.gmra.mrb[4].mxu0 %v3321_v62  ;;  %1634 = vmatpush1.bf16.msra.mxu1 %v12425_v16  ;;  %v3391_v16 = vrot.slane %v3389_v45, 2  ;;  %v12443_v62 = vld [vmem:[%s17097_s1 + $0x150] ss:$8 sps:$4 sm:$0xff]  }
  0xd8   : > { %3897 = vmatpush1.bf16.msra.mxu0 %v12428_v15  ;;  %1635 = vmatprep.subr.bf16.mxu1 %v12433_v24  ;;  %v12445_v15 = vld [vmem:[%s17097_s1 + $0x154] ss:$8 sps:$4 sm:$0xff]   ;;  %v3437_v25 = vor.u32 %v3436_v12, %v3433_v58  ;;  %v13213_v12 = vld [vmem:[%s13438_s17 + $0xa0] sm:$0xff] }
  0xd9   : > { %3898 = vmatprep.subr.bf16.mxu0 %v12436_v53  ;;  %3853 = vmatprep.mubr.bf16.mxu0 %v3366_v14  ;;  %v3392_v24 = vor.u32 %v3391_v16, %v3388_v11  ;;  %v3422_v53 = vshrl.u32 %v14289_v36, 16  ;;  %v12449_v14 = vld [vmem:[%s17097_s1 + $0x160] ss:$8 sps:$4 sm:$0xff]   ;;  %v12455_v11 = vld [vmem:[%s17097_s1 + $0x170] ss:$8 sps:$4 sm:$0xff]   ;;  %v3305_v16 = vshrl.u32 %v13789_v1, 16 }
  0xda   : > { %1590 = vmatprep.mubr.bf16.mxu1 %v13553_v37  ;;  %v12472_v58 = vld [vmem:[%s17097_s1 + $0x994] ss:$8 sps:$4 sm:$0xff]  }
  0xdb   : > { %1636 = vmatpush1.bf16.msra.mxu1 %v12431_v43  ;;  %v12451_v43 = vld [vmem:[%s17097_s1 + $0x164] ss:$8 sps:$4 sm:$0xff]   ;;  %v3424_v45 = vrot.slane %v3422_v53, 1 }
  0xdc   : > { %3899 = vmatpush1.bf16.msra.mxu0 %v12434_v30  ;;  %1637 = vmatprep.subr.bf16.mxu1 %v12439_v61  ;;  %v3393_v30 = vsel %vm3244_vm2, %v3356_v33, %v3392_v24  ;;  %v3427_v61 = vrot.slane %v3425_v7, 2  ;;  %v3438_v33 = vsel %vm3244_vm2, %v3401_v50, %v3437_v25  ;;  %v3300_v50 = vshll.u32 %v13785_v18, 16  ;;  %v12467_v7 = vld [vmem:[%s17097_s1 + $0x190] ss:$8 sps:$4 sm:$0xff]  }
  0xdd   : > { %3900 = vmatprep.subr.bf16.mxu0 %v12442_v31  ;;  %v12460_v31 = vld [vmem:[%s17097_s1 + $0x974] ss:$8 sps:$4 sm:$0xff]  }
  0xde   : > { %1591 = vmatmul.mubr.bf16.gmra.mrb[8].mxu1 %v13556_v38 }
  0xdf   : > { %3854 = vmatmul.mubr.bf16.gmra.mrb[8].mxu0 %v3357_v51  ;;  %1638 = vmatpush1.bf16.msra.mxu1 %v12437_v4  ;;  %v3428_v4 = vor.u32 %v3427_v61, %v3424_v45  ;;  %v3297_v51 = vshrl.u32 %v13785_v18, 16 }
  0xe0   : > { %3901 = vmatpush1.bf16.msra.mxu0 %v12440_v17  ;;  %1639 = vmatprep.subr.bf16.mxu1 %v12445_v15  ;;  %v12466_v17 = vld [vmem:[%s17097_s1 + $0x984] ss:$8 sps:$4 sm:$0xff]   ;;  %v12461_v15 = vld [vmem:[%s17097_s1 + $0x180] ss:$8 sps:$4 sm:$0xff]  }
  0xe1   : > { %3902 = vmatprep.subr.bf16.mxu0 %v12448_v47  ;;  %3863 = vmatprep.mubr.bf16.mxu0 %v3402_v28  ;;  %v12464_v47 = vld [vmem:[%s17097_s1 + $0x980] ss:$8 sps:$4 sm:$0xff]   ;;  %v12469_v28 = vld [vmem:[%s17097_s1 + $0x194] ss:$8 sps:$4 sm:$0xff]   ;;  %v3429_v18 = vsel %vm3244_vm2, %v3392_v24, %v3428_v4  ;;  %v3299_v53 = vrot.slane %v3297_v51, 1 }
  0xe2   : > { %1600 = vmatprep.mubr.bf16.mxu1 %v13594_v2  ;;  %v12470_v24 = vld [vmem:[%s17097_s1 + $0x990] ss:$8 sps:$4 sm:$0xff]   ;;  %v12489_v51 = vld [vmem:[%s17097_s1 + $0x1c4] ss:$8 sps:$4 sm:$0xff]  }
  0xe3   : > { %1640 = vmatpush1.bf16.msra.mxu1 %v12443_v62  ;;  %v3308_v62 = vshll.u32 %v13789_v1, 16 }
  0xe4   : > { %3903 = vmatpush1.bf16.msra.mxu0 %v12446_v27  ;;  %1641 = vmatprep.subr.bf16.mxu1 %v12451_v43  ;;  %v9839_v27 = vcombine.high %v13213_v12, %v13213_v12  ;;  %v3302_v43 = vrot.slane %v3300_v50, 2  ;;  %v12487_v50 = vld [vmem:[%s17097_s1 + $0x1c0] ss:$8 sps:$4 sm:$0xff]  }
  0xe5   : > { %3904 = vmatprep.subr.bf16.mxu0 %v12454_v40  ;;  %v3307_v40 = vrot.slane %v3305_v16, 1  ;;  %v12490_v16 = vld [vmem:[%s17097_s1 + $0x9c0] ss:$8 sps:$4 sm:$0xff]  }
  0xe6   : > { %1601 = vmatmul.mubr.bf16.gmra.mrb[12].mxu1 %v13597_v5  ;;  %v3303_v45 = vor.u32 %v3302_v43, %v3299_v53  ;;  %v12500_v43 = vld [vmem:[%s17097_s1 + $0x1e0] ss:$8 sps:$4 sm:$0xff]  }
  0xe7   : > { %3864 = vmatmul.mubr.bf16.gmra.mrb[12].mxu0 %v3393_v30  ;;  %1642 = vmatpush1.bf16.msra.mxu1 %v12449_v14  ;;  %v3310_v14 = vrot.slane %v3308_v62, 2  ;;  %v9838_v30 = vcombine.low %v13213_v12, %v13213_v12  ;;  %v3283_v62 = vshll.u32 %v13881_v22, 16  ;;  %v12502_v12 = vld [vmem:[%s17097_s1 + $0x1e4] ss:$8 sps:$4 sm:$0xff]  }
  0xe8   : > { %3905 = vmatpush1.bf16.msra.mxu0 %v12452_v48  ;;  %1643 = vmatprep.subr.bf16.mxu1 %v12457_v20  ;;  %v12475_v48 = vld [vmem:[%s17097_s1 + $0x1a4] ss:$8 sps:$4 sm:$0xff]  }
  0xe9   : > { %3906 = vmatprep.subr.bf16.mxu0 %v12460_v31  ;;  %3873 = vmatprep.mubr.bf16.mxu0 %v3438_v33  ;;  %v12478_v20 = vld [vmem:[%s17097_s1 + $0x9a4] ss:$8 sps:$4 sm:$0xff]   ;;  %v14373_v61 = vor.u32 %v3310_v14, %v3307_v40  ;;  %v12473_v31 = vld [vmem:[%s17097_s1 + $0x1a0] ss:$8 sps:$4 sm:$0xff]   ;;  %v12479_v33 = vld [vmem:[%s17097_s1 + $0x1b0] ss:$8 sps:$4 sm:$0xff]  }
  0xea   : > { %1610 = vmatprep.mubr.bf16.mxu1 %v13635_v29  ;;  %v3341_v14 = vshrl.u32 %v13903_v35, 16 }
  0xeb   : > { %1644 = vmatpush1.bf16.msra.mxu1 %v12455_v11  ;;  %v12476_v11 = vld [vmem:[%s17097_s1 + $0x9a0] ss:$8 sps:$4 sm:$0xff]  }
  0xec   : > { %3907 = vmatpush1.bf16.msra.mxu0 %v12458_v49  ;;  %1645 = vmatprep.subr.bf16.mxu1 %v12463_v59  ;;  %v12481_v49 = vld [vmem:[%s17097_s1 + $0x1b4] ss:$8 sps:$4 sm:$0xff]   ;;  %v3312_v59 = vsel %vm3244_vm2, %v3303_v45, %v14373_v61 }
  0xed   : > { %3908 = vmatprep.subr.bf16.mxu0 %v12466_v17  ;;  %v12482_v17 = vld [vmem:[%s17097_s1 + $0x9b0] ss:$8 sps:$4 sm:$0xff]   ;;  %v12512_v45 = vld [vmem:[%s17097_s1 + $0x9f4] ss:$8 sps:$4 sm:$0xff]  }
  0xee   : > { %1611 = vmatmul.mubr.bf16.gmra.mrb[16].mxu1 %v13652_v44 }
  0xef   : > { %3874 = vmatmul.mubr.bf16.gmra.mrb[16].mxu0 %v3429_v18  ;;  %1646 = vmatpush1.bf16.msra.mxu1 %v12461_v15  ;;  %v12495_v15 = vld [vmem:[%s17097_s1 + $0x1d4] ss:$8 sps:$4 sm:$0xff]   ;;  %v3288_v18 = vshrl.u32 %v13888_v26, 16 }
  0xf0   : > { %3909 = vmatpush1.bf16.msra.mxu0 %v12464_v47  ;;  %1647 = vmatprep.subr.bf16.mxu1 %v12469_v28  ;;  %v3280_v47 = vshrl.u32 %v13881_v22, 16  ;;  %v12493_v28 = vld [vmem:[%s17097_s1 + $0x1d0] ss:$8 sps:$4 sm:$0xff]   ;;  %v12505_v22 = vld [vmem:[%s17097_s1 + $0x9e4] ss:$8 sps:$4 sm:$0xff]  }
  0xf1   : > { %3910 = vmatprep.subr.bf16.mxu0 %v12472_v58  ;;  %3883 = vmatprep.mubr.bf16.mxu0 %v3437_v25  ;;  %v12484_v25 = vld [vmem:[%s17097_s1 + $0x9b4] ss:$8 sps:$4 sm:$0xff]   ;;  %v12496_v58 = vld [vmem:[%s17097_s1 + $0x9d0] ss:$8 sps:$4 sm:$0xff]   ;;  %v3290_v40 = vrot.slane %v3288_v18, 1 }
  0xf2   : > { %1620 = vmatprep.mubr.bf16.mxu1 %v9839_v27  ;;  %v3291_v27 = vshll.u32 %v13888_v26, 16  ;;  %v3282_v53 = vrot.slane %v3280_v47, 1  ;;  %v12516_v18 = vld [vmem:[%s17097_s1 + $0xa00] ss:$8 sps:$4 sm:$0xff]  }
  0xf3   : > { %1648 = vmatpush1.bf16.msra.mxu1 %v12467_v7  ;;  %v3285_v7 = vrot.slane %v3283_v62, 2 }
  0xf4   : > { %3911 = vmatpush1.bf16.msra.mxu0 %v12470_v24  ;;  %1649 = vmatprep.subr.bf16.mxu1 %v12475_v48  ;;  %v3344_v24 = vshll.u32 %v13903_v35, 16  ;;  %v12503_v48 = vld [vmem:[%s17097_s1 + $0x9e0] ss:$8 sps:$4 sm:$0xff]  }
  0xf5   : > { %3912 = vmatprep.subr.bf16.mxu0 %v12478_v20  ;;  %v12509_v20 = vld [vmem:[%s17097_s1 + $0x1f4] ss:$8 sps:$4 sm:$0xff]  }
  0xf6   : > { %1621 = vmatmul.mubr.bf16.gmra.mrb[28].mxu1 %v9838_v30  ;;  %v3293_v30 = vrot.slane %v3291_v27, 2  ;;  %v12524_v27 = vld [vmem:[%s17097_s1 + $0xa14] ss:$8 sps:$4 sm:$0xff]  }
  0xf7   : > { %3884 = vmatmul.mubr.bf16.gmra.mrb[28].mxu0 %v3428_v4  ;;  %1650 = vmatpush1.bf16.msra.mxu1 %v12473_v31  ;;  %v12492_v4 = vld [vmem:[%s17097_s1 + $0x9c4] ss:$8 sps:$4 sm:$0xff]   ;;  %v12507_v31 = vld [vmem:[%s17097_s1 + $0x1f0] ss:$8 sps:$4 sm:$0xff]  }
  0xf8   : > { %3913 = vmatpush1.bf16.msra.mxu0 %v12476_v11  ;;  %1651 = vmatprep.subr.bf16.mxu1 %v12481_v49  ;;  %v3343_v11 = vrot.slane %v3341_v14, 1  ;;  %v3346_v49 = vrot.slane %v3344_v24, 2  ;;  %v12522_v14 = vld [vmem:[%s17097_s1 + $0xa10] ss:$8 sps:$4 sm:$0xff]   ;;  %v12527_v24 = vld [vmem:[%s17097_s1 + $0x424] ss:$8 sps:$4 sm:$0xff]  }
  0xf9   : > { %3914 = vmatprep.subr.bf16.mxu0 %v12484_v25  ;;  %3924 = vmatprep.mubr.bf16.mxu0 %v3312_v59  ;;  %v3332_v25 = vshrl.u32 %v13920_v57, 16  ;;  %v12515_v59 = vld [vmem:[%s17097_s1 + $0x404] ss:$8 sps:$4 sm:$0xff]  }
  0xfa   : > { %1661 = vmatprep.mubr.bf16.mxu1 %v13756_v60  ;;  %v12498_v60 = vld [vmem:[%s17097_s1 + $0x9d4] ss:$8 sps:$4 sm:$0xff]   ;;  %v3347_v47 = vor.u32 %v3346_v49, %v3343_v11  ;;  %v12528_v11 = vld [vmem:[%s17097_s1 + $0xa20] ss:$8 sps:$4 sm:$0xff]   ;;  %v3416_v49 = vshll.u32 %v14001_v52, 16 }
  0xfb   : > { %1652 = vmatpush1.bf16.msra.mxu1 %v12479_v33  ;;  %v12510_v33 = vld [vmem:[%s17097_s1 + $0x9f0] ss:$8 sps:$4 sm:$0xff]   ;;  %v3334_v62 = vrot.slane %v3332_v25, 1 }
  0xfc   : > { %3915 = vmatpush1.bf16.msra.mxu0 %v12482_v17  ;;  %1653 = vmatprep.subr.bf16.mxu1 %v12489_v51  ;;  %v3286_v17 = vor.u32 %v3285_v7, %v3282_v53  ;;  %v3294_v51 = vor.u32 %v3293_v30, %v3290_v40  ;;  %v3368_v7 = vshrl.u32 %v13986_v39, 16  ;;  %v3348_v40 = vsel %vm3244_vm2, %v14373_v61, %v3347_v47  ;;  %v12530_v61 = vld [vmem:[%s17097_s1 + $0xa24] ss:$8 sps:$4 sm:$0xff]  }
  0xfd   : > { %3916 = vmatprep.subr.bf16.mxu0 %v12492_v4  ;;  %v3335_v4 = vshll.u32 %v13920_v57, 16 }
  0xfe   : > { %v3370_v30 = vrot.slane %v3368_v7, 1 }
  0xff   : > { %1654 = vmatpush1.bf16.msra.mxu1 %v12487_v50  ;;  %v12518_v50 = vld [vmem:[%s17097_s1 + $0xa04] ss:$8 sps:$4 sm:$0xff]  }
 0x100   : > { %3917 = vmatpush1.bf16.msra.mxu0 %v12490_v16  ;;  %1655 = vmatprep.subr.bf16.mxu1 %v12495_v15  ;;  %v3377_v16 = vshrl.u32 %v13952_v55, 16  ;;  %v3380_v15 = vshll.u32 %v13952_v55, 16 }
 0x101   : > { %3918 = vmatprep.subr.bf16.mxu0 %v12498_v60  ;;  %v12513_v60 = vld [vmem:[%s17097_s1 + $0x400] ss:$8 sps:$4 sm:$0xff]  }
 0x102   : > { %v3382_v53 = vrot.slane %v3380_v15, 2  ;;  %v3418_v15 = vrot.slane %v3416_v49, 2 }
 0x103   : > { %1656 = vmatpush1.bf16.msra.mxu1 %v12493_v28  ;;  %v3295_v28 = vsel %vm3244_vm2, %v3286_v17, %v3294_v51  ;;  %v3168_v17 = vld [vmem:[%s13438_s17 + $0xc8] sm:$0x33] }
 0x104   : > { %3919 = vmatpush1.bf16.msra.mxu0 %v12496_v58  ;;  %1657 = vmatprep.subr.bf16.mxu1 %v12502_v12  ;;  %v12521_v58 = vld [vmem:[%s17097_s1 + $0x414] ss:$8 sps:$4 sm:$0xff]   ;;  %v3337_v12 = vrot.slane %v3335_v4, 2 }
 0x105   : > { %3920 = vmatprep.subr.bf16.mxu0 %v12505_v22  ;;  %v3379_v22 = vrot.slane %v3377_v16, 1  ;;  %v12536_v4 = vld [vmem:[%s17097_s1 + $0xa34] ss:$8 sps:$4 sm:$0xff]   ;;  %v12531_v16 = vld [vmem:[%s17097_s1 + $0x430] ss:$8 sps:$4 sm:$0xff]  }
 0x107   : > { %1658 = vmatpush1.bf16.msra.mxu1 %v12500_v43  ;;  %v12519_v43 = vld [vmem:[%s17097_s1 + $0x410] ss:$8 sps:$4 sm:$0xff]  }
 0x108   : > { %3921 = vmatpush1.bf16.msra.mxu0 %v12503_v48  ;;  %1659 = vmatprep.subr.bf16.mxu1 %v12509_v20  ;;  %v3338_v48 = vor.u32 %v3337_v12, %v3334_v62  ;;  %v3383_v20 = vor.u32 %v3382_v53, %v3379_v22  ;;  %v17136_v62 = vld [vmem:[#allocation5_spill] sm:$0xff]  ;;  %v17137_v53 = vld [vmem:[#allocation6_spill] sm:$0xff] }
 0x109   : > { %3922 = vmatprep.subr.bf16.mxu0 %v12512_v45  ;;  %v3413_v45 = vshrl.u32 %v14001_v52, 16  ;;  %v12542_v22 = vld [vmem:[%s17097_s1 + $0xa44] ss:$8 sps:$4 sm:$0xff]  }
 0x10a   : > { %v3339_v25 = vsel %vm3244_vm2, %v3294_v51, %v3338_v48 }
 0x10b   : > { %1660 = vmatpush1.bf16.msra.mxu1 %v12507_v31  ;;  %v12525_v31 = vld [vmem:[%s17097_s1 + $0x420] ss:$8 sps:$4 sm:$0xff]   ;;  %v3415_v51 = vrot.slane %v3413_v45, 1 }
 0x10c   : > { %3923 = vmatpush1.bf16.msra.mxu0 %v12510_v33  ;;  %2186 = vmatprep.subr.bf16.mxu1 %v12515_v59  ;;  %v12533_v33 = vld [vmem:[%s17097_s1 + $0x434] ss:$8 sps:$4 sm:$0xff]  }
 0x10d   : > { %4471 = vmatprep.subr.bf16.mxu0 %v12518_v50  ;;  %v3384_v50 = vsel %vm3244_vm2, %v3347_v47, %v3383_v20  ;;  %v12534_v47 = vld [vmem:[%s17097_s1 + $0xa30] ss:$8 sps:$4 sm:$0xff]   ;;  %v3419_v7 = vor.u32 %v3418_v15, %v3415_v51  ;;  %v17139_v15 = vld [vmem:[#allocation8_spill] sm:$0xff] }
 0x10e   : > { %1662 = vmatmul.mubr.bf16.vlgmr.msra.gmra.mrb[0].mxu1 %v13850_v6  ;;  %v3371_v6 = vshll.u32 %v13986_v39, 16 }
 0x10f   : > { %3925 = vmatmul.mubr.bf16.vlgmr.msra.gmra.mrb[0].mxu0 %v3295_v28  ;;  %2187 = vmatpush1.bf16.msra.mxu1 %v12513_v60  ;;  %v3404_v60 = vshrl.u32 %v14025_v32, 16  ;;  %v13214_v28 = vld [vmem:[%s13438_s17 + $0xb8] sm:$0xff]  ;;  %v3420_v49 = vsel %vm3244_vm2, %v3383_v20, %v3419_v7  ;;  %v12554_v20 = vld [vmem:[%s17097_s1 + $0xa64] ss:$8 sps:$4 sm:$0xff]  }
 0x110   : > { %4472 = vmatpush1.bf16.msra.mxu0 %v12516_v18  ;;  %2188 = vmatprep.subr.bf16.mxu1 %v12521_v58  ;;  %v3373_v59 = vrot.slane %v3371_v6, 2  ;;  %v14514_v18 = vcombine.high %v13214_v28, %v3168_v17  ;;  %v12539_v58 = vld [vmem:[%s17097_s1 + $0x444] ss:$8 sps:$4 sm:$0xff]   ;;  %v14536_v45 = vcombine.low %v13214_v28, %v3168_v17  ;;  %v12546_v17 = vld [vmem:[%s17097_s1 + $0xa50] ss:$8 sps:$4 sm:$0xff]  }
 0x111   : > { %4473 = vmatprep.subr.bf16.mxu0 %v12524_v27  ;;  %3934 = vmatprep.mubr.bf16.mxu0 %v3348_v40  ;;  %v3407_v27 = vshll.u32 %v14025_v32, 16  ;;  %v12552_v28 = vld [vmem:[%s17097_s1 + $0xa60] ss:$8 sps:$4 sm:$0xff]  }
 0x112   : > { %1671 = vmatprep.mubr.bf16.mxu1 %v13763_v63  ;;  %v3374_v12 = vor.u32 %v3373_v59, %v3370_v30  ;;  %v3449_v40 = vshrl.u32 %v14514_v18, 16  ;;  %v17138_v59 = vld [vmem:[#allocation7_spill] sm:$0xff]  ;;  %v3443_v51 = vshll.u32 %v14536_v45, 16 }
 0x113   : > { %2189 = vmatpush1.bf16.msra.mxu1 %v12519_v43  ;;  %v3406_v43 = vrot.slane %v3404_v60, 1  ;;  %v3409_v30 = vrot.slane %v3407_v27, 2  ;;  %v12549_v60 = vld [vmem:[%s17097_s1 + $0x460] ss:$8 sps:$4 sm:$0xff]   ;;  %v12557_v27 = vld [vmem:[%s17097_s1 + $0x474] ss:$8 sps:$4 sm:$0xff]  }
 0x114   : > { %4474 = vmatpush1.bf16.msra.mxu0 %v12522_v14  ;;  %2190 = vmatprep.subr.bf16.mxu1 %v12527_v24  ;;  %v3452_v14 = vshll.u32 %v14514_v18, 16  ;;  %v12537_v24 = vld [vmem:[%s17097_s1 + $0x440] ss:$8 sps:$4 sm:$0xff]   ;;  %v3375_v6 = vsel %vm3244_vm2, %v3338_v48, %v3374_v12  ;;  %v12543_v48 = vld [vmem:[%s17097_s1 + $0x450] ss:$8 sps:$4 sm:$0xff]  }
 0x115   : > { %4475 = vmatprep.subr.bf16.mxu0 %v12530_v61  ;;  %v12540_v61 = vld [vmem:[%s17097_s1 + $0xa40] ss:$8 sps:$4 sm:$0xff]  }
 0x116   : > { %1672 = vmatmul.mubr.bf16.gmra.mrb[4].mxu1 %v17136_v62 }
 0x117   : > { %3935 = vmatmul.mubr.bf16.gmra.mrb[4].mxu0 %v3339_v25  ;;  %2191 = vmatpush1.bf16.msra.mxu1 %v12525_v31  ;;  %v12545_v31 = vld [vmem:[%s17097_s1 + $0x454] ss:$8 sps:$4 sm:$0xff]   ;;  %v3451_v25 = vrot.slane %v3449_v40, 1 }
 0x118   : > { %4476 = vmatpush1.bf16.msra.mxu0 %v12528_v11  ;;  %2192 = vmatprep.subr.bf16.mxu1 %v12533_v33  ;;  %v12548_v11 = vld [vmem:[%s17097_s1 + $0xa54] ss:$8 sps:$4 sm:$0xff]   ;;  %v3454_v33 = vrot.slane %v3452_v14, 2  ;;  %v12555_v14 = vld [vmem:[%s17097_s1 + $0x470] ss:$8 sps:$4 sm:$0xff]  }
 0x119   : > { %4477 = vmatprep.subr.bf16.mxu0 %v12536_v4  ;;  %3944 = vmatprep.mubr.bf16.mxu0 %v3384_v50  ;;  %v12551_v4 = vld [vmem:[%s17097_s1 + $0x464] ss:$8 sps:$4 sm:$0xff]   ;;  %v3410_v50 = vor.u32 %v3409_v30, %v3406_v43  ;;  %v3445_v43 = vrot.slane %v3443_v51, 2  ;;  %v12560_v40 = vld [vmem:[%s17097_s1 + $0xa74] ss:$8 sps:$4 sm:$0xff]  }
 0x11a   : > { %1681 = vmatprep.mubr.bf16.mxu1 %v17137_v53  ;;  %v13215_v51 = vld [vmem:[%s13438_s17 + $0xa8] sm:$0xff] }
 0x11b   : > { %2193 = vmatpush1.bf16.msra.mxu1 %v12531_v16  ;;  %v3440_v16 = vshrl.u32 %v14536_v45, 16 }
 0x11c   : > { %4478 = vmatpush1.bf16.msra.mxu0 %v12534_v47  ;;  %2194 = vmatprep.subr.bf16.mxu1 %v12539_v58  ;;  %v3455_v47 = vor.u32 %v3454_v33, %v3451_v25  ;;  %v3411_v58 = vsel %vm3244_vm2, %v3374_v12, %v3410_v50  ;;  %v12558_v12 = vld [vmem:[%s17097_s1 + $0xa70] ss:$8 sps:$4 sm:$0xff]   ;;  %v12571_v25 = vld [vmem:[%s17097_s1 + $0x494] ss:$8 sps:$4 sm:$0xff]  }
 0x11d   : > { %4479 = vmatprep.subr.bf16.mxu0 %v12542_v22  ;;  %v3442_v22 = vrot.slane %v3440_v16, 1  ;;  %v12572_v16 = vld [vmem:[%s17097_s1 + $0xa90] ss:$8 sps:$4 sm:$0xff]  }
 0x11e   : > { %1682 = vmatmul.mubr.bf16.gmra.mrb[8].mxu1 %v17138_v59 }
 0x11f   : > { %3945 = vmatmul.mubr.bf16.gmra.mrb[8].mxu0 %v3375_v6  ;;  %2195 = vmatpush1.bf16.msra.mxu1 %v12537_v24  ;;  %v3456_v24 = vsel %vm3244_vm2, %v3419_v7, %v3455_v47  ;;  %v17140_v6 = vld [vmem:[#allocation9_spill] sm:$0xff]  ;;  %v3446_v30 = vor.u32 %v3445_v43, %v3442_v22 }
 0x120   : > { %4480 = vmatpush1.bf16.msra.mxu0 %v12540_v61  ;;  %2196 = vmatprep.subr.bf16.mxu1 %v12545_v31  ;;  %v12564_v61 = vld [vmem:[%s17097_s1 + $0x484] ss:$8 sps:$4 sm:$0xff]   ;;  %v12562_v7 = vld [vmem:[%s17097_s1 + $0x480] ss:$8 sps:$4 sm:$0xff]  }
 0x121   : > { %4481 = vmatprep.subr.bf16.mxu0 %v12548_v11  ;;  %3954 = vmatprep.mubr.bf16.mxu0 %v3420_v49  ;;  %v12568_v31 = vld [vmem:[%s17097_s1 + $0xa84] ss:$8 sps:$4 sm:$0xff]   ;;  %v12566_v11 = vld [vmem:[%s17097_s1 + $0xa80] ss:$8 sps:$4 sm:$0xff]   ;;  %v14599_v49 = vld [vmem:[%s13438_s17 + $0x10] sm:$0xcc]  ;;  %v3447_v33 = vsel %vm3244_vm2, %v3410_v50, %v3446_v30 }
 0x122   : > { %1691 = vmatprep.mubr.bf16.mxu1 %v17139_v15  ;;  %v14617_v50 = vld [vmem:[%s13438_s17 + $0x10] sm:$0xff]  ;;  %v12580_v22 = vld [vmem:[%s17097_s1 + $0xaa4] ss:$8 sps:$4 sm:$0xff]   ;;  %v12575_v43 = vld [vmem:[%s17097_s1 + $0x4a0] ss:$8 sps:$4 sm:$0xff]  }
 0x123   : > { %2197 = vmatpush1.bf16.msra.mxu1 %v12543_v48  ;;  %v14596_v48 = vld [vmem:[%s13438_s17] sm:$0xee] }
 0x124   : > { %4482 = vmatpush1.bf16.msra.mxu0 %v12546_v17  ;;  %2198 = vmatprep.subr.bf16.mxu1 %v12551_v4  ;;  %v12574_v17 = vld [vmem:[%s17097_s1 + $0xa94] ss:$8 sps:$4 sm:$0xff]   ;;  %v12569_v4 = vld [vmem:[%s17097_s1 + $0x490] ss:$8 sps:$4 sm:$0xff]  }
 0x125   : > { %4483 = vmatprep.subr.bf16.mxu0 %v12554_v20  ;;  %v9841_v20 = vcombine.high %v13215_v51, %v13215_v51 }
 0x126   : > { %1692 = vmatmul.mubr.bf16.gmra.mrb[12].mxu1 %v17140_v6 }
 0x127   : > { %3955 = vmatmul.mubr.bf16.gmra.mrb[12].mxu0 %v3411_v58  ;;  %2199 = vmatpush1.bf16.msra.mxu1 %v12549_v60  ;;  %v9971_v60 = vcombine.high %v14596_v48, %v14617_v50 }
 0x128   : > { %4484 = vmatpush1.bf16.msra.mxu0 %v12552_v28  ;;  %2200 = vmatprep.subr.bf16.mxu1 %v12557_v27  ;;  %v14622_v28 = vld [vmem:[%s13438_s17 + $0x20] sm:$0xff] }
 0x129   : > { %4485 = vmatprep.subr.bf16.mxu0 %v12560_v40  ;;  %3964 = vmatprep.mubr.bf16.mxu0 %v3456_v24  ;;  %v10387_v58 = vcombine.high %v14599_v49, %v14622_v28  ;;  %v12577_v27 = vld [vmem:[%s17097_s1 + $0x4a4] ss:$8 sps:$4 sm:$0xff]   ;;  %v12578_v40 = vld [vmem:[%s17097_s1 + $0xaa0] ss:$8 sps:$4 sm:$0xff]   ;;  %v9840_v24 = vcombine.low %v13215_v51, %v13215_v51 }
 0x12a   : > { %1701 = vmatprep.mubr.bf16.mxu1 %v13981_v21  ;;  %v12590_v51 = vld [vmem:[%s17097_s1 + $0xac0] ss:$8 sps:$4 sm:$0xff]  }
 0x12b   : > { %2201 = vmatpush1.bf16.msra.mxu1 %v12555_v14  ;;  %v1802_v14 = vrot.slane %v13461_v54, 1  ;;  %v12629_v54 = vld [vmem:[%s17097_s1 + $0x520] ss:$8 sps:$4 sm:$0xff]  }
 0x12c   : > { %4486 = vmatpush1.bf16.msra.mxu0 %v12558_v12  ;;  %2202 = vmatprep.subr.bf16.mxu1 %v12564_v61  ;;  %v12583_v12 = vld [vmem:[%s17097_s1 + $0x4b4] ss:$8 sps:$4 sm:$0xff]   ;;  %v1801_v61 = vrot.slane %v9971_v60, 1 }
 0x12d   : > { %4487 = vmatprep.subr.bf16.mxu0 %v12568_v31  ;;  %v4086_v31 = vrot.slane %v10387_v58, 2  ;;  %v12598_v60 = vld [vmem:[%s17097_s1 + $0xad4] ss:$8 sps:$4 sm:$0xff]   ;;  %v12593_v58 = vld [vmem:[%s17097_s1 + $0x4d0] ss:$8 sps:$4 sm:$0xff]  }
 0x12e   : > { %1702 = vmatmul.mubr.bf16.gmra.mrb[16].mxu1 %v14011_v3 }
 0x12f   : > { %3965 = vmatmul.mubr.bf16.gmra.mrb[16].mxu0 %v3447_v33  ;;  %2203 = vmatpush1.bf16.msra.mxu1 %v12562_v7  ;;  %v12586_v7 = vld [vmem:[%s17097_s1 + $0xab4] ss:$8 sps:$4 sm:$0xff]   ;;  %v1803_v33 = vsel %vm1797_vm0, %v1801_v61, %v1802_v14 }
 0x130   : > { %4488 = vmatpush1.bf16.msra.mxu0 %v12566_v11  ;;  %2204 = vmatprep.subr.bf16.mxu1 %v12571_v25  ;;  %v12581_v11 = vld [vmem:[%s17097_s1 + $0x4b0] ss:$8 sps:$4 sm:$0xff]   ;;  %v12612_v61 = vld [vmem:[%s17097_s1 + $0xaf4] ss:$8 sps:$4 sm:$0xff]  }
 0x131   : > { %4489 = vmatprep.subr.bf16.mxu0 %v12574_v17  ;;  %3974 = vmatprep.mubr.bf16.mxu0 %v3455_v47  ;;  %v4087_v47 = vrot.slane %v13482_v0, 2  ;;  %v12584_v25 = vld [vmem:[%s17097_s1 + $0xab0] ss:$8 sps:$4 sm:$0xff]   ;;  %v1810_v0 = vrot.slane %v13556_v38, 1  ;;  %v12637_v38 = vld [vmem:[%s17097_s1 + $0x534] ss:$8 sps:$4 sm:$0xff]  }
 0x132   : > { %1711 = vmatprep.mubr.bf16.mxu1 %v9841_v20  ;;  %v12595_v20 = vld [vmem:[%s17097_s1 + $0x4d4] ss:$8 sps:$4 sm:$0xff]  }
 0x133   : > { %2205 = vmatpush1.bf16.msra.mxu1 %v12569_v4  ;;  %v4088_v17 = vsel %vm4082_vm3, %v4086_v31, %v4087_v47  ;;  %v12589_v4 = vld [vmem:[%s17097_s1 + $0x4c4] ss:$8 sps:$4 sm:$0xff]   ;;  %v9970_v31 = vcombine.low %v14596_v48, %v14617_v50  ;;  %v4084_v48 = vrot.slane %v13527_v23, 2  ;;  %v12615_v23 = vld [vmem:[%s17097_s1 + $0x500] ss:$8 sps:$4 sm:$0xff]  }
 0x134   : > { %4490 = vmatpush1.bf16.msra.mxu0 %v12572_v16  ;;  %2206 = vmatprep.subr.bf16.mxu1 %v12577_v27  ;;  %v12592_v16 = vld [vmem:[%s17097_s1 + $0xac4] ss:$8 sps:$4 sm:$0xff]   ;;  %v12596_v27 = vld [vmem:[%s17097_s1 + $0xad0] ss:$8 sps:$4 sm:$0xff]  }
 0x135   : > { %4491 = vmatprep.subr.bf16.mxu0 %v12580_v22  ;;  %v12602_v22 = vld [vmem:[%s17097_s1 + $0x4e4] ss:$8 sps:$4 sm:$0xff]  }
 0x136   : > { %1712 = vmatmul.mubr.bf16.gmra.mrb[32].mxu1 %v9840_v24  ;;  %v12609_v24 = vld [vmem:[%s17097_s1 + $0x4f4] ss:$8 sps:$4 sm:$0xff]  }
 0x137   : > { %3975 = vmatmul.mubr.bf16.gmra.mrb[32].mxu0 %v3446_v30  ;;  %2207 = vmatpush1.bf16.msra.mxu1 %v12575_v43  ;;  %v12587_v30 = vld [vmem:[%s17097_s1 + $0x4c0] ss:$8 sps:$4 sm:$0xff]   ;;  %v12605_v43 = vld [vmem:[%s17097_s1 + $0xae4] ss:$8 sps:$4 sm:$0xff]  }
 0x138   : > { %4492 = vmatpush1.bf16.msra.mxu0 %v12578_v40  ;;  %2208 = vmatprep.subr.bf16.mxu1 %v12583_v12  ;;  %v12600_v40 = vld [vmem:[%s17097_s1 + $0x4e0] ss:$8 sps:$4 sm:$0xff]  }
 0x139   : > { %4493 = vmatprep.subr.bf16.mxu0 %v12586_v7  ;;  %2218 = vmatprep.mubr.bf16.mxu1 %v1803_v33  ;;  %v12603_v12 = vld [vmem:[%s17097_s1 + $0xae0] ss:$8 sps:$4 sm:$0xff]   ;;  %v10386_v7 = vcombine.low %v14599_v49, %v14622_v28  ;;  %v12610_v33 = vld [vmem:[%s17097_s1 + $0xaf0] ss:$8 sps:$4 sm:$0xff]   ;;  %v12617_v49 = vld [vmem:[%s17097_s1 + $0x504] ss:$8 sps:$4 sm:$0xff]  }
 0x13a   : > { %4503 = vmatprep.mubr.bf16.mxu0 %v4088_v17  ;;  %v1798_v17 = vrot.slane %v9970_v31, 1  ;;  %v12634_v31 = vld [vmem:[%s17097_s1 + $0xb24] ss:$8 sps:$4 sm:$0xff]  }
 0x13b   : > { %2209 = vmatpush1.bf16.msra.mxu1 %v12581_v11  ;;  %v12607_v11 = vld [vmem:[%s17097_s1 + $0x4f0] ss:$8 sps:$4 sm:$0xff]  }
 0x13c   : > { %4494 = vmatpush1.bf16.msra.mxu0 %v12584_v25  ;;  %2210 = vmatprep.subr.bf16.mxu1 %v12589_v4  ;;  %v1799_v25 = vrot.slane %v13507_v13, 1  ;;  %v4083_v4 = vrot.slane %v10386_v7, 2  ;;  %v12622_v13 = vld [vmem:[%s17097_s1 + $0xb04] ss:$8 sps:$4 sm:$0xff]   ;;  %v12640_v7 = vld [vmem:[%s17097_s1 + $0xb34] ss:$8 sps:$4 sm:$0xff]  }
 0x13d   : > { %4495 = vmatprep.subr.bf16.mxu0 %v12592_v16  ;;  %v4097_v16 = vrot.slane %v13564_v41, 2  ;;  %v12628_v41 = vld [vmem:[%s17097_s1 + $0xb14] ss:$8 sps:$4 sm:$0xff]  }
 0x13f   : > { %2211 = vmatpush1.bf16.msra.mxu1 %v12587_v30  ;;  %v1812_v30 = vrot.slane %v13553_v37, 1  ;;  %v12625_v37 = vld [vmem:[%s17097_s1 + $0x514] ss:$8 sps:$4 sm:$0xff]  }
 0x140   : > { %4496 = vmatpush1.bf16.msra.mxu0 %v12590_v51  ;;  %2212 = vmatprep.subr.bf16.mxu1 %v12595_v20  ;;  %v12620_v51 = vld [vmem:[%s17097_s1 + $0xb00] ss:$8 sps:$4 sm:$0xff]   ;;  %v1800_v20 = vsel %vm1797_vm0, %v1798_v17, %v1799_v25 }
 0x141   : > { %4497 = vmatprep.subr.bf16.mxu0 %v12598_v60  ;;  %v4085_v60 = vsel %vm4082_vm3, %v4083_v4, %v4084_v48  ;;  %v4103_v4 = vrot.slane %v13610_v10, 2  ;;  %v12641_v10 = vld [vmem:[%s17097_s1 + $0x540] ss:$8 sps:$4 sm:$0xff]  }
 0x143   : > { %2213 = vmatpush1.bf16.msra.mxu1 %v12593_v58 }
 0x144   : > { %4498 = vmatpush1.bf16.msra.mxu0 %v12596_v27  ;;  %2214 = vmatprep.subr.bf16.mxu1 %v12602_v22  ;;  %v12623_v22 = vld [vmem:[%s17097_s1 + $0x510] ss:$8 sps:$4 sm:$0xff]  }
 0x145   : > { %4499 = vmatprep.subr.bf16.mxu0 %v12605_v43  ;;  %v12626_v43 = vld [vmem:[%s17097_s1 + $0xb10] ss:$8 sps:$4 sm:$0xff]  }
 0x147   : > { %2215 = vmatpush1.bf16.msra.mxu1 %v12600_v40  ;;  %v4098_v40 = vsel %vm4082_vm3, %v4087_v47, %v4097_v16  ;;  %v1820_v47 = vrot.slane %v13594_v2, 1  ;;  %v12635_v2 = vld [vmem:[%s17097_s1 + $0x530] ss:$8 sps:$4 sm:$0xff]  }
 0x148   : > { %4500 = vmatpush1.bf16.msra.mxu0 %v12603_v12  ;;  %2216 = vmatprep.subr.bf16.mxu1 %v12609_v24  ;;  %v4095_v12 = vrot.slane %v13566_v42, 2  ;;  %v1813_v24 = vsel %vm1797_vm0, %v1802_v14, %v1812_v30  ;;  %v12632_v42 = vld [vmem:[%s17097_s1 + $0xb20] ss:$8 sps:$4 sm:$0xff]   ;;  %v4105_v14 = vrot.slane %v13605_v8, 2  ;;  %v12638_v8 = vld [vmem:[%s17097_s1 + $0xb30] ss:$8 sps:$4 sm:$0xff]  }
 0x149   : > { %4501 = vmatprep.subr.bf16.mxu0 %v12612_v61  ;;  %v12631_v61 = vld [vmem:[%s17097_s1 + $0x524] ss:$8 sps:$4 sm:$0xff]  }
 0x14a   : > { %v14718_v50 = vpop.f32.mrb[20].mxu0  ;;  %v4106_v17 = vsel %vm4082_vm3, %v4097_v16, %v4105_v14  ;;  %v12644_v16 = vld [vmem:[%s17097_s1 + $0xb40] ss:$8 sps:$4 sm:$0xff]  }
 0x14b   : > { %v14720_v28 = vpop.f32.mrb[21].mxu0  ;;  %2217 = vmatpush1.bf16.msra.mxu1 %v12607_v11  ;;  %v4096_v11 = vsel %vm4082_vm3, %v4084_v48, %v4095_v12  ;;  %v1821_v48 = vsel %vm1797_vm0, %v1812_v30, %v1820_v47  ;;  %v4113_v30 = vrot.slane %v13645_v34, 2 }
 0x14c   : > { %4502 = vmatpush1.bf16.msra.mxu0 %v12610_v33  ;;  %v3051_v58 = vpop.f32.mrb[22].mxu0  ;;  %2277 = vmatprep.subr.bf16.mxu1 %v12617_v49  ;;  %v1811_v33 = vsel %vm1797_vm0, %v1799_v25, %v1810_v0  ;;  %v12643_v25 = vld [vmem:[%s17097_s1 + $0x544] ss:$8 sps:$4 sm:$0xff]  }
 0x14d   : > { %4562 = vmatprep.subr.bf16.mxu0 %v12622_v13  ;;  %v3052_v27 = vpop.f32.mrb[23].mxu0  ;;  %v12646_v49 = vld [vmem:[%s17097_s1 + $0xb44] ss:$8 sps:$4 sm:$0xff]   ;;  %v1818_v13 = vrot.slane %v13597_v5, 1  ;;  %v12649_v5 = vld [vmem:[%s17097_s1 + $0x554] ss:$8 sps:$4 sm:$0xff]   ;;  %v4114_v34 = vsel %vm4082_vm3, %v4105_v14, %v4113_v30 }
 0x14e   : > { %2219 = vmatmul.mubr.bf16.vlgmr.msra.gmra.mrb[0].mxu1 %v1800_v20  ;;  %v4104_v20 = vsel %vm4082_vm3, %v4095_v12, %v4103_v4  ;;  %v4111_v58 = vrot.slane %v13657_v46, 2  ;;  %v12650_v27 = vld [vmem:[%s17097_s1 + $0xb50] ss:$8 sps:$4 sm:$0xff]   ;;  %v12656_v46 = vld [vmem:[%s17097_s1 + $0xb60] ss:$8 sps:$4 sm:$0xff]   ;;  %v4119_v14 = vrot.slane %v14289_v36, 2 }
 0x14f   : > { %4504 = vmatmul.mubr.bf16.vlgmr.msra.gmra.mrb[0].mxu0 %v4085_v60  ;;  %2278 = vmatpush1.bf16.msra.mxu1 %v12615_v23  ;;  %v1828_v23 = vrot.slane %v13635_v29, 1  ;;  %v1819_v60 = vsel %vm1797_vm0, %v1810_v0, %v1818_v13  ;;  %v12647_v29 = vld [vmem:[%s17097_s1 + $0x550] ss:$8 sps:$4 sm:$0xff]   ;;  %v12670_v36 = vld [vmem:[%s17097_s1 + $0xb84] ss:$8 sps:$4 sm:$0xff]  }
 0x150   : > { %4563 = vmatpush1.bf16.msra.mxu0 %v12620_v51  ;;  %2279 = vmatprep.subr.bf16.mxu1 %v12625_v37  ;;  %v12652_v51 = vld [vmem:[%s17097_s1 + $0xb54] ss:$8 sps:$4 sm:$0xff]   ;;  %v4112_v0 = vsel %vm4082_vm3, %v4103_v4, %v4111_v58 }
 0x151   : > { %4564 = vmatprep.subr.bf16.mxu0 %v12628_v41  ;;  %4513 = vmatprep.mubr.bf16.mxu0 %v4098_v40  ;;  %v1829_v37 = vsel %vm1797_vm0, %v1820_v47, %v1828_v23  ;;  %v1826_v41 = vrot.slane %v13652_v44, 1  ;;  %v12653_v44 = vld [vmem:[%s17097_s1 + $0x560] ss:$8 sps:$4 sm:$0xff]   ;;  %v4121_v40 = vrot.slane %v14267_v19, 2  ;;  %v17141_v12 = vld [vmem:[#allocation3_spill] sm:$0xff] }
 0x152   : > { %2228 = vmatprep.mubr.bf16.mxu1 %v1813_v24  ;;  %v1836_v24 = vrot.slane %v17141_v12, 1  ;;  %v12659_v19 = vld [vmem:[%s17097_s1 + $0x570] ss:$8 sps:$4 sm:$0xff]   ;;  %v12676_v4 = vld [vmem:[%s17097_s1 + $0xb94] ss:$8 sps:$4 sm:$0xff]  }
 0x153   : > { %2280 = vmatpush1.bf16.msra.mxu1 %v12623_v22  ;;  %v12655_v22 = vld [vmem:[%s17097_s1 + $0x564] ss:$8 sps:$4 sm:$0xff]  }
 0x154   : > { %4565 = vmatpush1.bf16.msra.mxu0 %v12626_v43  ;;  %2281 = vmatprep.subr.bf16.mxu1 %v12631_v61  ;;  %v12658_v43 = vld [vmem:[%s17097_s1 + $0xb64] ss:$8 sps:$4 sm:$0xff]   ;;  %v12661_v61 = vld [vmem:[%s17097_s1 + $0x574] ss:$8 sps:$4 sm:$0xff]   ;;  %v1837_v47 = vsel %vm1797_vm0, %v1828_v23, %v1836_v24 }
 0x155   : > { %4566 = vmatprep.subr.bf16.mxu0 %v12634_v31  ;;  %v12664_v31 = vld [vmem:[%s17097_s1 + $0xb74] ss:$8 sps:$4 sm:$0xff]   ;;  %v14883_v23 = vld [vmem:[%s13438_s17 + $0x28] sm:$0xff] }
 0x156   : > { %2229 = vmatmul.mubr.bf16.gmra.mrb[4].mxu1 %v1811_v33  ;;  %v12667_v33 = vld [vmem:[%s17097_s1 + $0x584] ss:$8 sps:$4 sm:$0xff]  }
 0x157   : > { %4514 = vmatmul.mubr.bf16.gmra.mrb[4].mxu0 %v4096_v11  ;;  %2282 = vmatpush1.bf16.msra.mxu1 %v12629_v54  ;;  %v1827_v54 = vsel %vm1797_vm0, %v1818_v13, %v1826_v41  ;;  %v12662_v11 = vld [vmem:[%s17097_s1 + $0xb70] ss:$8 sps:$4 sm:$0xff]  }
 0x158   : > { %4567 = vmatpush1.bf16.msra.mxu0 %v12632_v42  ;;  %2283 = vmatprep.subr.bf16.mxu1 %v12637_v38  ;;  %v4122_v42 = vsel %vm4082_vm3, %v4113_v30, %v4121_v40  ;;  %v17142_v38 = vld [vmem:[#allocation4_spill] sm:$0xff]  ;;  %v14872_v13 = vld [vmem:[%s13438_s17 + $0x18] sm:$0xcc] }
 0x159   : > { %4568 = vmatprep.subr.bf16.mxu0 %v12640_v7  ;;  %4523 = vmatprep.mubr.bf16.mxu0 %v4106_v17  ;;  %v1834_v7 = vrot.slane %v17142_v38, 1  ;;  %v12673_v17 = vld [vmem:[%s17097_s1 + $0x594] ss:$8 sps:$4 sm:$0xff]   ;;  %v12698_v38 = vld [vmem:[%s17097_s1 + $0xbd0] ss:$8 sps:$4 sm:$0xff]  }
 0x15a   : > { %2238 = vmatprep.mubr.bf16.mxu1 %v1821_v48  ;;  %v4120_v48 = vsel %vm4082_vm3, %v4111_v58, %v4119_v14  ;;  %v1808_v58 = vrot.slane %v13763_v63, 1  ;;  %v1824_v63 = vrot.slane %v17139_v15, 1  ;;  %v12728_v15 = vld [vmem:[%s17097_s1 + $0xc34] ss:$8 sps:$4 sm:$0xff]  }
 0x15b   : > { %2284 = vmatpush1.bf16.msra.mxu1 %v12635_v2  ;;  %v12665_v2 = vld [vmem:[%s17097_s1 + $0x580] ss:$8 sps:$4 sm:$0xff]  }
 0x15c   : > { %4569 = vmatpush1.bf16.msra.mxu0 %v12638_v8  ;;  %2285 = vmatprep.subr.bf16.mxu1 %v12643_v25  ;;  %v12668_v8 = vld [vmem:[%s17097_s1 + $0xb80] ss:$8 sps:$4 sm:$0xff]   ;;  %v1835_v25 = vsel %vm1797_vm0, %v1826_v41, %v1834_v7 }
 0x15d   : > { %4570 = vmatprep.subr.bf16.mxu0 %v12646_v49  ;;  %v14869_v49 = vld [vmem:[%s13438_s17 + $0x8] sm:$0xee] }
 0x15e   : > { %2239 = vmatmul.mubr.bf16.gmra.mrb[8].mxu1 %v1819_v60  ;;  %v12682_v60 = vld [vmem:[%s17097_s1 + $0xba4] ss:$8 sps:$4 sm:$0xff]  }
 0x15f   : > { %4524 = vmatmul.mubr.bf16.gmra.mrb[8].mxu0 %v4104_v20  ;;  %2286 = vmatpush1.bf16.msra.mxu1 %v12641_v10  ;;  %v12671_v10 = vld [vmem:[%s17097_s1 + $0x590] ss:$8 sps:$4 sm:$0xff]   ;;  %v12679_v20 = vld [vmem:[%s17097_s1 + $0x5a4] ss:$8 sps:$4 sm:$0xff]  }
 0x160   : > { %4571 = vmatpush1.bf16.msra.mxu0 %v12644_v16  ;;  %2287 = vmatprep.subr.bf16.mxu1 %v12649_v5  ;;  %v14878_v16 = vld [vmem:[%s13438_s17 + $0x18] sm:$0xff]  ;;  %v10389_v5 = vcombine.high %v14872_v13, %v14883_v23 }
 0x161   : > { %4572 = vmatprep.subr.bf16.mxu0 %v12652_v51  ;;  %4533 = vmatprep.mubr.bf16.mxu0 %v4114_v34  ;;  %v9973_v30 = vcombine.high %v14869_v49, %v14878_v16  ;;  %v12674_v51 = vld [vmem:[%s17097_s1 + $0xb90] ss:$8 sps:$4 sm:$0xff]   ;;  %v12680_v34 = vld [vmem:[%s17097_s1 + $0xba0] ss:$8 sps:$4 sm:$0xff]  }
 0x162   : > { %2248 = vmatprep.mubr.bf16.mxu1 %v1829_v37  ;;  %v4092_v41 = vrot.slane %v10389_v5, 2 }
 0x163   : > { %2288 = vmatpush1.bf16.msra.mxu1 %v12647_v29  ;;  %v12677_v29 = vld [vmem:[%s17097_s1 + $0x5a0] ss:$8 sps:$4 sm:$0xff]   ;;  %v1807_v37 = vrot.slane %v9973_v30, 1 }
 0x164   : > { %4573 = vmatpush1.bf16.msra.mxu0 %v12650_v27  ;;  %2289 = vmatprep.subr.bf16.mxu1 %v12655_v22  ;;  %v4093_v27 = vrot.slane %v13789_v1, 2  ;;  %v12685_v22 = vld [vmem:[%s17097_s1 + $0x5b4] ss:$8 sps:$4 sm:$0xff]   ;;  %v12725_v1 = vld [vmem:[%s17097_s1 + $0xc24] ss:$8 sps:$4 sm:$0xff]  }
 0x165   : > { %4574 = vmatprep.subr.bf16.mxu0 %v12658_v43  ;;  %v12688_v43 = vld [vmem:[%s17097_s1 + $0xbb4] ss:$8 sps:$4 sm:$0xff]  }
 0x166   : > { %2249 = vmatmul.mubr.bf16.gmra.mrb[12].mxu1 %v1827_v54  ;;  %v4094_v12 = vsel %vm4082_vm3, %v4092_v41, %v4093_v27  ;;  %v1805_v54 = vrot.slane %v17136_v62, 1  ;;  %v1814_v41 = vrot.slane %v17138_v59, 1  ;;  %v4109_v59 = vrot.slane %v13952_v55, 2 }
 0x167   : > { %4534 = vmatmul.mubr.bf16.gmra.mrb[12].mxu0 %v4112_v0  ;;  %2290 = vmatpush1.bf16.msra.mxu1 %v12653_v44  ;;  %v12683_v44 = vld [vmem:[%s17097_s1 + $0x5b0] ss:$8 sps:$4 sm:$0xff]   ;;  %v12692_v0 = vld [vmem:[%s17097_s1 + $0xbc0] ss:$8 sps:$4 sm:$0xff]   ;;  %v1822_v62 = vrot.slane %v17140_v6, 1  ;;  %v4117_v6 = vrot.slane %v14001_v52, 2 }
 0x168   : > { %4575 = vmatpush1.bf16.msra.mxu0 %v12656_v46  ;;  %2291 = vmatprep.subr.bf16.mxu1 %v12661_v61  ;;  %v12686_v46 = vld [vmem:[%s17097_s1 + $0xbb0] ss:$8 sps:$4 sm:$0xff]   ;;  %v12694_v61 = vld [vmem:[%s17097_s1 + $0xbc4] ss:$8 sps:$4 sm:$0xff]  }
 0x169   : > { %4576 = vmatprep.subr.bf16.mxu0 %v12664_v31  ;;  %4543 = vmatprep.mubr.bf16.mxu0 %v4122_v42  ;;  %v12689_v31 = vld [vmem:[%s17097_s1 + $0x5c0] ss:$8 sps:$4 sm:$0xff]   ;;  %v12697_v42 = vld [vmem:[%s17097_s1 + $0x5d4] ss:$8 sps:$4 sm:$0xff]   ;;  %v12732_v52 = vld [vmem:[%s17097_s1 + $0xc50] ss:$8 sps:$4 sm:$0xff]  }
 0x16a   : > { %2258 = vmatprep.mubr.bf16.mxu1 %v1837_v47  ;;  %v12695_v47 = vld [vmem:[%s17097_s1 + $0x5d0] ss:$8 sps:$4 sm:$0xff]  }
 0x16b   : > { %2292 = vmatpush1.bf16.msra.mxu1 %v12659_v19  ;;  %v4090_v19 = vrot.slane %v13888_v26, 2  ;;  %v12726_v26 = vld [vmem:[%s17097_s1 + $0xc30] ss:$8 sps:$4 sm:$0xff]  }
 0x16c   : > { %4577 = vmatpush1.bf16.msra.mxu0 %v12662_v11  ;;  %2293 = vmatprep.subr.bf16.mxu1 %v12667_v33  ;;  %v12706_v11 = vld [vmem:[%s17097_s1 + $0xbe4] ss:$8 sps:$4 sm:$0xff]   ;;  %v12701_v33 = vld [vmem:[%s17097_s1 + $0x5e0] ss:$8 sps:$4 sm:$0xff]  }
 0x16d   : > { %4578 = vmatprep.subr.bf16.mxu0 %v12670_v36  ;;  %v12704_v36 = vld [vmem:[%s17097_s1 + $0xbe0] ss:$8 sps:$4 sm:$0xff]  }
 0x16e   : > { %2259 = vmatmul.mubr.bf16.gmra.mrb[16].mxu1 %v1835_v25  ;;  %v12710_v25 = vld [vmem:[%s17097_s1 + $0xbf0] ss:$8 sps:$4 sm:$0xff]  }
 0x16f   : > { %4544 = vmatmul.mubr.bf16.gmra.mrb[16].mxu0 %v4120_v48  ;;  %2294 = vmatpush1.bf16.msra.mxu1 %v12665_v2  ;;  %v12709_v2 = vld [vmem:[%s17097_s1 + $0x5f4] ss:$8 sps:$4 sm:$0xff]   ;;  %v12707_v48 = vld [vmem:[%s17097_s1 + $0x5f0] ss:$8 sps:$4 sm:$0xff]  }
 0x170   : > { %4579 = vmatpush1.bf16.msra.mxu0 %v12668_v8  ;;  %2295 = vmatprep.subr.bf16.mxu1 %v12673_v17  ;;  %v12712_v8 = vld [vmem:[%s17097_s1 + $0xbf4] ss:$8 sps:$4 sm:$0xff]   ;;  %v9972_v17 = vcombine.low %v14869_v49, %v14878_v16  ;;  %v12719_v49 = vld [vmem:[%s17097_s1 + $0xc04] ss:$8 sps:$4 sm:$0xff]  }
 0x171   : > { %4580 = vmatprep.subr.bf16.mxu0 %v12676_v4  ;;  %4553 = vmatprep.mubr.bf16.mxu0 %v4121_v40  ;;  %v1809_v40 = vsel %vm1797_vm0, %v1807_v37, %v1808_v58  ;;  %v10388_v4 = vcombine.low %v14872_v13, %v14883_v23  ;;  %v1816_v13 = vrot.slane %v17137_v53, 1  ;;  %v4101_v23 = vrot.slane %v13903_v35, 2  ;;  %v12717_v35 = vld [vmem:[%s17097_s1 + $0xc00] ss:$8 sps:$4 sm:$0xff]  }
 0x172   : > { %2268 = vmatprep.mubr.bf16.mxu1 %v1836_v24  ;;  %v12691_v24 = vld [vmem:[%s17097_s1 + $0x5c4] ss:$8 sps:$4 sm:$0xff]  }
 0x173   : > { %2296 = vmatpush1.bf16.msra.mxu1 %v12671_v10  ;;  %v1804_v10 = vrot.slane %v9972_v17, 1  ;;  %v4089_v30 = vrot.slane %v10388_v4, 2  ;;  %v4102_v37 = vsel %vm4082_vm3, %v4093_v27, %v4101_v23  ;;  %v1825_v55 = vsel %vm1797_vm0, %v1816_v13, %v1824_v63  ;;  %v4677_v17 = vld [vmem:[%s13438_s17 + $0x30] sm:$0xff]  ;;  %v12741_v4 = vld [vmem:[%s17097_s1 + $0xc80] ss:$8 sps:$4 sm:$0xff]  }
 0x174   : > { %4581 = vmatpush1.bf16.msra.mxu0 %v12674_v51  ;;  %2297 = vmatprep.subr.bf16.mxu1 %v12679_v20 }
 0x175   : > { %4582 = vmatprep.subr.bf16.mxu0 %v12682_v60  ;;  %v1806_v60 = vsel %vm1797_vm0, %v1804_v10, %v1805_v54  ;;  %v4091_v53 = vsel %vm4082_vm3, %v4089_v30, %v4090_v19  ;;  %v12746_v10 = vld [vmem:[%s17097_s1 + $0xc94] ss:$8 sps:$4 sm:$0xff]   ;;  %v12744_v30 = vld [vmem:[%s17097_s1 + $0xc90] ss:$8 sps:$4 sm:$0xff]  }
 0x176   : > { %2269 = vmatmul.mubr.bf16.gmra.mrb[36].mxu1 %v1834_v7  ;;  %v12703_v7 = vld [vmem:[%s17097_s1 + $0x5e4] ss:$8 sps:$4 sm:$0xff]  }
 0x177   : > { %4554 = vmatmul.mubr.bf16.gmra.mrb[36].mxu0 %v4119_v14  ;;  %2298 = vmatpush1.bf16.msra.mxu1 %v12677_v29  ;;  %v12700_v14 = vld [vmem:[%s17097_s1 + $0xbd4] ss:$8 sps:$4 sm:$0xff]   ;;  %v1817_v29 = vsel %vm1797_vm0, %v1808_v58, %v1816_v13  ;;  %v1815_v58 = vsel %vm1797_vm0, %v1805_v54, %v1814_v41  ;;  %v1830_v54 = vrot.slane %v14011_v3, 1  ;;  %v12735_v3 = vld [vmem:[%s17097_s1 + $0xc60] ss:$8 sps:$4 sm:$0xff]  }
 0x178   : > { %4583 = vmatpush1.bf16.msra.mxu0 %v12680_v34  ;;  %2299 = vmatprep.subr.bf16.mxu1 %v12685_v22  ;;  %v12720_v22 = vld [vmem:[%s17097_s1 + $0xc10] ss:$8 sps:$4 sm:$0xff]  }
 0x179   : > { %4584 = vmatprep.subr.bf16.mxu0 %v12688_v43  ;;  %2309 = vmatprep.mubr.bf16.mxu1 %v1809_v40  ;;  %v4099_v43 = vrot.slane %v13920_v57, 2  ;;  %v12723_v57 = vld [vmem:[%s17097_s1 + $0xc20] ss:$8 sps:$4 sm:$0xff]   ;;  %v1832_v40 = vrot.slane %v13981_v21, 1  ;;  %v12734_v21 = vld [vmem:[%s17097_s1 + $0xc54] ss:$8 sps:$4 sm:$0xff]  }
 0x17a   : > { %4594 = vmatprep.mubr.bf16.mxu0 %v4094_v12  ;;  %v12731_v12 = vld [vmem:[%s17097_s1 + $0xc44] ss:$8 sps:$4 sm:$0xff]  }
 0x17b   : > { %2300 = vmatpush1.bf16.msra.mxu1 %v12683_v44  ;;  %v4100_v27 = vsel %vm4082_vm3, %v4090_v19, %v4099_v43  ;;  %v4110_v44 = vsel %vm4082_vm3, %v4101_v23, %v4109_v59  ;;  %v4115_v19 = vrot.slane %v14025_v32, 2  ;;  %v12740_v32 = vld [vmem:[%s17097_s1 + $0xc74] ss:$8 sps:$4 sm:$0xff]   ;;  %v12747_v23 = vld [vmem:[%s17097_s1 + $0xca0] ss:$8 sps:$4 sm:$0xff]  }
 0x17c   : > { %4585 = vmatpush1.bf16.msra.mxu0 %v12686_v46  ;;  %2301 = vmatprep.subr.bf16.mxu1 %v12691_v24  ;;  %v4107_v46 = vrot.slane %v13986_v39, 2  ;;  %v1823_v24 = vsel %vm1797_vm0, %v1814_v41, %v1822_v62  ;;  %v1833_v39 = vsel %vm1797_vm0, %v1824_v63, %v1832_v40  ;;  %v12764_v41 = vld [vmem:[%s17097_s1 + $0xcf4] ss:$8 sps:$4 sm:$0xff]  }
 0x17d   : > { %4586 = vmatprep.subr.bf16.mxu0 %v12694_v61  ;;  %v15137_v63 = vld [vmem:[%s13438_s17 + $0x64] ss:$16 sps:$4 sm:$0xff]  }
 0x17e   : > { %v4108_v61 = vsel %vm4082_vm3, %v4099_v43, %v4107_v46  ;;  %v15134_v43 = vld [vmem:[%s13438_s17 + $0x40] ss:$16 sps:$4 sm:$0xff]  }
 0x17f   : > { %2302 = vmatpush1.bf16.msra.mxu1 %v12689_v31  ;;  %v12729_v31 = vld [vmem:[%s17097_s1 + $0xc40] ss:$8 sps:$4 sm:$0xff]  }
 0x180   : > { %4587 = vmatpush1.bf16.msra.mxu0 %v12692_v0  ;;  %2303 = vmatprep.subr.bf16.mxu1 %v12697_v42  ;;  %v4118_v0 = vsel %vm4082_vm3, %v4109_v59, %v4117_v6  ;;  %v12737_v42 = vld [vmem:[%s17097_s1 + $0xc64] ss:$8 sps:$4 sm:$0xff]  }
 0x181   : > { %4588 = vmatprep.subr.bf16.mxu0 %v12700_v14  ;;  %v1840_v14 = vrot.slane %v14032_v9, 1 }
 0x183   : > { %2304 = vmatpush1.bf16.msra.mxu1 %v12695_v47  ;;  %v4125_v47 = vrot.slane %v14514_v18, 2  ;;  %v1841_v9 = vsel %vm1797_vm0, %v1832_v40, %v1840_v14  ;;  %v12738_v18 = vld [vmem:[%s17097_s1 + $0xc70] ss:$8 sps:$4 sm:$0xff]   ;;  %v1092_v40 = vpop.f32.mrb[20].mxu1 }
 0x184   : > { %4589 = vmatpush1.bf16.msra.mxu0 %v12698_v38  ;;  %2305 = vmatprep.subr.bf16.mxu1 %v12703_v7  ;;  %v1831_v38 = vsel %vm1797_vm0, %v1822_v62, %v1830_v54  ;;  %v4116_v7 = vsel %vm4082_vm3, %v4107_v46, %v4115_v19  ;;  %v15157_v46 = vld [vmem:[%s13438_s17 + $0x60] ss:$16 sps:$4 sm:$0xff]  }
 0x185   : > { %4590 = vmatprep.subr.bf16.mxu0 %v12706_v11  ;;  %v4126_v11 = vsel %vm4082_vm3, %v4117_v6, %v4125_v47 }
 0x187   : > { %2306 = vmatpush1.bf16.msra.mxu1 %v12701_v33  ;;  %v1838_v33 = vrot.slane %v14059_v56, 1 }
 0x188   : > { %4591 = vmatpush1.bf16.msra.mxu0 %v12704_v36  ;;  %2307 = vmatprep.subr.bf16.mxu1 %v12709_v2  ;;  %v4123_v36 = vrot.slane %v14536_v45, 2  ;;  %v12743_v2 = vld [vmem:[%s17097_s1 + $0xc84] ss:$8 sps:$4 sm:$0xff]  }
 0x189   : > { %4592 = vmatprep.subr.bf16.mxu0 %v12712_v8  ;;  %v4675_v8 = vld [vmem:[%s13438_s17 + $0x20] sm:$0xcc] }
 0x18a   : > { %v3138_v16 = vpop.f32.mrb[24].mxu0  ;;  %v15084_v56 = vcombine.high %v4675_v8, %v4677_v17  ;;  %v15087_v45 = vld [vmem:[%s13438_s17 + $0x44] ss:$16 sps:$4 sm:$0xff]  }
 0x18b   : > { %v14982_v5 = vadd.f32 %v3138_v16, %v14718_v50  ;;  %v3140_v51 = vpop.f32.mrb[25].mxu0  ;;  %2308 = vmatpush1.bf16.msra.mxu1 %v12707_v48  ;;  %v1839_v48 = vsel %vm1797_vm0, %v1830_v54, %v1838_v33  ;;  %v4864_v16 = vrot.slane %v15087_v45, 2  ;;  %v4872_v54 = vrot.slane %v15157_v46, 2 }
 0x18c   : > { %v14985_v20 = vadd.f32 %v3140_v51, %v14720_v28  ;;  %4593 = vmatpush1.bf16.msra.mxu0 %v12710_v25  ;;  %v3142_v50 = vpop.f32.mrb[26].mxu0  ;;  %v12722_v28 = vld [vmem:[%s17097_s1 + $0xc14] ss:$8 sps:$4 sm:$0xff]   ;;  %v4124_v25 = vsel %vm4082_vm3, %v4115_v19, %v4123_v36  ;;  %v4863_v13 = vrot.slane %v15084_v56, 2 }
 0x18d   : > { %5248 = vmatprep.subr.bf16.mxu0 %v12719_v49  ;;  %v3143_v34 = vpop.f32.mrb[27].mxu0  ;;  %v12749_v49 = vld [vmem:[%s17097_s1 + $0xca4] ss:$8 sps:$4 sm:$0xff]   ;;  %v12752_v51 = vld [vmem:[%s17097_s1 + $0xcb4] ss:$8 sps:$4 sm:$0xff]  }
 0x18e   : > { %2310 = vmatmul.mubr.bf16.vlgmr.msra.gmra.mrb[0].mxu1 %v1806_v60  ;;  %v4865_v60 = vsel %vm4082_vm3, %v4863_v13, %v4864_v16  ;;  %v12753_v50 = vld [vmem:[%s17097_s1 + $0xcc0] ss:$8 sps:$4 sm:$0xff]   ;;  %v12761_v34 = vld [vmem:[%s17097_s1 + $0xce4] ss:$8 sps:$4 sm:$0xff]  }
 0x18f   : > { %4595 = vmatmul.mubr.bf16.vlgmr.msra.gmra.mrb[0].mxu0 %v4091_v53  ;;  %2319 = vmatprep.mubr.bf16.mxu1 %v1817_v29  ;;  %v12750_v53 = vld [vmem:[%s17097_s1 + $0xcb0] ss:$8 sps:$4 sm:$0xff]  }
 0x190   : > { %5249 = vmatpush1.bf16.msra.mxu0 %v12717_v35  ;;  %4604 = vmatprep.mubr.bf16.mxu0 %v4102_v37  ;;  %v12755_v35 = vld [vmem:[%s17097_s1 + $0xcc4] ss:$8 sps:$4 sm:$0xff]   ;;  %v12756_v29 = vld [vmem:[%s17097_s1 + $0xcd0] ss:$8 sps:$4 sm:$0xff]   ;;  %v12759_v37 = vld [vmem:[%s17097_s1 + $0xce0] ss:$8 sps:$4 sm:$0xff]  }
 0x191   : > { %5250 = vmatprep.subr.bf16.mxu0 %v12722_v28  ;;  %v12758_v28 = vld [vmem:[%s17097_s1 + $0xcd4] ss:$8 sps:$4 sm:$0xff]  }
 0x194   : > { %5251 = vmatpush1.bf16.msra.mxu0 %v12720_v22  ;;  %v15131_v22 = vcombine.low %v4675_v8, %v4677_v17 }
 0x195   : > { %5252 = vmatprep.subr.bf16.mxu0 %v12725_v1  ;;  %v12762_v1 = vld [vmem:[%s17097_s1 + $0xcf0] ss:$8 sps:$4 sm:$0xff]  }
 0x196   : > { %2320 = vmatmul.mubr.bf16.gmra.mrb[4].mxu1 %v1815_v58  ;;  %v4860_v59 = vrot.slane %v15131_v22, 2  ;;  %v4861_v58 = vrot.slane %v15134_v43, 2 }
 0x197   : > { %4605 = vmatmul.mubr.bf16.gmra.mrb[4].mxu0 %v4100_v27  ;;  %2329 = vmatprep.mubr.bf16.mxu1 %v1825_v55  ;;  %v12772_v27 = vld [vmem:[%s17097_s1 + $0xd04] ss:$8 sps:$4 sm:$0xff]  }
 0x198   : > { %5253 = vmatpush1.bf16.msra.mxu0 %v12723_v57  ;;  %4614 = vmatprep.mubr.bf16.mxu0 %v4110_v44  ;;  %v4874_v57 = vrot.slane %v15137_v63, 2  ;;  %v12770_v44 = vld [vmem:[%s17097_s1 + $0xd00] ss:$8 sps:$4 sm:$0xff]   ;;  %v4862_v62 = vsel %vm4082_vm3, %v4860_v59, %v4861_v58 }
 0x199   : > { %5254 = vmatprep.subr.bf16.mxu0 %v12728_v15 }
 0x19c   : > { %5255 = vmatpush1.bf16.msra.mxu0 %v12726_v26 }
 0x19d   : > { %5256 = vmatprep.subr.bf16.mxu0 %v12731_v12  ;;  %v12775_v12 = vld [vmem:[%s17097_s1 + $0xd14] ss:$8 sps:$4 sm:$0xff]  }
 0x19e   : > { %2330 = vmatmul.mubr.bf16.gmra.mrb[8].mxu1 %v1823_v24  ;;  %v4875_v24 = vsel %vm4082_vm3, %v4864_v16, %v4874_v57  ;;  %v15201_v16 = vld [vmem:[%s13438_s17 + $0xc0] sm:$0xff] }
 0x19f   : > { %4615 = vmatmul.mubr.bf16.gmra.mrb[8].mxu0 %v4108_v61  ;;  %2339 = vmatprep.mubr.bf16.mxu1 %v1833_v39  ;;  %v15164_v61 = vld [vmem:[%s13438_s17 + $0x84] ss:$16 sps:$4 sm:$0xff]  }
 0x1a0   : > { %5257 = vmatpush1.bf16.msra.mxu0 %v12729_v31  ;;  %4624 = vmatprep.mubr.bf16.mxu0 %v4118_v0  ;;  %v1094_v31 = vpop.f32.mrb[21].mxu1  ;;  %v12778_v0 = vld [vmem:[%s17097_s1 + $0xd24] ss:$8 sps:$4 sm:$0xff]  }
 0x1a1   : > { %5258 = vmatprep.subr.bf16.mxu0 %v12734_v21  ;;  %v1096_v21 = vpop.f32.mrb[22].mxu1 }
 0x1a2   : > { %v1097_v39 = vpop.f32.mrb[23].mxu1  ;;  %v15247_v21 = vld [vmem:[%s13438_s17 + $0x4c] ss:$16 sps:$4 sm:$0xff]  }
 0x1a3   : > { %v1183_v19 = vpop.f32.mrb[24].mxu1  ;;  %v12805_v39 = vld [vmem:[%s17097_s1 + $0xd94] ss:$8 sps:$4 sm:$0xff]  }
 0x1a4   : > { %5259 = vmatpush1.bf16.msra.mxu0 %v12732_v52  ;;  %v12773_v52 = vld [vmem:[%s17097_s1 + $0xd10] ss:$8 sps:$4 sm:$0xff]  }
 0x1a5   : > { %5260 = vmatprep.subr.bf16.mxu0 %v12737_v42  ;;  %v4882_v42 = vrot.slane %v15164_v61, 2 }
 0x1a6   : > { %2340 = vmatmul.mubr.bf16.gmra.mrb[12].mxu1 %v1831_v38  ;;  %v1185_v38 = vpop.f32.mrb[25].mxu1 }
 0x1a7   : > { %4625 = vmatmul.mubr.bf16.gmra.mrb[12].mxu0 %v4116_v7  ;;  %2349 = vmatprep.mubr.bf16.mxu1 %v1841_v9  ;;  %v12776_v7 = vld [vmem:[%s17097_s1 + $0xd20] ss:$8 sps:$4 sm:$0xff]  }
 0x1a8   : > { %5261 = vmatpush1.bf16.msra.mxu0 %v12735_v3  ;;  %4634 = vmatprep.mubr.bf16.mxu0 %v4126_v11  ;;  %v1186_v3 = vadd.f32 %v1185_v38, %v1094_v31  ;;  %v4873_v11 = vsel %vm4082_vm3, %v4861_v58, %v4872_v54 }
 0x1a9   : > { %5262 = vmatprep.subr.bf16.mxu0 %v12740_v32  ;;  %v1187_v32 = vpop.f32.mrb[26].mxu1 }
 0x1aa   : > { %v1188_v9 = vpop.f32.mrb[27].mxu1  ;;  %v12817_v32 = vld [vmem:[%s17097_s1 + $0xdc0] ss:$8 sps:$4 sm:$0xff]  }
 0x1ab   : > { %v12822_v9 = vld [vmem:[%s17097_s1 + $0xdd4] ss:$8 sps:$4 sm:$0xff]  }
 0x1ac   : > { %5263 = vmatpush1.bf16.msra.mxu0 %v12738_v18  ;;  %v12781_v18 = vld [vmem:[%s17097_s1 + $0xd34] ss:$8 sps:$4 sm:$0xff]  }
 0x1ad   : > { %5264 = vmatprep.subr.bf16.mxu0 %v12743_v2  ;;  %v4883_v2 = vsel %vm4082_vm3, %v4874_v57, %v4882_v42 }
 0x1ae   : > { %2350 = vmatmul.mubr.bf16.gmra.mrb[16].mxu1 %v1839_v48 }
 0x1af   : > { %4635 = vmatmul.mubr.bf16.gmra.mrb[16].mxu0 %v4124_v25  ;;  %2359 = vmatprep.mubr.bf16.mxu1 %v1840_v14  ;;  %v15175_v14 = vld [vmem:[%s13438_s17 + $0x80] ss:$16 sps:$4 sm:$0xff]  }
 0x1b0   : > { %5265 = vmatpush1.bf16.msra.mxu0 %v12741_v4  ;;  %4644 = vmatprep.mubr.bf16.mxu0 %v4125_v47  ;;  %v1184_v47 = vadd.f32 %v1183_v19, %v1092_v40  ;;  %v12779_v4 = vld [vmem:[%s17097_s1 + $0xd30] ss:$8 sps:$4 sm:$0xff]   ;;  %v4676_v40 = vld [vmem:[%s13438_s17 + $0x28] sm:$0xcc]  ;;  %v4870_v19 = vrot.slane %v15247_v21, 2 }
 0x1b1   : > { %5266 = vmatprep.subr.bf16.mxu0 %v12746_v10  ;;  %v12784_v10 = vld [vmem:[%s17097_s1 + $0xd44] ss:$8 sps:$4 sm:$0xff]  }
 0x1b4   : > { %5267 = vmatpush1.bf16.msra.mxu0 %v12744_v30  ;;  %v4880_v30 = vrot.slane %v15175_v14, 2 }
 0x1b5   : > { %5268 = vmatprep.subr.bf16.mxu0 %v12749_v49 }
 0x1b6   : > { %2360 = vmatmul.mubr.bf16.gmra.mrb[40].mxu1 %v1838_v33  ;;  %v15185_v33 = vld [vmem:[%s13438_s17 + $0xa4] ss:$16 sps:$4 sm:$0xff]  }
 0x1b7   : > { %4645 = vmatmul.mubr.bf16.gmra.mrb[40].mxu0 %v4123_v36  ;;  %v4890_v13 = vrot.slane %v15185_v33, 2 }
 0x1b8   : > { %5269 = vmatpush1.bf16.msra.mxu0 %v12747_v23  ;;  %5280 = vmatprep.mubr.bf16.mxu0 %v4865_v60  ;;  %v4697_v23 = vld [vmem:[%s13438_s17 + $0xd0] sm:$0x33]  ;;  %v4881_v60 = vsel %vm4082_vm3, %v4872_v54, %v4880_v30 }
 0x1b9   : > { %5270 = vmatprep.subr.bf16.mxu0 %v12752_v51  ;;  %v12782_v51 = vld [vmem:[%s17097_s1 + $0xd40] ss:$8 sps:$4 sm:$0xff]   ;;  %v10538_v58 = vcombine.low %v15201_v16, %v4697_v23 }
 0x1bc   : > { %5271 = vmatpush1.bf16.msra.mxu0 %v12750_v53  ;;  %v15209_v53 = vld [vmem:[%s13438_s17 + $0xa0] ss:$16 sps:$4 sm:$0xff]  }
 0x1bd   : > { %5272 = vmatprep.subr.bf16.mxu0 %v12755_v35  ;;  %v12787_v35 = vld [vmem:[%s17097_s1 + $0xd54] ss:$8 sps:$4 sm:$0xff]  }
 0x1c0   : > { %5273 = vmatpush1.bf16.msra.mxu0 %v12753_v50  ;;  %v4891_v50 = vsel %vm4082_vm3, %v4882_v42, %v4890_v13  ;;  %v12809_v42 = vld [vmem:[%s17097_s1 + $0xda0] ss:$8 sps:$4 sm:$0xff]  }
 0x1c1   : > { %5274 = vmatprep.subr.bf16.mxu0 %v12758_v28  ;;  %v10539_v28 = vcombine.high %v15201_v16, %v4697_v23 }
 0x1c4   : > { %5275 = vmatpush1.bf16.msra.mxu0 %v12756_v29  ;;  %v12785_v29 = vld [vmem:[%s17097_s1 + $0xd50] ss:$8 sps:$4 sm:$0xff]  }
 0x1c5   : > { %5276 = vmatprep.subr.bf16.mxu0 %v12761_v34  ;;  %v12793_v34 = vld [vmem:[%s17097_s1 + $0xd64] ss:$8 sps:$4 sm:$0xff]  }
 0x1c8   : > { %5277 = vmatpush1.bf16.msra.mxu0 %v12759_v37  ;;  %v4888_v37 = vrot.slane %v15209_v53, 2 }
 0x1c9   : > { %5278 = vmatprep.subr.bf16.mxu0 %v12764_v41  ;;  %v1622_v36 = vpop.f32.mrb[28].mxu1  ;;  %v4898_v41 = vrot.slane %v10539_v28, 2 }
 0x1ca   : > { %v15148_v15 = vpop.f32.mrb[28].mxu0  ;;  %v15188_v8 = vadd.f32 %v1622_v36, %v1184_v47  ;;  %v1624_v17 = vpop.f32.mrb[29].mxu1  ;;  %v4889_v59 = vsel %vm4082_vm3, %v4880_v30, %v4888_v37  ;;  %v12814_v47 = vld [vmem:[%s17097_s1 + $0xdb4] ss:$8 sps:$4 sm:$0xff]   ;;  %v12823_v36 = vld [vmem:[%s17097_s1 + $0xde0] ss:$8 sps:$4 sm:$0xff]  }
 0x1cb   : > { %v15150_v55 = vpop.f32.mrb[29].mxu0  ;;  %v15193_v48 = vadd.f32 %v1624_v17, %v1186_v3  ;;  %v1626_v25 = vpop.f32.mrb[30].mxu1  ;;  %v4899_v57 = vsel %vm4082_vm3, %v4890_v13, %v4898_v41  ;;  %v12819_v3 = vld [vmem:[%s17097_s1 + $0xdc4] ss:$8 sps:$4 sm:$0xff]  }
 0x1cc   : > { %5279 = vmatpush1.bf16.msra.mxu0 %v12762_v1  ;;  %v3889_v26 = vpop.f32.mrb[30].mxu0  ;;  %v1627_v49 = vpop.f32.mrb[31].mxu1  ;;  %v12791_v1 = vld [vmem:[%s17097_s1 + $0xd60] ss:$8 sps:$4 sm:$0xff]   ;;  %v15297_v25 = vld [vmem:[%s13438_s17 + $0x6c] ss:$16 sps:$4 sm:$0xff]  }
 0x1cd   : > { %5339 = vmatprep.subr.bf16.mxu0 %v12772_v27  ;;  %v3890_v6 = vpop.f32.mrb[31].mxu0  ;;  %v12796_v27 = vld [vmem:[%s17097_s1 + $0xd74] ss:$8 sps:$4 sm:$0xff]   ;;  %v4896_v26 = vrot.slane %v10538_v58, 2  ;;  %v12836_v13 = vld [vmem:[%s17097_s1 + $0xe04] ss:$8 sps:$4 sm:$0xff]  }
 0x1ce   : > { %v12800_v6 = vld [vmem:[%s17097_s1 + $0xd80] ss:$8 sps:$4 sm:$0xff]   ;;  %v4878_v23 = vrot.slane %v15297_v25, 2 }
 0x1cf   : > { %5281 = vmatmul.mubr.bf16.vlgmr.msra.gmra.mrb[0].mxu0 %v4862_v62  ;;  %v12802_v62 = vld [vmem:[%s17097_s1 + $0xd84] ss:$8 sps:$4 sm:$0xff]  }
 0x1d0   : > { %5340 = vmatpush1.bf16.msra.mxu0 %v12770_v44  ;;  %5290 = vmatprep.mubr.bf16.mxu0 %v4875_v24  ;;  %v12794_v44 = vld [vmem:[%s17097_s1 + $0xd70] ss:$8 sps:$4 sm:$0xff]   ;;  %v4897_v24 = vsel %vm4082_vm3, %v4888_v37, %v4896_v26 }
 0x1d1   : > { %5341 = vmatprep.subr.bf16.mxu0 %v12775_v12  ;;  %v4678_v12 = vld [vmem:[%s13438_s17 + $0x38] sm:$0xff] }
 0x1d2   : > { %v15244_v31 = vcombine.high %v4676_v40, %v4678_v12  ;;  %v15291_v17 = vcombine.low %v4676_v40, %v4678_v12 }
 0x1d4   : > { %5342 = vmatpush1.bf16.msra.mxu0 %v12773_v52  ;;  %v12803_v52 = vld [vmem:[%s17097_s1 + $0xd90] ss:$8 sps:$4 sm:$0xff]   ;;  %v4869_v54 = vrot.slane %v15244_v31, 2  ;;  %v4866_v30 = vrot.slane %v15291_v17, 2 }
 0x1d5   : > { %5343 = vmatprep.subr.bf16.mxu0 %v12778_v0  ;;  %v12811_v0 = vld [vmem:[%s17097_s1 + $0xda4] ss:$8 sps:$4 sm:$0xff]  }
 0x1d6   : > { %v4871_v38 = vsel %vm4082_vm3, %v4869_v54, %v4870_v19  ;;  %v12954_v54 = vld [vmem:[%s17097_s1 + $0x1104] ss:$8 sps:$4 sm:$0xff]  }
 0x1d7   : > { %5291 = vmatmul.mubr.bf16.gmra.mrb[4].mxu0 %v4873_v11  ;;  %v12825_v11 = vld [vmem:[%s17097_s1 + $0xde4] ss:$8 sps:$4 sm:$0xff]   ;;  %11695 = vmatprep.subr.bf16.mxu1 %v12954_v54  ;;  %v15451_v54 = vld [vmem:[%s17097_s1 + $0x1150] ss:$8 sps:$4 sm:$0xff]  }
 0x1d8   : > { %5344 = vmatpush1.bf16.msra.mxu0 %v12776_v7  ;;  %5300 = vmatprep.mubr.bf16.mxu0 %v4883_v2  ;;  %v12812_v7 = vld [vmem:[%s17097_s1 + $0xdb0] ss:$8 sps:$4 sm:$0xff]   ;;  %v12828_v2 = vld [vmem:[%s17097_s1 + $0xdf4] ss:$8 sps:$4 sm:$0xff]  }
 0x1d9   : > { %5345 = vmatprep.subr.bf16.mxu0 %v12781_v18  ;;  %v12820_v18 = vld [vmem:[%s17097_s1 + $0xdd0] ss:$8 sps:$4 sm:$0xff]  }
 0x1dc   : > { %5346 = vmatpush1.bf16.msra.mxu0 %v12779_v4  ;;  %v15294_v4 = vld [vmem:[%s13438_s17 + $0x48] ss:$16 sps:$4 sm:$0xff]  }
 0x1dd   : > { %5347 = vmatprep.subr.bf16.mxu0 %v12784_v10  ;;  %v12826_v10 = vld [vmem:[%s17097_s1 + $0xdf0] ss:$8 sps:$4 sm:$0xff]   ;;  %v4867_v49 = vrot.slane %v15294_v4, 2 }
 0x1df   : > { %5301 = vmatmul.mubr.bf16.gmra.mrb[8].mxu0 %v4881_v60  ;;  %v4868_v37 = vsel %vm4082_vm3, %v4866_v30, %v4867_v49 }
 0x1e0   : > { %5348 = vmatpush1.bf16.msra.mxu0 %v12782_v51  ;;  %5310 = vmatprep.mubr.bf16.mxu0 %v4891_v50 }
 0x1e1   : > { %5349 = vmatprep.subr.bf16.mxu0 %v12787_v35 }
 0x1e4   : > { %5350 = vmatpush1.bf16.msra.mxu0 %v12785_v29 }
 0x1e5   : > { %5351 = vmatprep.subr.bf16.mxu0 %v12793_v34 }
 0x1e7   : > { %5311 = vmatmul.mubr.bf16.gmra.mrb[12].mxu0 %v4889_v59 }
 0x1e8   : > { %5352 = vmatpush1.bf16.msra.mxu0 %v12791_v1  ;;  %5320 = vmatprep.mubr.bf16.mxu0 %v4899_v57  ;;  %v15322_v1 = vld [vmem:[%s13438_s17 + $0x68] ss:$16 sps:$4 sm:$0xff]   ;;  %v15332_v57 = vld [vmem:[%s13438_s17 + $0x8c] ss:$16 sps:$4 sm:$0xff]  }
 0x1e9   : > { %5353 = vmatprep.subr.bf16.mxu0 %v12796_v27  ;;  %v4886_v40 = vrot.slane %v15332_v57, 2 }
 0x1ec   : > { %5354 = vmatpush1.bf16.msra.mxu0 %v12794_v44 }
 0x1ed   : > { %5355 = vmatprep.subr.bf16.mxu0 %v12802_v62  ;;  %v4876_v62 = vrot.slane %v15322_v1, 2 }
 0x1ef   : > { %5321 = vmatmul.mubr.bf16.gmra.mrb[16].mxu0 %v4897_v24  ;;  %v4877_v12 = vsel %vm4082_vm3, %v4867_v49, %v4876_v62  ;;  %v15347_v24 = vld [vmem:[%s13438_s17 + $0x88] ss:$16 sps:$4 sm:$0xff]  }
 0x1f0   : > { %5356 = vmatpush1.bf16.msra.mxu0 %v12800_v6  ;;  %5330 = vmatprep.mubr.bf16.mxu0 %v4898_v41  ;;  %v12834_v41 = vld [vmem:[%s17097_s1 + $0xe00] ss:$8 sps:$4 sm:$0xff]  }
 0x1f1   : > { %5357 = vmatprep.subr.bf16.mxu0 %v12805_v39  ;;  %v12843_v6 = vld [vmem:[%s17097_s1 + $0xe20] ss:$8 sps:$4 sm:$0xff]   ;;  %v12848_v39 = vld [vmem:[%s17097_s1 + $0xe34] ss:$8 sps:$4 sm:$0xff]  }
 0x1f4   : > { %5358 = vmatpush1.bf16.msra.mxu0 %v12803_v52  ;;  %v4887_v52 = vsel %vm4082_vm3, %v4878_v23, %v4886_v40 }
 0x1f5   : > { %5359 = vmatprep.subr.bf16.mxu0 %v12811_v0  ;;  %v15354_v0 = vld [vmem:[%s13438_s17 + $0xac] ss:$16 sps:$4 sm:$0xff]  }
 0x1f7   : > { %5331 = vmatmul.mubr.bf16.gmra.mrb[44].mxu0 %v4896_v26  ;;  %v12845_v26 = vld [vmem:[%s17097_s1 + $0xe24] ss:$8 sps:$4 sm:$0xff]  }
 0x1f8   : > { %5360 = vmatpush1.bf16.msra.mxu0 %v12809_v42  ;;  %5371 = vmatprep.mubr.bf16.mxu0 %v4871_v38  ;;  %v12846_v42 = vld [vmem:[%s17097_s1 + $0xe30] ss:$8 sps:$4 sm:$0xff]   ;;  %v12854_v38 = vld [vmem:[%s17097_s1 + $0xe44] ss:$8 sps:$4 sm:$0xff]  }
 0x1f9   : > { %5361 = vmatprep.subr.bf16.mxu0 %v12814_v47  ;;  %v4884_v47 = vrot.slane %v15347_v24, 2 }
 0x1fc   : > { %5362 = vmatpush1.bf16.msra.mxu0 %v12812_v7  ;;  %v4894_v7 = vrot.slane %v15354_v0, 2 }
 0x1fd   : > { %5363 = vmatprep.subr.bf16.mxu0 %v12819_v3  ;;  %v12958_v3 = vld [vmem:[%s17097_s1 + $0x1110] ss:$8 sps:$4 sm:$0xff]  }
 0x1fe   : > { %v4895_v30 = vsel %vm4082_vm3, %v4886_v40, %v4894_v7  ;;  %v12871_v40 = vld [vmem:[%s17097_s1 + $0xe84] ss:$8 sps:$4 sm:$0xff]  }
 0x200   : > { %5364 = vmatpush1.bf16.msra.mxu0 %v12817_v32  ;;  %v12960_v32 = vld [vmem:[%s17097_s1 + $0x1114] ss:$8 sps:$4 sm:$0xff]  }
 0x201   : > { %5365 = vmatprep.subr.bf16.mxu0 %v12822_v9  ;;  %v15377_v9 = vld [vmem:[%s13438_s17 + $0xc8] sm:$0xff] }
 0x204   : > { %5366 = vmatpush1.bf16.msra.mxu0 %v12820_v18  ;;  %v4698_v18 = vld [vmem:[%s13438_s17 + $0xd8] sm:$0x33] }
 0x205   : > { %5367 = vmatprep.subr.bf16.mxu0 %v12825_v11  ;;  %v4885_v11 = vsel %vm4082_vm3, %v4876_v62, %v4884_v47  ;;  %v10541_v49 = vcombine.high %v15377_v9, %v4698_v18  ;;  %v12864_v62 = vld [vmem:[%s17097_s1 + $0xe70] ss:$8 sps:$4 sm:$0xff]  }
 0x208   : > { %5368 = vmatpush1.bf16.msra.mxu0 %v12823_v36  ;;  %v12852_v36 = vld [vmem:[%s17097_s1 + $0xe40] ss:$8 sps:$4 sm:$0xff]  }
 0x209   : > { %5369 = vmatprep.subr.bf16.mxu0 %v12828_v2  ;;  %v1713_v60 = vpop.f32.mrb[32].mxu1  ;;  %v15385_v2 = vld [vmem:[%s13438_s17 + $0xa8] ss:$16 sps:$4 sm:$0xff]  }
 0x20a   : > { %v3976_v51 = vpop.f32.mrb[32].mxu0  ;;  %v15312_v28 = vadd.f32 %v1713_v60, %v15188_v8  ;;  %v1715_v29 = vpop.f32.mrb[33].mxu1  ;;  %v4879_v8 = vsel %vm4082_vm3, %v4870_v19, %v4878_v23  ;;  %v12952_v19 = vld [vmem:[%s17097_s1 + $0x1100] ss:$8 sps:$4 sm:$0xff]   ;;  %v4892_v60 = vrot.slane %v15385_v2, 2 }
 0x20b   : > { %v15309_v35 = vadd.f32 %v3976_v51, %v15148_v15  ;;  %v3978_v50 = vpop.f32.mrb[33].mxu0  ;;  %v15325_v59 = vadd.f32 %v1715_v29, %v15193_v48  ;;  %v1717_v58 = vpop.f32.mrb[34].mxu1  ;;  %v12837_v48 = vld [vmem:[%s17097_s1 + $0xe10] ss:$8 sps:$4 sm:$0xff]   ;;  %11711 = vmatpush1.bf16.msra.mxu1 %v12952_v19  ;;  %v12964_v23 = vld [vmem:[%s17097_s1 + $0x1120] ss:$8 sps:$4 sm:$0xff]  }
 0x20c   : > { %v15315_v34 = vadd.f32 %v3978_v50, %v15150_v55  ;;  %5370 = vmatpush1.bf16.msra.mxu0 %v12826_v10  ;;  %v3980_v15 = vpop.f32.mrb[34].mxu0  ;;  %v12839_v55 = vld [vmem:[%s17097_s1 + $0xe14] ss:$8 sps:$4 sm:$0xff]   ;;  %v1718_v44 = vpop.f32.mrb[35].mxu1  ;;  %11696 = vmatprep.subr.bf16.mxu1 %v12960_v32  ;;  %v12855_v51 = vld [vmem:[%s17097_s1 + $0xe50] ss:$8 sps:$4 sm:$0xff]  }
 0x20d   : > { %6086 = vmatprep.subr.bf16.mxu0 %v12836_v13  ;;  %v3981_v27 = vpop.f32.mrb[35].mxu0  ;;  %v12857_v10 = vld [vmem:[%s17097_s1 + $0xe54] ss:$8 sps:$4 sm:$0xff]   ;;  %v12966_v13 = vld [vmem:[%s17097_s1 + $0x1124] ss:$8 sps:$4 sm:$0xff]   ;;  %v4902_v29 = vrot.slane %v10541_v49, 2  ;;  %v4893_v15 = vsel %vm4082_vm3, %v4884_v47, %v4892_v60 }
 0x20e   : > { %v12863_v50 = vld [vmem:[%s17097_s1 + $0xe64] ss:$8 sps:$4 sm:$0xff]   ;;  %v12861_v58 = vld [vmem:[%s17097_s1 + $0xe60] ss:$8 sps:$4 sm:$0xff]   ;;  %v15456_v19 = vld [vmem:[%s17097_s1 + $0x1154] ss:$8 sps:$4 sm:$0xff]  }
 0x20f   : > { %5372 = vmatmul.mubr.bf16.vlgmr.msra.gmra.mrb[0].mxu0 %v4868_v37  ;;  %11712 = vmatpush1.bf16.msra.mxu1 %v12958_v3  ;;  %v15408_v37 = vld [vmem:[%s17097_s1 + $0x1130] ss:$8 sps:$4 sm:$0xff]   ;;  %v4903_v27 = vsel %vm4082_vm3, %v4894_v7, %v4902_v29  ;;  %v15429_v44 = vld [vmem:[%s17097_s1 + $0x1144] ss:$8 sps:$4 sm:$0xff]  }
 0x210   : > { %6087 = vmatpush1.bf16.msra.mxu0 %v12834_v41  ;;  %5381 = vmatprep.mubr.bf16.mxu0 %v4879_v8  ;;  %v15413_v41 = vld [vmem:[%s17097_s1 + $0x1134] ss:$8 sps:$4 sm:$0xff]   ;;  %v15470_v32 = vld [vmem:[%s17097_s1 + $0x1164] ss:$8 sps:$4 sm:$0xff]   ;;  %v15490_v49 = vld [vmem:[%s17097_s1 + $0x1170] ss:$8 sps:$4 sm:$0xff]  }
 0x211   : > { %6088 = vmatprep.subr.bf16.mxu0 %v12839_v55  ;;  %11697 = vmatprep.subr.bf16.mxu1 %v12966_v13  ;;  %v10540_v55 = vcombine.low %v15377_v9, %v4698_v18  ;;  %v12866_v8 = vld [vmem:[%s17097_s1 + $0xe74] ss:$8 sps:$4 sm:$0xff]   ;;  %v15475_v18 = vld [vmem:[%s17097_s1 + $0x1160] ss:$8 sps:$4 sm:$0xff]  }
 0x212   : > { %v15495_v13 = vld [vmem:[%s17097_s1 + $0x1174] ss:$8 sps:$4 sm:$0xff]  }
 0x213   : > { %11713 = vmatpush1.bf16.msra.mxu1 %v12964_v23  ;;  %v12875_v23 = vld [vmem:[%s17097_s1 + $0xea0] ss:$8 sps:$4 sm:$0xff]  }
 0x214   : > { %6089 = vmatpush1.bf16.msra.mxu0 %v12837_v48  ;;  %11698 = vmatprep.subr.bf16.mxu1 %v15413_v41  ;;  %v15434_v48 = vld [vmem:[%s17097_s1 + $0x1140] ss:$8 sps:$4 sm:$0xff]  }
 0x215   : > { %6090 = vmatprep.subr.bf16.mxu0 %v12845_v26  ;;  %v4900_v26 = vrot.slane %v10540_v55, 2  ;;  %v15528_v55 = vld [vmem:[%s17097_s1 + $0x1190] ss:$8 sps:$4 sm:$0xff]  }
 0x217   : > { %5382 = vmatmul.mubr.bf16.gmra.mrb[4].mxu0 %v4877_v12  ;;  %11714 = vmatpush1.bf16.msra.mxu1 %v15408_v37  ;;  %v5548_v12 = vshrl.u32 %v15084_v56, 16 }
 0x218   : > { %6091 = vmatpush1.bf16.msra.mxu0 %v12843_v6  ;;  %5391 = vmatprep.mubr.bf16.mxu0 %v4887_v52  ;;  %v5551_v6 = vshll.u32 %v15084_v56, 16  ;;  %v5559_v52 = vshll.u32 %v15087_v45, 16  ;;  %v4901_v56 = vsel %vm4082_vm3, %v4892_v60, %v4900_v26 }
 0x219   : > { %6092 = vmatprep.subr.bf16.mxu0 %v12848_v39  ;;  %11699 = vmatprep.subr.bf16.mxu1 %v15429_v44  ;;  %v5556_v39 = vshrl.u32 %v15087_v45, 16  ;;  %v12869_v45 = vld [vmem:[%s17097_s1 + $0xe80] ss:$8 sps:$4 sm:$0xff]   ;;  %v5550_v47 = vrot.slane %v5548_v12, 2  ;;  %v12884_v12 = vld [vmem:[%s17097_s1 + $0xed0] ss:$8 sps:$4 sm:$0xff]  }
 0x21a   : > { %v5561_v3 = vrot.slane %v5559_v52, 3  ;;  %v5534_v52 = vshll.u32 %v15131_v22, 16 }
 0x21b   : > { %11715 = vmatpush1.bf16.msra.mxu1 %v15434_v48  ;;  %v5558_v7 = vrot.slane %v5556_v39, 2  ;;  %v5531_v39 = vshrl.u32 %v15131_v22, 16  ;;  %v15575_v22 = vld [vmem:[%s17097_s1 + $0x11b4] ss:$8 sps:$4 sm:$0xff]  }
 0x21c   : > { %6093 = vmatpush1.bf16.msra.mxu0 %v12846_v42  ;;  %11700 = vmatprep.subr.bf16.mxu1 %v15456_v19  ;;  %v12874_v42 = vld [vmem:[%s17097_s1 + $0xe94] ss:$8 sps:$4 sm:$0xff]  }
 0x21d   : > { %6094 = vmatprep.subr.bf16.mxu0 %v12854_v38  ;;  %v5553_v38 = vrot.slane %v5551_v6, 3  ;;  %v12889_v6 = vld [vmem:[%s17097_s1 + $0xee4] ss:$8 sps:$4 sm:$0xff]  }
 0x21f   : > { %5392 = vmatmul.mubr.bf16.gmra.mrb[8].mxu0 %v4885_v11  ;;  %11716 = vmatpush1.bf16.msra.mxu1 %v15451_v54  ;;  %v12872_v11 = vld [vmem:[%s17097_s1 + $0xe90] ss:$8 sps:$4 sm:$0xff]  }
 0x220   : > { %6095 = vmatpush1.bf16.msra.mxu0 %v12852_v36  ;;  %5401 = vmatprep.mubr.bf16.mxu0 %v4895_v30  ;;  %v12877_v36 = vld [vmem:[%s17097_s1 + $0xea4] ss:$8 sps:$4 sm:$0xff]   ;;  %v15484_v30 = vor.u32 %v5561_v3, %v5558_v7  ;;  %v5533_v7 = vrot.slane %v5531_v39, 2  ;;  %v5536_v3 = vrot.slane %v5534_v52, 3  ;;  %v5647_v39 = vshll.u32 %v15164_v61, 16 }
 0x221   : > { %6096 = vmatprep.subr.bf16.mxu0 %v12857_v10  ;;  %11701 = vmatprep.subr.bf16.mxu1 %v15470_v32  ;;  %v5554_v10 = vor.u32 %v5553_v38, %v5550_v47  ;;  %v5611_v47 = vshll.u32 %v15137_v63, 16  ;;  %v15570_v38 = vld [vmem:[%s17097_s1 + $0x11b0] ss:$8 sps:$4 sm:$0xff]   ;;  %v12895_v52 = vld [vmem:[%s17097_s1 + $0xf04] ss:$8 sps:$4 sm:$0xff]  }
 0x223   : > { %11717 = vmatpush1.bf16.msra.mxu1 %v15475_v18  ;;  %v5563_v60 = vsel %vm5529_vm4, %v5554_v10, %v15484_v30 }
 0x224   : > { %6097 = vmatpush1.bf16.msra.mxu0 %v12855_v51  ;;  %11702 = vmatprep.subr.bf16.mxu1 %v15495_v13  ;;  %v12880_v51 = vld [vmem:[%s17097_s1 + $0xeb4] ss:$8 sps:$4 sm:$0xff]  }
 0x225   : > { %6098 = vmatprep.subr.bf16.mxu0 %v12863_v50  ;;  %v15510_v50 = vld [vmem:[%s17097_s1 + $0x1184] ss:$8 sps:$4 sm:$0xff]  }
 0x227   : > { %5402 = vmatmul.mubr.bf16.gmra.mrb[12].mxu0 %v4893_v15  ;;  %11718 = vmatpush1.bf16.msra.mxu1 %v15490_v49  ;;  %v12878_v15 = vld [vmem:[%s17097_s1 + $0xeb0] ss:$8 sps:$4 sm:$0xff]  }
 0x228   : > { %6099 = vmatpush1.bf16.msra.mxu0 %v12861_v58  ;;  %5411 = vmatprep.mubr.bf16.mxu0 %v4903_v27  ;;  %v12883_v58 = vld [vmem:[%s17097_s1 + $0xec4] ss:$8 sps:$4 sm:$0xff]   ;;  %v12881_v27 = vld [vmem:[%s17097_s1 + $0xec0] ss:$8 sps:$4 sm:$0xff]  }
 0x229   : > { %6100 = vmatprep.subr.bf16.mxu0 %v12866_v8  ;;  %11703 = vmatprep.subr.bf16.mxu1 %v15510_v50  ;;  %v15533_v8 = vld [vmem:[%s17097_s1 + $0x1194] ss:$8 sps:$4 sm:$0xff]  }
 0x22c   : > { %6101 = vmatpush1.bf16.msra.mxu0 %v12864_v62  ;;  %v12886_v62 = vld [vmem:[%s17097_s1 + $0xed4] ss:$8 sps:$4 sm:$0xff]  }
 0x22d   : > { %6102 = vmatprep.subr.bf16.mxu0 %v12871_v40  ;;  %v15551_v40 = vld [vmem:[%s17097_s1 + $0x11a4] ss:$8 sps:$4 sm:$0xff]  }
 0x22f   : > { %5412 = vmatmul.mubr.bf16.gmra.mrb[16].mxu0 %v4901_v56  ;;  %v5539_v56 = vshrl.u32 %v15134_v43, 16 }
 0x230   : > { %6103 = vmatpush1.bf16.msra.mxu0 %v12869_v45  ;;  %5421 = vmatprep.mubr.bf16.mxu0 %v4902_v29  ;;  %v15515_v29 = vld [vmem:[%s17097_s1 + $0x1180] ss:$8 sps:$4 sm:$0xff]   ;;  %v5542_v45 = vshll.u32 %v15134_v43, 16 }
 0x231   : > { %6104 = vmatprep.subr.bf16.mxu0 %v12874_v42  ;;  %11719 = vmatpush1.bf16.msra.mxu1 %v15515_v29  ;;  %v5608_v42 = vshrl.u32 %v15137_v63, 16  ;;  %v12887_v43 = vld [vmem:[%s17097_s1 + $0xee0] ss:$8 sps:$4 sm:$0xff]   ;;  %v12892_v63 = vld [vmem:[%s17097_s1 + $0xef4] ss:$8 sps:$4 sm:$0xff]  }
 0x232   : > { %11704 = vmatprep.subr.bf16.mxu1 %v15533_v8 }
 0x233   : > { %v5610_v10 = vrot.slane %v5608_v42, 2 }
 0x234   : > { %6105 = vmatpush1.bf16.msra.mxu0 %v12872_v11  ;;  %v5541_v11 = vrot.slane %v5539_v56, 2 }
 0x235   : > { %6106 = vmatprep.subr.bf16.mxu0 %v12877_v36  ;;  %11720 = vmatpush1.bf16.msra.mxu1 %v15528_v55  ;;  %v5544_v36 = vrot.slane %v5542_v45, 3  ;;  %v15615_v45 = vld [vmem:[%s17097_s1 + $0x11d4] ss:$8 sps:$4 sm:$0xff]  }
 0x236   : > { %11705 = vmatprep.subr.bf16.mxu1 %v15551_v40  ;;  %17146 = vst [vmem:[#allocation8_spill] sm:$0xff] %v15615_v45 }
 0x237   : > { %5422 = vmatmul.mubr.bf16.gmra.mrb[48].mxu0 %v4900_v26  ;;  %v15546_v26 = vld [vmem:[%s17097_s1 + $0x11a0] ss:$8 sps:$4 sm:$0xff]  }
 0x238   : > { %6107 = vmatpush1.bf16.msra.mxu0 %v12875_v23  ;;  %6118 = vmatprep.mubr.bf16.mxu0 %v5563_v60  ;;  %v5613_v23 = vrot.slane %v5611_v47, 3  ;;  %v15593_v60 = vld [vmem:[%s17097_s1 + $0x11c4] ss:$8 sps:$4 sm:$0xff]  }
 0x239   : > { %6108 = vmatprep.subr.bf16.mxu0 %v12880_v51  ;;  %11721 = vmatpush1.bf16.msra.mxu1 %v15546_v26  ;;  %v15588_v51 = vld [vmem:[%s17097_s1 + $0x11c0] ss:$8 sps:$4 sm:$0xff]   ;;  %17144 = vst [vmem:[#allocation6_spill] sm:$0xff] %v15593_v60 }
 0x23a   : > { %11706 = vmatprep.subr.bf16.mxu1 %v15575_v22  ;;  %17143 = vst [vmem:[#allocation5_spill] sm:$0xff] %v15588_v51  ;;  %v5614_v56 = vor.u32 %v5613_v23, %v5610_v10 }
 0x23c   : > { %6109 = vmatpush1.bf16.msra.mxu0 %v12878_v15  ;;  %v5599_v15 = vshrl.u32 %v15157_v46, 16 }
 0x23d   : > { %6110 = vmatprep.subr.bf16.mxu0 %v12883_v58  ;;  %11722 = vmatpush1.bf16.msra.mxu1 %v15570_v38  ;;  %v5602_v58 = vshll.u32 %v15157_v46, 16  ;;  %v15610_v46 = vld [vmem:[%s17097_s1 + $0x11d0] ss:$8 sps:$4 sm:$0xff]  }
 0x23e   : > { %11707 = vmatprep.subr.bf16.mxu1 %v15593_v60  ;;  %17145 = vst [vmem:[#allocation7_spill] sm:$0xff] %v15610_v46  ;;  %v5601_v47 = vrot.slane %v5599_v15, 2  ;;  %v12898_v15 = vld [vmem:[%s17097_s1 + $0xf14] ss:$8 sps:$4 sm:$0xff]  }
 0x240   : > { %6111 = vmatpush1.bf16.msra.mxu0 %v12881_v27  ;;  %v12890_v27 = vld [vmem:[%s17097_s1 + $0xef0] ss:$8 sps:$4 sm:$0xff]  }
 0x241   : > { %6112 = vmatprep.subr.bf16.mxu0 %v12886_v62  ;;  %v5537_v62 = vor.u32 %v5536_v3, %v5533_v7  ;;  %11723 = vmatpush1.bf16.msra.mxu1 %v15588_v51  ;;  %v12893_v3 = vld [vmem:[%s17097_s1 + $0xf00] ss:$8 sps:$4 sm:$0xff]   ;;  %v5649_v51 = vrot.slane %v5647_v39, 3  ;;  %v5638_v39 = vshll.u32 %v15175_v14, 16 }
 0x242   : > { %11708 = vmatprep.subr.bf16.mxu1 %v15615_v45 }
 0x244   : > { %6113 = vmatpush1.bf16.msra.mxu0 %v12884_v12  ;;  %v5545_v12 = vor.u32 %v5544_v36, %v5541_v11 }
 0x245   : > { %6114 = vmatprep.subr.bf16.mxu0 %v12889_v6  ;;  %v5644_v6 = vshrl.u32 %v15164_v61, 16  ;;  %11724 = vmatpush1.bf16.msra.mxu1 %v15610_v46 }
 0x246   : > { %v5546_v11 = vsel %vm5529_vm4, %v5537_v62, %v5545_v12  ;;  %v15639_v62 = vld [vmem:[%s17097_s1 + $0x11e4] ss:$8 sps:$4 sm:$0xff]  }
 0x247   : > { %v5646_v23 = vrot.slane %v5644_v6, 2  ;;  %17147 = vst [vmem:[#allocation9_spill] sm:$0xff] %v15639_v62  ;;  %v15644_v6 = vld [vmem:[%s17097_s1 + $0x11e0] ss:$8 sps:$4 sm:$0xff]   ;;  %11709 = vmatprep.subr.bf16.mxu1 %v15639_v62  ;;  %v17122_v62 = vrot.slane %v15294_v4, 3 }
 0x248   : > { %6115 = vmatpush1.bf16.msra.mxu0 %v12887_v43  ;;  %v5604_v43 = vrot.slane %v5602_v58, 3  ;;  %17148 = vst [vmem:[#allocation3_spill] sm:$0xff] %v15644_v6 }
 0x249   : > { %6116 = vmatprep.subr.bf16.mxu0 %v12892_v63  ;;  %v15619_v61 = vpop.f32.mrb[36].mxu1  ;;  %11725 = vmatpush1.bf16.msra.mxu1 %v15644_v6 }
 0x24a   : > { %v15617_v42 = vpop.f32.mrb[36].mxu0  ;;  %v15623_v7 = vpop.f32.mrb[37].mxu1 }
 0x24b   : > { %v15621_v63 = vpop.f32.mrb[37].mxu0  ;;  %v2274_v10 = vpop.f32.mrb[38].mxu1 }
 0x24c   : > { %6117 = vmatpush1.bf16.msra.mxu0 %v12890_v27  ;;  %v4559_v36 = vpop.f32.mrb[38].mxu0  ;;  %v2275_v60 = vpop.f32.mrb[39].mxu1  ;;  %v5615_v27 = vsel %vm5529_vm4, %v15484_v30, %v5614_v56  ;;  %v12896_v30 = vld [vmem:[%s17097_s1 + $0xf10] ss:$8 sps:$4 sm:$0xff]  }
 0x24d   : > { %6177 = vmatprep.subr.bf16.mxu0 %v12895_v52  ;;  %v4560_v58 = vpop.f32.mrb[39].mxu0  ;;  %v5605_v36 = vor.u32 %v5604_v43, %v5601_v47  ;;  %v5635_v60 = vshrl.u32 %v15175_v14, 16  ;;  %v12901_v52 = vld [vmem:[%s17097_s1 + $0xf24] ss:$8 sps:$4 sm:$0xff]   ;;  %v5650_v47 = vor.u32 %v5649_v51, %v5646_v23  ;;  %v5680_v43 = vshrl.u32 %v15185_v33, 16 }
 0x24e   : > { %v15661_v14 = vld [vmem:[%s17097_s1 + $0x11f0] ss:$8 sps:$4 sm:$0xff]   ;;  %v6386_v58 = vrot.slane %v15297_v25, 3 }
 0x24f   : > { %6119 = vmatmul.mubr.bf16.vlgmr.msra.gmra.mrb[0].mxu0 %v5546_v11  ;;  %v5683_v11 = vshll.u32 %v15185_v33, 16  ;;  %17149 = vst [vmem:[#allocation4_spill] sm:$0xff] %v15661_v14  ;;  %v5606_v10 = vsel %vm5529_vm4, %v5545_v12, %v5605_v36  ;;  %v5452_v51 = vld [vmem:[%s13438_s17 + $0xd0] sm:$0x77]  ;;  %v5637_v23 = vrot.slane %v5635_v60, 2  ;;  %v5651_v6 = vsel %vm5529_vm4, %v5614_v56, %v5650_v47 }
 0x250   : > { %6178 = vmatpush1.bf16.msra.mxu0 %v12893_v3  ;;  %6128 = vmatprep.mubr.bf16.mxu0 %v5615_v27  ;;  %v15666_v3 = vld [vmem:[%s17097_s1 + $0x11f4] ss:$8 sps:$4 sm:$0xff]   ;;  %v12899_v27 = vld [vmem:[%s17097_s1 + $0xf20] ss:$8 sps:$4 sm:$0xff]   ;;  %v6384_v12 = vrot.slane %v15322_v1, 3 }
 0x251   : > { %6179 = vmatprep.subr.bf16.mxu0 %v12898_v15  ;;  %17150 = vst [vmem:[#allocation10_spill] sm:$0xff] %v15666_v3  ;;  %v5640_v15 = vrot.slane %v5638_v39, 3  ;;  %11710 = vmatprep.subr.bf16.mxu1 %v15666_v3  ;;  %v12904_v60 = vld [vmem:[%s17097_s1 + $0xf34] ss:$8 sps:$4 sm:$0xff]   ;;  %v5682_v39 = vrot.slane %v5680_v43, 2  ;;  %v5685_v33 = vrot.slane %v5683_v11, 3 }
 0x252   : > { %11726 = vmatpush1.bf16.msra.mxu1 %v15661_v14  ;;  %v17151_v3 = vrot.slane %v15247_v21, 3  ;;  %v12902_v43 = vld [vmem:[%s17097_s1 + $0xf30] ss:$8 sps:$4 sm:$0xff]   ;;  %v5671_v11 = vshrl.u32 %v15209_v53, 16  ;;  %v5674_v14 = vshll.u32 %v15209_v53, 16 }
 0x253   : > { %v5641_v46 = vor.u32 %v5640_v15, %v5637_v23  ;;  %v6394_v15 = vrot.slane %v15332_v57, 3  ;;  %v12905_v53 = vld [vmem:[%s17097_s1 + $0xf40] ss:$8 sps:$4 sm:$0xff]  }
 0x254   : > { %6180 = vmatpush1.bf16.msra.mxu0 %v12896_v30  ;;  %v15683_v30 = vcombine.high %v15201_v16, %v5452_v51  ;;  %v6387_v56 = vsel %vm6367_vm5, %v17151_v3, %v6386_v58  ;;  %v12907_v3 = vld [vmem:[%s17097_s1 + $0xf44] ss:$8 sps:$4 sm:$0xff]  }
 0x255   : > { %6181 = vmatprep.subr.bf16.mxu0 %v12901_v52  ;;  %6889 = vmatprep.mubr.bf16.mxu1 %v6387_v56  ;;  %v6385_v52 = vsel %vm6367_vm5, %v17122_v62, %v6384_v12  ;;  %v5686_v56 = vor.u32 %v5685_v33, %v5682_v39  ;;  %v5642_v23 = vsel %vm5529_vm4, %v5605_v36, %v5641_v46  ;;  %v6392_v33 = vrot.slane %v15347_v24, 3  ;;  %v12910_v39 = vld [vmem:[%s17097_s1 + $0xf54] ss:$8 sps:$4 sm:$0xff]  }
 0x256   : > { %v5716_v62 = vshrl.u32 %v15683_v30, 16  ;;  %6890 = vmatmul.mubr.bf16.vlgmr.msra.gmra.mrb[44].mxu1 %v6385_v52  ;;  %v6395_v45 = vsel %vm6367_vm5, %v6386_v58, %v6394_v15 }
 0x257   : > { %6129 = vmatmul.mubr.bf16.gmra.mrb[4].mxu0 %v5606_v10  ;;  %v5719_v10 = vshll.u32 %v15683_v30, 16  ;;  %v5687_v36 = vsel %vm5529_vm4, %v5650_v47, %v5686_v56  ;;  %6899 = vmatprep.mubr.bf16.mxu1 %v6395_v45 }
 0x258   : > { %6182 = vmatpush1.bf16.msra.mxu0 %v12899_v27  ;;  %6138 = vmatprep.mubr.bf16.mxu0 %v5651_v6  ;;  %v5673_v6 = vrot.slane %v5671_v11, 2  ;;  %v5676_v27 = vrot.slane %v5674_v14, 3  ;;  %v5718_v52 = vrot.slane %v5716_v62, 2  ;;  %v6393_v11 = vsel %vm6367_vm5, %v6384_v12, %v6392_v33  ;;  %v12913_v62 = vld [vmem:[%s17097_s1 + $0xf64] ss:$8 sps:$4 sm:$0xff]  }
 0x259   : > { %6183 = vmatprep.subr.bf16.mxu0 %v12904_v60  ;;  %v15708_v60 = vcombine.low %v15201_v16, %v5452_v51  ;;  %v12908_v16 = vld [vmem:[%s17097_s1 + $0xf50] ss:$8 sps:$4 sm:$0xff]   ;;  %v6402_v12 = vrot.slane %v15354_v0, 3 }
 0x25a   : > { %v5677_v14 = vor.u32 %v5676_v27, %v5673_v6 }
 0x25b   : > { %v5707_v51 = vshrl.u32 %v15708_v60, 16 }
 0x25c   : > { %6184 = vmatpush1.bf16.msra.mxu0 %v12902_v43  ;;  %v5721_v43 = vrot.slane %v5719_v10, 3 }
 0x25d   : > { %6185 = vmatprep.subr.bf16.mxu0 %v12907_v3  ;;  %v5710_v3 = vshll.u32 %v15708_v60, 16  ;;  %v5709_v6 = vrot.slane %v5707_v51, 2 }
 0x25e   : > { %v5722_v45 = vor.u32 %v5721_v43, %v5718_v52  ;;  %6900 = vmatmul.mubr.bf16.gmra.mrb[48].mxu1 %v6393_v11  ;;  %v12916_v52 = vld [vmem:[%s17097_s1 + $0xf74] ss:$8 sps:$4 sm:$0xff]   ;;  %v6403_v11 = vsel %vm6367_vm5, %v6394_v15, %v6402_v12  ;;  %v5585_v15 = vshll.u32 %v15244_v31, 16 }
 0x25f   : > { %6139 = vmatmul.mubr.bf16.gmra.mrb[8].mxu0 %v5642_v23  ;;  %v12911_v23 = vld [vmem:[%s17097_s1 + $0xf60] ss:$8 sps:$4 sm:$0xff]   ;;  %v5712_v27 = vrot.slane %v5710_v3, 3  ;;  %6909 = vmatprep.mubr.bf16.mxu1 %v6403_v11  ;;  %v5582_v3 = vshrl.u32 %v15244_v31, 16 }
 0x260   : > { %6186 = vmatpush1.bf16.msra.mxu0 %v12905_v53  ;;  %6148 = vmatprep.mubr.bf16.mxu0 %v5687_v36  ;;  %v5678_v53 = vsel %vm5529_vm4, %v5641_v46, %v5677_v14  ;;  %v5723_v43 = vsel %vm5529_vm4, %v5686_v56, %v5722_v45  ;;  %v12914_v46 = vld [vmem:[%s17097_s1 + $0xf70] ss:$8 sps:$4 sm:$0xff]   ;;  %v12919_v56 = vld [vmem:[%s17097_s1 + $0xf84] ss:$8 sps:$4 sm:$0xff]   ;;  %v12917_v31 = vld [vmem:[%s17097_s1 + $0xf80] ss:$8 sps:$4 sm:$0xff]  }
 0x261   : > { %6187 = vmatprep.subr.bf16.mxu0 %v12910_v39  ;;  %v15725_v47 = vpop.f32.mrb[0].mxu1  ;;  %v6400_v39 = vrot.slane %v15385_v2, 3  ;;  %v5713_v51 = vor.u32 %v5712_v27, %v5709_v6 }
 0x262   : > { %17152 = vst [vmem:[#allocation11_spill] sm:$0xff] %v15725_v47  ;;  %v15727_v58 = vpop.f32.mrb[1].mxu1 }
 0x263   : > { %17153 = vst [vmem:[#allocation12_spill] sm:$0xff] %v15727_v58  ;;  %v15730_v10 = vpop.f32.mrb[2].mxu1  ;;  %v5714_v11 = vsel %vm5529_vm4, %v5677_v14, %v5713_v51  ;;  %v5587_v58 = vrot.slane %v5585_v15, 3  ;;  %v12920_v14 = vld [vmem:[%s17097_s1 + $0xf90] ss:$8 sps:$4 sm:$0xff]  }
 0x264   : > { %17154 = vst [vmem:[#allocation13_spill] sm:$0xff] %v15730_v10  ;;  %6188 = vmatpush1.bf16.msra.mxu0 %v12908_v16  ;;  %v15737_v36 = vpop.f32.mrb[3].mxu1  ;;  %v5453_v16 = vld [vmem:[%s13438_s17 + $0xd8] sm:$0x77]  ;;  %v6401_v10 = vsel %vm6367_vm5, %v6392_v33, %v6400_v39  ;;  %v5593_v33 = vshll.u32 %v15247_v21, 16 }
 0x265   : > { %17155 = vst [vmem:[#allocation14_spill] sm:$0xff] %v15737_v36  ;;  %6189 = vmatprep.subr.bf16.mxu0 %v12913_v62  ;;  %v5590_v62 = vshrl.u32 %v15247_v21, 16  ;;  %v15762_v6 = vcombine.low %v15377_v9, %v5453_v16  ;;  %v5584_v36 = vrot.slane %v5582_v3, 2  ;;  %v12925_v3 = vld [vmem:[%s17097_s1 + $0xfa4] ss:$8 sps:$4 sm:$0xff]  }
 0x266   : > { %6910 = vmatmul.mubr.bf16.gmra.mrb[52].mxu1 %v6401_v10  ;;  %v5595_v47 = vrot.slane %v5593_v33, 3  ;;  %v12926_v33 = vld [vmem:[%s17097_s1 + $0xfb0] ss:$8 sps:$4 sm:$0xff]  }
 0x267   : > { %6149 = vmatmul.mubr.bf16.gmra.mrb[12].mxu0 %v5678_v53  ;;  %v6408_v10 = vrot.slane %v15762_v6, 3 }
 0x268   : > { %6190 = vmatpush1.bf16.msra.mxu0 %v12911_v23  ;;  %6158 = vmatprep.mubr.bf16.mxu0 %v5723_v43  ;;  %v15757_v23 = vcombine.high %v15377_v9, %v5453_v16  ;;  %v12922_v9 = vld [vmem:[%s17097_s1 + $0xf94] ss:$8 sps:$4 sm:$0xff]  }
 0x269   : > { %6191 = vmatprep.subr.bf16.mxu0 %v12916_v52  ;;  %v15759_v53 = vpop.f32.mrb[4].mxu1 }
 0x26a   : > { %v15764_v27 = vpop.f32.mrb[5].mxu1  ;;  %v6410_v52 = vrot.slane %v15757_v23, 3 }
 0x26b   : > { %17156 = vst [vmem:[#allocation15_spill] sm:$0xff] %v15764_v27  ;;  %v15770_v43 = vpop.f32.mrb[6].mxu1 }
 0x26c   : > { %6192 = vmatpush1.bf16.msra.mxu0 %v12914_v46  ;;  %17157 = vst [vmem:[#allocation16_spill] sm:$0xff] %v15770_v43  ;;  %v15777_v16 = vpop.f32.mrb[7].mxu1  ;;  %v5592_v46 = vrot.slane %v5590_v62, 2  ;;  %v6411_v27 = vsel %vm6367_vm5, %v6402_v12, %v6410_v52  ;;  %v6409_v43 = vsel %vm6367_vm5, %v6400_v39, %v6408_v10  ;;  %v12923_v62 = vld [vmem:[%s17097_s1 + $0xfa0] ss:$8 sps:$4 sm:$0xff]  }
 0x26d   : > { %6193 = vmatprep.subr.bf16.mxu0 %v12919_v56  ;;  %6919 = vmatprep.mubr.bf16.mxu1 %v6411_v27  ;;  %v5588_v56 = vor.u32 %v5587_v58, %v5584_v36  ;;  %v12928_v58 = vld [vmem:[%s17097_s1 + $0xfb4] ss:$8 sps:$4 sm:$0xff]   ;;  %v12933_v27 = vld [vmem:[%s17097_s1 + $0xfc4] ss:$8 sps:$4 sm:$0xff]  }
 0x26e   : > { %v15787_v15 = vor.u32 %v5595_v47, %v5592_v46  ;;  %6920 = vmatmul.mubr.bf16.gmra.mrb[56].mxu1 %v6409_v43  ;;  %v5568_v46 = vshll.u32 %v15291_v17, 16 }
 0x26f   : > { %6159 = vmatmul.mubr.bf16.gmra.mrb[16].mxu0 %v5714_v11  ;;  %6929 = vmatprep.mubr.bf16.mxu1 %v6410_v52  ;;  %v12936_v11 = vld [vmem:[%s17097_s1 + $0xfd4] ss:$8 sps:$4 sm:$0xff]  }
 0x270   : > { %6194 = vmatpush1.bf16.msra.mxu0 %v12917_v31  ;;  %6168 = vmatprep.mubr.bf16.mxu0 %v5722_v45  ;;  %v5597_v36 = vsel %vm5529_vm4, %v5588_v56, %v15787_v15  ;;  %v12934_v56 = vld [vmem:[%s17097_s1 + $0xfd0] ss:$8 sps:$4 sm:$0xff]  }
 0x271   : > { %6195 = vmatprep.subr.bf16.mxu0 %v12922_v9  ;;  %v15789_v12 = vpop.f32.mrb[8].mxu1 }
 0x272   : > { %v15791_v39 = vpop.f32.mrb[9].mxu1 }
 0x273   : > { %17158 = vst [vmem:[#allocation17_spill] sm:$0xff] %v15791_v39  ;;  %v15796_v45 = vpop.f32.mrb[10].mxu1 }
 0x274   : > { %6196 = vmatpush1.bf16.msra.mxu0 %v12920_v14  ;;  %17159 = vst [vmem:[#allocation18_spill] sm:$0xff] %v15796_v45  ;;  %v15801_v47 = vpop.f32.mrb[11].mxu1  ;;  %v5573_v14 = vshrl.u32 %v15294_v4, 16 }
 0x275   : > { %6197 = vmatprep.subr.bf16.mxu0 %v12925_v3  ;;  %17160 = vst [vmem:[#allocation19_spill] sm:$0xff] %v15801_v47  ;;  %v5576_v3 = vshll.u32 %v15294_v4, 16 }
 0x276   : > { %6930 = vmatmul.mubr.bf16.gmra.mrb[60].mxu1 %v6408_v10  ;;  %v5565_v10 = vshrl.u32 %v15291_v17, 16 }
 0x277   : > { %6169 = vmatmul.mubr.bf16.gmra.mrb[52].mxu0 %v5713_v51  ;;  %v12931_v51 = vld [vmem:[%s17097_s1 + $0xfc0] ss:$8 sps:$4 sm:$0xff]  }
 0x278   : > { %6198 = vmatpush1.bf16.msra.mxu0 %v12923_v62  ;;  %6209 = vmatprep.mubr.bf16.mxu0 %v5597_v36  ;;  %v12939_v62 = vld [vmem:[%s17097_s1 + $0xfe4] ss:$8 sps:$4 sm:$0xff]   ;;  %v5629_v36 = vshll.u32 %v15297_v25, 16 }
 0x279   : > { %6199 = vmatprep.subr.bf16.mxu0 %v12928_v58  ;;  %v15811_v52 = vpop.f32.mrb[12].mxu1  ;;  %v5626_v58 = vshrl.u32 %v15297_v25, 16  ;;  %v12942_v25 = vld [vmem:[%s17097_s1 + $0xff4] ss:$8 sps:$4 sm:$0xff]  }
 0x27a   : > { %17161 = vst [vmem:[#allocation20_spill] sm:$0xff] %v15811_v52  ;;  %v15813_v31 = vpop.f32.mrb[13].mxu1 }
 0x27b   : > { %17162 = vst [vmem:[#allocation21_spill] sm:$0xff] %v15813_v31  ;;  %v15818_v43 = vpop.f32.mrb[14].mxu1 }
 0x27c   : > { %6200 = vmatpush1.bf16.msra.mxu0 %v12926_v33  ;;  %17163 = vst [vmem:[#allocation22_spill] sm:$0xff] %v15818_v43  ;;  %v15823_v9 = vpop.f32.mrb[15].mxu1  ;;  %v5578_v43 = vrot.slane %v5576_v3, 3  ;;  %v5617_v3 = vshrl.u32 %v15322_v1, 16 }
 0x27d   : > { %6201 = vmatprep.subr.bf16.mxu0 %v12933_v27  ;;  %17164 = vst [vmem:[#allocation23_spill] sm:$0xff] %v15823_v9  ;;  %v5567_v27 = vrot.slane %v5565_v10, 2  ;;  %v5570_v9 = vrot.slane %v5568_v46, 3 }
 0x27f   : > { %v5571_v10 = vor.u32 %v5570_v9, %v5567_v27  ;;  %v5665_v9 = vshll.u32 %v15332_v57, 16 }
 0x280   : > { %6202 = vmatpush1.bf16.msra.mxu0 %v12931_v51  ;;  %v5575_v51 = vrot.slane %v5573_v14, 2  ;;  %v12940_v14 = vld [vmem:[%s17097_s1 + $0xff0] ss:$8 sps:$4 sm:$0xff]  }
 0x281   : > { %6203 = vmatprep.subr.bf16.mxu0 %v12936_v11  ;;  %v15837_v33 = vpop.f32.mrb[16].mxu1  ;;  %v12937_v11 = vld [vmem:[%s17097_s1 + $0xfe0] ss:$8 sps:$4 sm:$0xff]  }
 0x282   : > { %17165 = vst [vmem:[#allocation24_spill] sm:$0xff] %v15837_v33  ;;  %v15839_v17 = vpop.f32.mrb[17].mxu1  ;;  %v5628_v33 = vrot.slane %v5626_v58, 2  ;;  %v5579_v46 = vor.u32 %v5578_v43, %v5575_v51  ;;  %v5662_v58 = vshrl.u32 %v15332_v57, 16  ;;  %v5619_v57 = vrot.slane %v5617_v3, 2 }
 0x283   : > { %17166 = vst [vmem:[#allocation25_spill] sm:$0xff] %v15839_v17  ;;  %v15844_v31 = vpop.f32.mrb[18].mxu1  ;;  %v5631_v17 = vrot.slane %v5629_v36, 3 }
 0x284   : > { %6204 = vmatpush1.bf16.msra.mxu0 %v12934_v56  ;;  %17167 = vst [vmem:[#allocation26_spill] sm:$0xff] %v15844_v31  ;;  %v15846_v52 = vpop.f32.mrb[19].mxu1  ;;  %v5620_v56 = vshll.u32 %v15322_v1, 16  ;;  %v5580_v1 = vsel %vm5529_vm4, %v5571_v10, %v5579_v46  ;;  %v5667_v10 = vrot.slane %v5665_v9, 3 }
 0x285   : > { %6205 = vmatprep.subr.bf16.mxu0 %v12939_v62  ;;  %17168 = vst [vmem:[#allocation27_spill] sm:$0xff] %v15846_v52  ;;  %v12945_v62 = vld [vmem:[%s17097_s1 + $0x1004] ss:$8 sps:$4 sm:$0xff]   ;;  %v5632_v52 = vor.u32 %v5631_v17, %v5628_v33  ;;  %v12943_v33 = vld [vmem:[%s17097_s1 + $0x1000] ss:$8 sps:$4 sm:$0xff]  }
 0x286   : > { %v5622_v17 = vrot.slane %v5620_v56, 3  ;;  %v5656_v56 = vshll.u32 %v15347_v24, 16 }
 0x288   : > { %6206 = vmatpush1.bf16.msra.mxu0 %v12937_v11 }
 0x289   : > { %6207 = vmatprep.subr.bf16.mxu0 %v12942_v25  ;;  %v2361_v43 = vpop.f32.mrb[40].mxu1 }
 0x28a   : > { %v4646_v36 = vpop.f32.mrb[40].mxu0  ;;  %v2362_v27 = vadd.f32 %v2361_v43, %v15619_v61  ;;  %v2363_v11 = vpop.f32.mrb[41].mxu1 }
 0x28b   : > { %v4647_v51 = vadd.f32 %v4646_v36, %v15617_v42  ;;  %v4648_v31 = vpop.f32.mrb[41].mxu0  ;;  %v2364_v25 = vadd.f32 %v2363_v11, %v15623_v7  ;;  %v2365_v39 = vpop.f32.mrb[42].mxu1  ;;  %v12948_v42 = vld [vmem:[%s17097_s1 + $0x1014] ss:$8 sps:$4 sm:$0xff]   ;;  %v5633_v7 = vsel %vm5529_vm4, %v15787_v15, %v5632_v52  ;;  %v5653_v15 = vshrl.u32 %v15347_v24, 16 }
 0x28c   : > { %v4649_v47 = vadd.f32 %v4648_v31, %v15621_v63  ;;  %6208 = vmatpush1.bf16.msra.mxu0 %v12940_v14  ;;  %v4650_v45 = vpop.f32.mrb[42].mxu0  ;;  %v2388_v61 = vadd.f32 %v2362_v27, %v15312_v28  ;;  %v5664_v31 = vrot.slane %v5662_v58, 2  ;;  %v2366_v14 = vpop.f32.mrb[43].mxu1  ;;  %v12946_v28 = vld [vmem:[%s17097_s1 + $0x1010] ss:$8 sps:$4 sm:$0xff]   ;;  %v5701_v58 = vshll.u32 %v15354_v0, 16 }
 0x28d   : > { %6756 = vmatprep.subr.bf16.mxu0 %v12945_v62  ;;  %v4651_v63 = vpop.f32.mrb[43].mxu0  ;;  %v2389_v43 = vadd.f32 %v2364_v25, %v15325_v59  ;;  %v5623_v45 = vor.u32 %v5622_v17, %v5619_v57  ;;  %v5655_v11 = vrot.slane %v5653_v15, 2  ;;  %v5692_v57 = vshll.u32 %v15385_v2, 16  ;;  %v12963_v17 = vld [vmem:[%s17097_s1 + $0x1044] ss:$8 sps:$4 sm:$0xff]  }
 0x28e   : > { %v3165_v3 = vadd.f32 %v14982_v5, %v2388_v61  ;;  %v12951_v5 = vld [vmem:[%s17097_s1 + $0x1024] ss:$8 sps:$4 sm:$0xff]   ;;  %v5668_v59 = vor.u32 %v5667_v10, %v5664_v31  ;;  %v5703_v25 = vrot.slane %v5701_v58, 3  ;;  %v5734_v61 = vshrl.u32 %v15757_v23, 16  ;;  %v12961_v63 = vld [vmem:[%s17097_s1 + $0x1040] ss:$8 sps:$4 sm:$0xff]  }
 0x28f   : > { %6210 = vmatmul.mubr.bf16.vlgmr.msra.gmra.mrb[0].mxu0 %v5580_v1  ;;  %v3166_v39 = vadd.f32 %v14985_v20, %v2389_v43  ;;  %v5698_v20 = vshrl.u32 %v15354_v0, 16  ;;  %v5624_v24 = vsel %vm5529_vm4, %v5579_v46, %v5623_v45  ;;  %v5658_v1 = vrot.slane %v5656_v56, 3  ;;  %v12957_v0 = vld [vmem:[%s17097_s1 + $0x1034] ss:$8 sps:$4 sm:$0xff]   ;;  %v12975_v15 = vld [vmem:[%s17097_s1 + $0x1064] ss:$8 sps:$4 sm:$0xff]  }
 0x290   : > { %6757 = vmatpush1.bf16.msra.mxu0 %v12943_v33  ;;  %6219 = vmatprep.mubr.bf16.mxu0 %v5633_v7  ;;  %v4003_v62 = vadd.f32 %v15309_v35, %v3165_v3  ;;  %v12949_v35 = vld [vmem:[%s17097_s1 + $0x1020] ss:$8 sps:$4 sm:$0xff]   ;;  %v5689_v33 = vshrl.u32 %v15385_v2, 16  ;;  %v5694_v10 = vrot.slane %v5692_v57, 3  ;;  %v12969_v2 = vld [vmem:[%s17097_s1 + $0x1054] ss:$8 sps:$4 sm:$0xff]  }
 0x291   : > { %6758 = vmatprep.subr.bf16.mxu0 %v12948_v42  ;;  %v4004_v9 = vadd.f32 %v15315_v34, %v3166_v39  ;;  %v5669_v34 = vsel %vm5529_vm4, %v5632_v52, %v5668_v59  ;;  %v5659_v46 = vor.u32 %v5658_v1, %v5655_v11  ;;  %v5737_v42 = vshll.u32 %v15757_v23, 16  ;;  %v12967_v23 = vld [vmem:[%s17097_s1 + $0x1050] ss:$8 sps:$4 sm:$0xff]   ;;  %v6290_v11 = vld [vmem:[%s13438_s17 + $0x20] sm:$0x88] }
 0x292   : > { %v15890_v36 = vadd.f32 %v4647_v51, %v4003_v62  ;;  %v5700_v51 = vrot.slane %v5698_v20, 2  ;;  %v5691_v31 = vrot.slane %v5689_v33, 2  ;;  %v5736_v43 = vrot.slane %v5734_v61, 2  ;;  %v13221_v57 = vld [vmem:[%s13438_s17 + $0x44] ss:$16 sps:$4 sm:$0xff]  }
 0x293   : > { %v15892_v27 = vadd.f32 %v4649_v47, %v4004_v9  ;;  %v12955_v47 = vld [vmem:[%s17097_s1 + $0x1030] ss:$8 sps:$4 sm:$0xff]   ;;  %v5660_v7 = vsel %vm5529_vm4, %v5623_v45, %v5659_v46  ;;  %v5739_v3 = vrot.slane %v5737_v42, 3  ;;  %v5728_v45 = vshll.u32 %v15762_v6, 16  ;;  %v13007_v61 = vld [vmem:[%s17097_s1 + $0x10b4] ss:$8 sps:$4 sm:$0xff]  }
 0x294   : > { %6759 = vmatpush1.bf16.msra.mxu0 %v12946_v28  ;;  %v5704_v52 = vor.u32 %v5703_v25, %v5700_v51  ;;  %v5695_v39 = vor.u32 %v5694_v10, %v5691_v31  ;;  %v5725_v28 = vshrl.u32 %v15762_v6, 16  ;;  %v12981_v6 = vld [vmem:[%s17097_s1 + $0x1074] ss:$8 sps:$4 sm:$0xff]   ;;  %v12979_v9 = vld [vmem:[%s17097_s1 + $0x1070] ss:$8 sps:$4 sm:$0xff]  }
 0x295   : > { %6760 = vmatprep.subr.bf16.mxu0 %v12951_v5  ;;  %v5740_v56 = vor.u32 %v5739_v3, %v5736_v43  ;;  %v12973_v5 = vld [vmem:[%s17097_s1 + $0x1060] ss:$8 sps:$4 sm:$0xff]   ;;  %v5730_v20 = vrot.slane %v5728_v45, 3  ;;  %v13220_v51 = vld [vmem:[%s13438_s17 + $0x30] sm:$0xff] }
 0x296   : > { %v5705_v14 = vsel %vm5529_vm4, %v5668_v59, %v5704_v52  ;;  %v5696_v62 = vsel %vm5529_vm4, %v5659_v46, %v5695_v39  ;;  %v5727_v59 = vrot.slane %v5725_v28, 2  ;;  %v10803_v25 = vcombine.high %v6290_v11, %v13220_v51  ;;  %v13001_v46 = vld [vmem:[%s17097_s1 + $0x10a4] ss:$8 sps:$4 sm:$0xff]   ;;  %v13011_v31 = vld [vmem:[%s17097_s1 + $0x10c0] ss:$8 sps:$4 sm:$0xff]  }
 0x297   : > { %6220 = vmatmul.mubr.bf16.gmra.mrb[4].mxu0 %v5624_v24  ;;  %v5741_v58 = vsel %vm5529_vm4, %v5704_v52, %v5740_v56  ;;  %v12999_v52 = vld [vmem:[%s17097_s1 + $0x10a0] ss:$8 sps:$4 sm:$0xff]   ;;  %v13019_v10 = vld [vmem:[%s17097_s1 + $0x10d4] ss:$8 sps:$4 sm:$0xff]   ;;  %v10802_v3 = vcombine.low %v6290_v11, %v13220_v51 }
 0x298   : > { %6761 = vmatpush1.bf16.msra.mxu0 %v12949_v35  ;;  %6229 = vmatprep.mubr.bf16.mxu0 %v5669_v34  ;;  %v5731_v24 = vor.u32 %v5730_v20, %v5727_v59  ;;  %v12989_v35 = vld [vmem:[%s17097_s1 + $0x1084] ss:$8 sps:$4 sm:$0xff]   ;;  %v12995_v34 = vld [vmem:[%s17097_s1 + $0x1094] ss:$8 sps:$4 sm:$0xff]   ;;  %v6371_v33 = vrot.slane %v10803_v25, 3 }
 0x299   : > { %6762 = vmatprep.subr.bf16.mxu0 %v12957_v0  ;;  %v12987_v0 = vld [vmem:[%s17097_s1 + $0x1080] ss:$8 sps:$4 sm:$0xff]   ;;  %v6368_v28 = vrot.slane %v10802_v3, 3  ;;  %v13229_v25 = vld [vmem:[%s17097_s1 + $0x1110] ss:$8 sps:$4 sm:$0xff]  }
 0x29a   : > { %v5732_v1 = vsel %vm5529_vm4, %v5695_v39, %v5731_v24  ;;  %v13023_v43 = vld [vmem:[%s17097_s1 + $0x10e0] ss:$8 sps:$4 sm:$0xff]   ;;  %v13029_v39 = vld [vmem:[%s17097_s1 + $0x10f0] ss:$8 sps:$4 sm:$0xff]  }
 0x29b   : > { %v13222_v45 = vld [vmem:[%s13438_s17 + $0x40] ss:$16 sps:$4 sm:$0xff]  }
 0x29c   : > { %6763 = vmatpush1.bf16.msra.mxu0 %v12955_v47  ;;  %v12993_v47 = vld [vmem:[%s17097_s1 + $0x1090] ss:$8 sps:$4 sm:$0xff]   ;;  %v17177_v3 = vld [vmem:[#allocation4_spill] sm:$0xff] }
 0x29d   : > { %6764 = vmatprep.subr.bf16.mxu0 %v12963_v17  ;;  %v6372_v17 = vrot.slane %v13221_v57, 3  ;;  %v13226_v11 = vld [vmem:[%s13438_s17 + $0x60] ss:$16 sps:$4 sm:$0xff]  }
 0x29e   : > { %v13231_v57 = vld [vmem:[%s17097_s1 + $0x1120] ss:$8 sps:$4 sm:$0xff]  }
 0x29f   : > { %6230 = vmatmul.mubr.bf16.gmra.mrb[8].mxu0 %v5660_v7  ;;  %v6373_v42 = vsel %vm6367_vm5, %v6371_v33, %v6372_v17  ;;  %v13005_v7 = vld [vmem:[%s17097_s1 + $0x10b0] ss:$8 sps:$4 sm:$0xff]  }
 0x2a0   : > { %6765 = vmatpush1.bf16.msra.mxu0 %v12961_v63  ;;  %6239 = vmatprep.mubr.bf16.mxu0 %v5705_v14  ;;  %v13013_v63 = vld [vmem:[%s17097_s1 + $0x10c4] ss:$8 sps:$4 sm:$0xff]  }
 0x2a1   : > { %6766 = vmatprep.subr.bf16.mxu0 %v12969_v2  ;;  %v13017_v2 = vld [vmem:[%s17097_s1 + $0x10d0] ss:$8 sps:$4 sm:$0xff]   ;;  %v13025_v14 = vld [vmem:[%s17097_s1 + $0x10e4] ss:$8 sps:$4 sm:$0xff]  }
 0x2a4   : > { %6767 = vmatpush1.bf16.msra.mxu0 %v12967_v23  ;;  %v13031_v23 = vld [vmem:[%s17097_s1 + $0x10f4] ss:$8 sps:$4 sm:$0xff]  }
 0x2a5   : > { %6768 = vmatprep.subr.bf16.mxu0 %v12975_v15  ;;  %v6369_v15 = vrot.slane %v13222_v45, 3 }
 0x2a7   : > { %6240 = vmatmul.mubr.bf16.gmra.mrb[12].mxu0 %v5696_v62  ;;  %v6370_v20 = vsel %vm6367_vm5, %v6368_v28, %v6369_v15 }
 0x2a8   : > { %6769 = vmatpush1.bf16.msra.mxu0 %v12973_v5  ;;  %6249 = vmatprep.mubr.bf16.mxu0 %v5741_v58  ;;  %v13224_v58 = vld [vmem:[%s17097_s1 + $0x1104] ss:$8 sps:$4 sm:$0xff]  }
 0x2a9   : > { %6770 = vmatprep.subr.bf16.mxu0 %v12981_v6 }
 0x2ac   : > { %6771 = vmatpush1.bf16.msra.mxu0 %v12979_v9 }
 0x2ad   : > { %6772 = vmatprep.subr.bf16.mxu0 %v12989_v35  ;;  %v13225_v35 = vld [vmem:[%s17097_s1 + $0x1100] ss:$8 sps:$4 sm:$0xff]  }
 0x2af   : > { %6250 = vmatmul.mubr.bf16.gmra.mrb[16].mxu0 %v5732_v1  ;;  %v6380_v1 = vrot.slane %v13226_v11, 3 }
 0x2b0   : > { %6773 = vmatpush1.bf16.msra.mxu0 %v12987_v0  ;;  %6259 = vmatprep.mubr.bf16.mxu0 %v5740_v56  ;;  %v13223_v56 = vld [vmem:[%s13438_s17 + $0x64] ss:$16 sps:$4 sm:$0xff]  }
 0x2b1   : > { %6774 = vmatprep.subr.bf16.mxu0 %v12995_v34  ;;  %v6382_v62 = vrot.slane %v13223_v56, 3  ;;  %v13227_v0 = vld [vmem:[%s17097_s1 + $0x1114] ss:$8 sps:$4 sm:$0xff]  }
 0x2b2   : > { %v13228_v34 = vld [vmem:[%s13438_s17 + $0x84] ss:$16 sps:$4 sm:$0xff]  }
 0x2b3   : > { %v6383_v9 = vsel %vm6367_vm5, %v6372_v17, %v6382_v62  ;;  %v6390_v51 = vrot.slane %v13228_v34, 3  ;;  %v13232_v17 = vld [vmem:[%s13438_s17 + $0x80] ss:$16 sps:$4 sm:$0xff]  }
 0x2b4   : > { %6775 = vmatpush1.bf16.msra.mxu0 %v12993_v47  ;;  %v6381_v47 = vsel %vm6367_vm5, %v6369_v15, %v6380_v1 }
 0x2b5   : > { %6776 = vmatprep.subr.bf16.mxu0 %v13001_v46  ;;  %v13230_v46 = vld [vmem:[%s17097_s1 + $0x1124] ss:$8 sps:$4 sm:$0xff]   ;;  %v6391_v33 = vsel %vm6367_vm5, %v6382_v62, %v6390_v51 }
 0x2b7   : > { %6260 = vmatmul.mubr.bf16.gmra.mrb[56].mxu0 %v5731_v24 }
 0x2b8   : > { %6777 = vmatpush1.bf16.msra.mxu0 %v12999_v52  ;;  %6788 = vmatprep.mubr.bf16.mxu0 %v6373_v42  ;;  %v6388_v52 = vrot.slane %v13232_v17, 3 }
 0x2b9   : > { %6778 = vmatprep.subr.bf16.mxu0 %v13007_v61  ;;  %v13233_v61 = vld [vmem:[%s13438_s17 + $0xa4] ss:$16 sps:$4 sm:$0xff]  }
 0x2ba   : > { %v6398_v42 = vrot.slane %v13233_v61, 3  ;;  %v13045_v61 = vld [vmem:[%s17099_s3 + $0xc0] sm:$0xff]  }
 0x2bb   : > { %11335 = vmatprep.subr.bf16.mxu1 %v13045_v61 }
 0x2bc   : > { %6779 = vmatpush1.bf16.msra.mxu0 %v13005_v7  ;;  %v6389_v7 = vsel %vm6367_vm5, %v6380_v1, %v6388_v52 }
 0x2bd   : > { %6780 = vmatprep.subr.bf16.mxu0 %v13013_v63  ;;  %v6399_v63 = vsel %vm6367_vm5, %v6390_v51, %v6398_v42 }
 0x2c0   : > { %6781 = vmatpush1.bf16.msra.mxu0 %v13011_v31  ;;  %v13234_v31 = vld [vmem:[%s13438_s17 + $0xa0] ss:$16 sps:$4 sm:$0xff]  }
 0x2c1   : > { %6782 = vmatprep.subr.bf16.mxu0 %v13019_v10  ;;  %v6396_v10 = vrot.slane %v13234_v31, 3  ;;  %v13049_v31 = vld [vmem:[%s17099_s3 + $0xd0] sm:$0xff]  }
 0x2c4   : > { %6783 = vmatpush1.bf16.msra.mxu0 %v13017_v2  ;;  %v6291_v2 = vld [vmem:[%s13438_s17 + $0x28] sm:$0x88] }
 0x2c5   : > { %6784 = vmatprep.subr.bf16.mxu0 %v13025_v14 }
 0x2c8   : > { %6785 = vmatpush1.bf16.msra.mxu0 %v13023_v43 }
 0x2c9   : > { %6786 = vmatprep.subr.bf16.mxu0 %v13031_v23  ;;  %v17178_v23 = vrot.slane %v15294_v4, 3 }
 0x2ca   : > { %v15994_v5 = vpop.f32.mrb[44].mxu0 }
 0x2cb   : > { %v15996_v59 = vpop.f32.mrb[45].mxu0 }
 0x2cc   : > { %6787 = vmatpush1.bf16.msra.mxu0 %v13029_v39  ;;  %v5336_v6 = vpop.f32.mrb[46].mxu0 }
 0x2cd   : > { %6847 = vmatprep.subr.bf16.mxu0 %v13224_v58  ;;  %v5337_v24 = vpop.f32.mrb[47].mxu0 }
 0x2cf   : > { %6789 = vmatmul.mubr.bf16.vlgmr.msra.gmra.mrb[0].mxu0 %v6370_v20 }
 0x2d0   : > { %6848 = vmatpush1.bf16.msra.mxu0 %v13225_v35  ;;  %6798 = vmatprep.mubr.bf16.mxu0 %v6383_v9 }
 0x2d1   : > { %6849 = vmatprep.subr.bf16.mxu0 %v13227_v0 }
 0x2d4   : > { %6850 = vmatpush1.bf16.msra.mxu0 %v13229_v25 }
 0x2d5   : > { %6851 = vmatprep.subr.bf16.mxu0 %v13230_v46 }
 0x2d7   : > { %6799 = vmatmul.mubr.bf16.gmra.mrb[4].mxu0 %v6381_v47 }
 0x2d8   : > { %6852 = vmatpush1.bf16.msra.mxu0 %v13231_v57  ;;  %6808 = vmatprep.mubr.bf16.mxu0 %v6391_v33 }
 0x2d9   : > { %6853 = vmatprep.subr.bf16.mxu0 %v15413_v41  ;;  %v6406_v41 = vrot.slane %v15683_v30, 3 }
 0x2dc   : > { %6854 = vmatpush1.bf16.msra.mxu0 %v15408_v37  ;;  %v6397_v37 = vsel %vm6367_vm5, %v6388_v52, %v6396_v10 }
 0x2dd   : > { %6855 = vmatprep.subr.bf16.mxu0 %v15429_v44  ;;  %v6407_v44 = vsel %vm6367_vm5, %v6398_v42, %v6406_v41  ;;  %v13046_v42 = vld [vmem:[%s17099_s3 + $0x80] sm:$0xff]  }
 0x2de   : > { %11336 = vmatpush3.bf16.msra.mxu1 %v13046_v42 }
 0x2df   : > { %6809 = vmatmul.mubr.bf16.gmra.mrb[8].mxu0 %v6389_v7  ;;  %v13047_v7 = vld [vmem:[%s17099_s3 + $0xc8] sm:$0xff]  }
 0x2e0   : > { %6856 = vmatpush1.bf16.msra.mxu0 %v15434_v48  ;;  %6818 = vmatprep.mubr.bf16.mxu0 %v6399_v63  ;;  %v6404_v48 = vrot.slane %v15708_v60, 3  ;;  %v13048_v63 = vld [vmem:[%s17099_s3 + $0x88] sm:$0xff]  }
 0x2e1   : > { %6857 = vmatprep.subr.bf16.mxu0 %v15456_v19  ;;  %11337 = vmatprep.subr.bf16.mxu1 %v13047_v7 }
 0x2e2   : > { %v6405_v19 = vsel %vm6367_vm5, %v6396_v10, %v6404_v48  ;;  %11338 = vmatpush3.bf16.msra.mxu1 %v13048_v63  ;;  %v13050_v10 = vld [vmem:[%s17099_s3 + $0x90] sm:$0xff]  }
 0x2e3   : > { %11339 = vmatprep.subr.bf16.mxu1 %v13049_v31 }
 0x2e4   : > { %6858 = vmatpush1.bf16.msra.mxu0 %v15451_v54  ;;  %v13235_v54 = vld [vmem:[%s13438_s17 + $0x38] sm:$0xff] }
 0x2e5   : > { %6859 = vmatprep.subr.bf16.mxu0 %v15470_v32  ;;  %v10805_v30 = vcombine.high %v6291_v2, %v13235_v54 }
 0x2e6   : > { %11340 = vmatpush3.bf16.msra.mxu1 %v13050_v10 }
 0x2e7   : > { %6819 = vmatmul.mubr.bf16.gmra.mrb[12].mxu0 %v6397_v37  ;;  %v6377_v32 = vrot.slane %v10805_v30, 3  ;;  %v13052_v37 = vld [vmem:[%s17099_s3 + $0x98] sm:$0xff]   ;;  %v13058_v30 = vld [vmem:[%s17099_s3 + $0xb0] sm:$0xff]  }
 0x2e8   : > { %6860 = vmatpush1.bf16.msra.mxu0 %v15475_v18  ;;  %6828 = vmatprep.mubr.bf16.mxu0 %v6407_v44  ;;  %v17169_v18 = vrot.slane %v15247_v21, 3  ;;  %v17174_v21 = vld [vmem:[#allocation9_spill] sm:$0xff]  ;;  %v13053_v44 = vld [vmem:[%s17099_s3 + $0xe0] sm:$0xff]  }
 0x2e9   : > { %6861 = vmatprep.subr.bf16.mxu0 %v15495_v13  ;;  %v17170_v13 = vld [vmem:[#allocation6_spill] sm:$0xff] }
 0x2ec   : > { %6862 = vmatpush1.bf16.msra.mxu0 %v15490_v49  ;;  %v6379_v49 = vsel %vm6367_vm5, %v6377_v32, %v17169_v18  ;;  %v13059_v32 = vld [vmem:[%s17099_s3 + $0xf8] sm:$0xff]  }
 0x2ed   : > { %6863 = vmatprep.subr.bf16.mxu0 %v15510_v50  ;;  %v17171_v50 = vld [vmem:[#allocation5_spill] sm:$0xff]  ;;  %v13060_v18 = vld [vmem:[%s17099_s3 + $0xb8] sm:$0xff]  }
 0x2ef   : > { %6829 = vmatmul.mubr.bf16.gmra.mrb[16].mxu0 %v6405_v19  ;;  %v13056_v19 = vld [vmem:[%s17099_s3 + $0xa8] sm:$0xff]  }
 0x2f0   : > { %6864 = vmatpush1.bf16.msra.mxu0 %v15515_v29  ;;  %6838 = vmatprep.mubr.bf16.mxu0 %v6406_v41  ;;  %v17172_v29 = vld [vmem:[#allocation8_spill] sm:$0xff]  ;;  %v13051_v41 = vld [vmem:[%s17099_s3 + $0xd8] sm:$0xff]  }
 0x2f1   : > { %6865 = vmatprep.subr.bf16.mxu0 %v15533_v8  ;;  %v10804_v8 = vcombine.low %v6291_v2, %v13235_v54  ;;  %11341 = vmatprep.subr.bf16.mxu1 %v13051_v41  ;;  %v13055_v2 = vld [vmem:[%s17099_s3 + $0xe8] sm:$0xff]   ;;  %v13057_v54 = vld [vmem:[%s17099_s3 + $0xf0] sm:$0xff]  }
 0x2f2   : > { %11342 = vmatpush3.bf16.msra.mxu1 %v13052_v37 }
 0x2f3   : > { %v6374_v60 = vrot.slane %v10804_v8, 3  ;;  %11343 = vmatprep.subr.bf16.mxu1 %v13053_v44 }
 0x2f4   : > { %6866 = vmatpush1.bf16.msra.mxu0 %v15528_v55  ;;  %v17173_v55 = vld [vmem:[#allocation7_spill] sm:$0xff] }
 0x2f5   : > { %6867 = vmatprep.subr.bf16.mxu0 %v15551_v40  ;;  %v17175_v40 = vld [vmem:[#allocation3_spill] sm:$0xff]  ;;  %v6376_v39 = vsel %vm6367_vm5, %v6374_v60, %v17178_v23 }
 0x2f7   : > { %6839 = vmatmul.mubr.bf16.gmra.mrb[60].mxu0 %v6404_v48  ;;  %v13054_v48 = vld [vmem:[%s17099_s3 + $0xa0] sm:$0xff]  }
 0x2f8   : > { %6868 = vmatpush1.bf16.msra.mxu0 %v15546_v26  ;;  %6879 = vmatprep.mubr.bf16.mxu0 %v6379_v49  ;;  %v17176_v26 = vld [vmem:[#allocation10_spill] sm:$0xff]  ;;  %v13061_v49 = vld [vmem:[%s17099_s3 + $0x40] sm:$0xff]  }
 0x2f9   : > { %6869 = vmatprep.subr.bf16.mxu0 %v15575_v22  ;;  %11344 = vmatpush3.bf16.msra.mxu1 %v13054_v48  ;;  %v17181_v48 = vld [vmem:[#allocation17_spill] sm:$0xff] }
 0x2fa   : > { %11345 = vmatprep.subr.bf16.mxu1 %v13055_v2 }
 0x2fc   : > { %6870 = vmatpush1.bf16.msra.mxu0 %v15570_v38 }
 0x2fd   : > { %6871 = vmatprep.subr.bf16.mxu0 %v17170_v13  ;;  %11346 = vmatpush3.bf16.msra.mxu1 %v13056_v19 }
 0x2fe   : > { %11347 = vmatprep.subr.bf16.mxu1 %v13057_v54  ;;  %v17182_v54 = vld [vmem:[#allocation18_spill] sm:$0xff] }
 0x300   : > { %6872 = vmatpush1.bf16.msra.mxu0 %v17171_v50 }
 0x301   : > { %6873 = vmatprep.subr.bf16.mxu0 %v17172_v29  ;;  %11348 = vmatpush3.bf16.msra.mxu1 %v13058_v30 }
 0x302   : > { %11349 = vmatprep.subr.bf16.mxu1 %v13059_v32 }
 0x304   : > { %6874 = vmatpush1.bf16.msra.mxu0 %v17173_v55 }
 0x305   : > { %6875 = vmatprep.subr.bf16.mxu0 %v17174_v21  ;;  %11350 = vmatpush3.bf16.msra.mxu1 %v13060_v18 }
 0x306   : > { %11375 = vmatprep.subr.bf16.mxu1 %v13061_v49  ;;  %v17183_v49 = vld [vmem:[#allocation19_spill] sm:$0xff] }
 0x308   : > { %6876 = vmatpush1.bf16.msra.mxu0 %v17175_v40 }
 0x309   : > { %6877 = vmatprep.subr.bf16.mxu0 %v17176_v26  ;;  %v6962_v26 = vlaneseq }
 0x30a   : > { %v5423_v14 = vpop.f32.mrb[48].mxu0 }
 0x30b   : > { %v5424_v22 = vadd.f32 %v5423_v14, %v15994_v5  ;;  %v5425_v38 = vpop.f32.mrb[49].mxu0  ;;  %v6963_v14 = vshrl.u32 %v6962_v26, 7 }
 0x30c   : > { %v5426_v43 = vadd.f32 %v5425_v38, %v15996_v59  ;;  %6878 = vmatpush1.bf16.msra.mxu0 %v17177_v3  ;;  %v5427_v28 = vpop.f32.mrb[50].mxu0  ;;  %v6960_v38 = vld [vmem:[%s17098_s2] sm:$0x3] }
 0x30d   : > { %v16069_v45 = vadd.f32 %v5424_v22, %v15890_v36  ;;  %v5428_v15 = vpop.f32.mrb[51].mxu0  ;;  %v6964_v22 = vsub.s32 0, %v6963_v14 }
 0x30e   : > { %v16072_v56 = vadd.f32 %v5426_v43, %v15892_v27  ;;  %v6968_v43 = vsub.s32 1, %v6963_v14 }
 0x30f   : > { %6880 = vmatmul.mubr.bf16.vlgmr.msra.gmra.mrb[0].mxu0 %v6376_v39  ;;  %v16171_v28 = vrot.slane %v6960_v38, %v6964_v22 }
 0x329   : > { %v16074_v62 = vpop.f32.mrb[44].mxu1 }
 0x32a   : > { %v16076_v5 = vpop.f32.mrb[45].mxu1 }
 0x32b   : > { %v16078_v59 = vpop.f32.mrb[46].mxu1 }
 0x32c   : > { %v16080_v20 = vpop.f32.mrb[47].mxu1 }
 0x331   : > { %v16082_v4 = vpop.f32.mrb[48].mxu1 }
 0x332   : > { %v16084_v6 = vpop.f32.mrb[49].mxu1 }
 0x333   : > { %v16086_v58 = vpop.f32.mrb[50].mxu1 }
 0x334   : > { %v16088_v36 = vpop.f32.mrb[51].mxu1 }
 0x339   : > { %v16090_v9 = vpop.f32.mrb[52].mxu1 }
 0x33a   : > { %v16092_v27 = vpop.f32.mrb[53].mxu1 }
 0x33b   : > { %v16094_v24 = vpop.f32.mrb[54].mxu1 }
 0x33c   : > { %v16096_v35 = vpop.f32.mrb[55].mxu1 }
 0x341   : > { %v16098_v11 = vpop.f32.mrb[56].mxu1 }
 0x342   : > { %v16100_v1 = vpop.f32.mrb[57].mxu1 }
 0x343   : > { %v16102_v0 = vpop.f32.mrb[58].mxu1 }
 0x344   : > { %v16104_v34 = vpop.f32.mrb[59].mxu1 }
 0x349   : > { %v16106_v46 = vpop.f32.mrb[60].mxu1 }
 0x34a   : > { %v6170_v51 = vpop.f32.mrb[52].mxu0  ;;  %v16108_v57 = vpop.f32.mrb[61].mxu1 }
 0x34b   : > { %v6172_v25 = vpop.f32.mrb[53].mxu0  ;;  %v6935_v17 = vpop.f32.mrb[62].mxu1 }
 0x34c   : > { %v6174_v47 = vpop.f32.mrb[54].mxu0  ;;  %v6936_v52 = vpop.f32.mrb[63].mxu1 }
 0x34d   : > { %v6175_v33 = vpop.f32.mrb[55].mxu0 }
 0x38a   : > { %v6261_v13 = vpop.f32.mrb[56].mxu0 }
 0x38b   : > { %v6262_v50 = vadd.f32 %v6261_v13, %v6170_v51  ;;  %v6263_v29 = vpop.f32.mrb[57].mxu0 }
 0x38c   : > { %v6264_v55 = vadd.f32 %v6263_v29, %v6172_v25  ;;  %v6265_v8 = vpop.f32.mrb[58].mxu0  ;;  %v16174_v25 = vrot.slane %v6960_v38, %v6968_v43 }
 0x38d   : > { %v16162_v21 = vadd.f32 %v6262_v50, %v16069_v45  ;;  %v6266_v40 = vpop.f32.mrb[59].mxu0  ;;  %v17179_v45 = vld [vmem:[#allocation15_spill] sm:$0xff] }
 0x38e   : > { %v16165_v60 = vadd.f32 %v6264_v55, %v16072_v56  ;;  %v17180_v56 = vld [vmem:[#allocation16_spill] sm:$0xff] }
 0x3aa   : > { %v6800_v3 = vpop.f32.mrb[4].mxu0 }
 0x3ab   : > { %v11731_v23 = vadd.f32 %v6800_v3, %v15759_v53  ;;  %v6802_v39 = vpop.f32.mrb[5].mxu0  ;;  %v17184_v3 = vld [vmem:[#allocation20_spill] sm:$0xff] }
 0x3ac   : > { %v11733_v15 = vadd.f32 %v6802_v39, %v17179_v45  ;;  %v6804_v51 = vpop.f32.mrb[6].mxu0 }
 0x3ad   : > { %v11735_v47 = vadd.f32 %v6804_v51, %v17180_v56  ;;  %v11732_v33 = vadd.f32 %v11731_v23, %v16074_v62  ;;  %v6806_v17 = vpop.f32.mrb[7].mxu0  ;;  %v17186_v56 = vld [vmem:[#allocation22_spill] sm:$0xff] }
 0x3ae   : > { %v11737_v52 = vadd.f32 %v6806_v17, %v15777_v16  ;;  %v11734_v61 = vadd.f32 %v11733_v15, %v16076_v5 }
 0x3af   : > { %v16181_v42 = vadd.f32 %v11732_v33, %v16171_v28  ;;  %v11736_v53 = vadd.f32 %v11735_v47, %v16078_v59 }
 0x3b0   : > { %v16185_v7 = vadd.f32 %v11734_v61, %v16174_v25  ;;  %v11738_v63 = vadd.f32 %v11737_v52, %v16080_v20  ;;  %v17187_v52 = vld [vmem:[#allocation23_spill] sm:$0xff] }
 0x3b1   : > { %v6998_v31 = vmax.f32 %v16181_v42, 0.0  ;;  %v6978_v10 = vadd.f32 %v11736_v53, %v16171_v28 }
 0x3b2   : > { %v6999_v62 = vmax.f32 %v16185_v7, 0.0  ;;  %v6979_v16 = vadd.f32 %v11738_v63, %v16174_v25  ;;  %v6810_v41 = vpop.f32.mrb[8].mxu0 }
 0x3b3   : > { %v16192_v5 = vmax.f32 %v6978_v10, 0.0  ;;  %v11739_v37 = vadd.f32 %v6810_v41, %v15789_v12  ;;  %v6812_v44 = vpop.f32.mrb[9].mxu0 }
 0x3b4   : > { %v16199_v59 = vpack.c.bf16 %v6999_v62, %v6998_v31  ;;  %v16201_v20 = vmax.f32 %v6979_v16, 0.0  ;;  %v11741_v2 = vadd.f32 %v6812_v44, %v17181_v48  ;;  %v6814_v19 = vpop.f32.mrb[10].mxu0 }
 0x3b5   : > { %v11743_v30 = vadd.f32 %v6814_v19, %v17182_v54  ;;  %v11740_v32 = vadd.f32 %v11739_v37, %v16082_v4  ;;  %v6816_v18 = vpop.f32.mrb[11].mxu0 }
 0x3b6   : > { %7086 = vst [vmem:[#allocation2 + $0x10] sm:$0xff] %v16199_v59  ;;  %v11327_v12 = vpack.c.bf16 %v16201_v20, %v16192_v5  ;;  %v11745_v13 = vadd.f32 %v6816_v18, %v17183_v49  ;;  %v11742_v50 = vadd.f32 %v11741_v2, %v16084_v6 }
 0x3b7   : > { %v6980_v29 = vadd.f32 %v11740_v32, %v16171_v28  ;;  %v11744_v55 = vadd.f32 %v11743_v30, %v16086_v58  ;;  %v17185_v58 = vld [vmem:[#allocation21_spill] sm:$0xff]  ;;  %v17188_v30 = vld [vmem:[#allocation24_spill] sm:$0xff] }
 0x3b8   : > { %7087 = vst [vmem:[#allocation2 + $0x18] sm:$0xff] %v11327_v12  ;;  %v6981_v8 = vadd.f32 %v11742_v50, %v16174_v25  ;;  %v11746_v40 = vadd.f32 %v11745_v13, %v16088_v36  ;;  %v17189_v13 = vld [vmem:[#allocation25_spill] sm:$0xff] }
 0x3b9   : > { %v7002_v4 = vmax.f32 %v6980_v29, 0.0  ;;  %v6982_v26 = vadd.f32 %v11744_v55, %v16171_v28  ;;  %v17190_v55 = vld [vmem:[#allocation26_spill] sm:$0xff] }
 0x3ba   : > { %v7003_v14 = vmax.f32 %v6981_v8, 0.0  ;;  %v6983_v22 = vadd.f32 %v11746_v40, %v16174_v25  ;;  %v6820_v38 = vpop.f32.mrb[12].mxu0 }
 0x3bb   : > { %v16217_v43 = vmax.f32 %v6982_v26, 0.0  ;;  %v11747_v6 = vadd.f32 %v6820_v38, %v17184_v3  ;;  %v6822_v23 = vpop.f32.mrb[13].mxu0 }
 0x3bc   : > { %v11328_v39 = vpack.c.bf16 %v7003_v14, %v7002_v4  ;;  %v16220_v45 = vmax.f32 %v6983_v22, 0.0  ;;  %v11749_v15 = vadd.f32 %v6822_v23, %v17185_v58  ;;  %v6824_v51 = vpop.f32.mrb[14].mxu0  ;;  %v16244_v2 = vpack.c.bf16 %v7003_v14, %v16201_v20 }
 0x3bd   : > { %v11751_v36 = vadd.f32 %v6824_v51, %v17186_v56  ;;  %v11748_v47 = vadd.f32 %v11747_v6, %v16090_v9  ;;  %v6826_v33 = vpop.f32.mrb[15].mxu0  ;;  %v16237_v37 = vpack.c.bf16 %v16217_v43, %v7002_v4 }
 0x3be   : > { %7088 = vst [vmem:[#allocation2 + $0x20] sm:$0xff] %v11328_v39  ;;  %v11329_v17 = vpack.c.bf16 %v16220_v45, %v16217_v43  ;;  %v11753_v61 = vadd.f32 %v6826_v33, %v17187_v52  ;;  %v11750_v53 = vadd.f32 %v11749_v15, %v16092_v27  ;;  %v16234_v9 = vpack.c.bf16 %v16220_v45, %v7003_v14  ;;  %v17191_v14 = vld [vmem:[#allocation27_spill] sm:$0xff] }
 0x3bf   : > { %v6984_v63 = vadd.f32 %v11748_v47, %v16171_v28  ;;  %v11752_v10 = vadd.f32 %v11751_v36, %v16094_v24  ;;  %v16241_v27 = vpack.c.bf16 %v7002_v4, %v16192_v5 }
 0x3c0   : > { %7089 = vst [vmem:[#allocation2 + $0x28] sm:$0xff] %v11329_v17  ;;  %v6985_v16 = vadd.f32 %v11750_v53, %v16174_v25  ;;  %v11754_v41 = vadd.f32 %v11753_v61, %v16096_v35 }
 0x3c1   : > { %v7006_v44 = vmax.f32 %v6984_v63, 0.0  ;;  %v6986_v48 = vadd.f32 %v11752_v10, %v16171_v28 }
 0x3c2   : > { %v7007_v24 = vmax.f32 %v6985_v16, 0.0  ;;  %v6987_v19 = vadd.f32 %v11754_v41, %v16174_v25  ;;  %v6830_v54 = vpop.f32.mrb[16].mxu0 }
 0x3c3   : > { %v7008_v35 = vmax.f32 %v6986_v48, 0.0  ;;  %v11755_v32 = vadd.f32 %v6830_v54, %v17188_v30  ;;  %v6832_v18 = vpop.f32.mrb[17].mxu0  ;;  %v16273_v54 = vpack.c.bf16 %v7006_v44, %v16217_v43 }
 0x3c4   : > { %v11330_v12 = vpack.c.bf16 %v7007_v24, %v7006_v44  ;;  %v7009_v49 = vmax.f32 %v6987_v19, 0.0  ;;  %v11757_v50 = vadd.f32 %v6832_v18, %v17189_v13  ;;  %v6834_v29 = vpop.f32.mrb[18].mxu0 }
 0x3c5   : > { %v11759_v8 = vadd.f32 %v6834_v29, %v17190_v55  ;;  %v11756_v40 = vadd.f32 %v11755_v32, %v16098_v11  ;;  %v6836_v4 = vpop.f32.mrb[19].mxu0  ;;  %v16259_v15 = vpack.c.bf16 %v7008_v35, %v7006_v44  ;;  %v7933_v32 = vrot.slane %v16244_v2, 1 }
 0x3c6   : > { %7090 = vst [vmem:[#allocation2 + $0x30] sm:$0xff] %v11330_v12  ;;  %v11331_v26 = vpack.c.bf16 %v7009_v49, %v7008_v35  ;;  %v11761_v22 = vadd.f32 %v6836_v4, %v17191_v14  ;;  %v11758_v38 = vadd.f32 %v11757_v50, %v16100_v1  ;;  %v16257_v58 = vpack.c.bf16 %v7009_v49, %v7007_v24 }
 0x3c7   : > { %v6988_v3 = vadd.f32 %v11756_v40, %v16171_v28  ;;  %v11760_v6 = vadd.f32 %v11759_v8, %v16102_v0  ;;  %v7935_v12 = vrot.slane %v16273_v54, 1  ;;  %v8189_v50 = vshrl.u32 %v16244_v2, 16 }
 0x3c8   : > { %7091 = vst [vmem:[#allocation2 + $0x38] sm:$0xff] %v11331_v26  ;;  %v6989_v23 = vadd.f32 %v11758_v38, %v16174_v25  ;;  %v11762_v39 = vadd.f32 %v11761_v22, %v16104_v34  ;;  %v8192_v29 = vshll.u32 %v16244_v2, 16  ;;  %v8172_v8 = vshrl.u32 %v16241_v27, 16 }
 0x3c9   : > { %v7010_v11 = vmax.f32 %v6988_v3, 0.0  ;;  %v6990_v51 = vadd.f32 %v11760_v6, %v16171_v28  ;;  %v8175_v40 = vshll.u32 %v16241_v27, 16  ;;  %v8191_v4 = vrot.slane %v8189_v50, 1 }
 0x3ca   : > { %v7011_v56 = vmax.f32 %v6989_v23, 0.0  ;;  %v6991_v36 = vadd.f32 %v11762_v39, %v16174_v25  ;;  %v6840_v1 = vpop.f32.mrb[60].mxu0  ;;  %v8194_v26 = vrot.slane %v8192_v29, 2  ;;  %v8174_v38 = vrot.slane %v8172_v8, 1 }
 0x3cb   : > { %v7012_v47 = vmax.f32 %v6990_v51, 0.0  ;;  %v6932_v33 = vadd.f32 %v16106_v46, %v6840_v1  ;;  %v6842_v0 = vpop.f32.mrb[61].mxu0  ;;  %v16270_v46 = vpack.c.bf16 %v7007_v24, %v16220_v45  ;;  %v8177_v3 = vrot.slane %v8175_v40, 2  ;;  %v17194_v40 = vld [vmem:[#allocation13_spill] sm:$0xff] }
 0x3cc   : > { %v11332_v17 = vpack.c.bf16 %v7011_v56, %v7010_v11  ;;  %v7013_v52 = vmax.f32 %v6991_v36, 0.0  ;;  %v6934_v61 = vadd.f32 %v16108_v57, %v6842_v0  ;;  %v6844_v34 = vpop.f32.mrb[62].mxu0  ;;  %v16275_v30 = vpack.c.bf16 %v7011_v56, %v7009_v49 }
 0x3cd   : > { %v6958_v53 = vadd.f32 %v6932_v33, %v16162_v21  ;;  %v6845_v63 = vpop.f32.mrb[63].mxu0  ;;  %v16277_v21 = vpack.c.bf16 %v7010_v11, %v7008_v35  ;;  %v7937_v18 = vrot.slane %v16270_v46, 1  ;;  %v8207_v55 = vshrl.u32 %v16270_v46, 16 }
 0x3ce   : > { %7092 = vst [vmem:[#allocation2 + $0x40] sm:$0xff] %v11332_v17  ;;  %v11333_v10 = vpack.c.bf16 %v7013_v52, %v7012_v47  ;;  %v6959_v16 = vadd.f32 %v6934_v61, %v16165_v60  ;;  %v7930_v60 = vrot.slane %v16241_v27, 1  ;;  %v7941_v45 = vrot.slane %v16275_v30, 1 }
 0x3cf   : > { %v6992_v41 = vadd.f32 %v16171_v28, %v6958_v53  ;;  %v7939_v24 = vrot.slane %v16277_v21, 1  ;;  %v16288_v43 = vsel %vm1797_vm0, %v7933_v32, %v7937_v18  ;;  %v8209_v14 = vrot.slane %v8207_v55, 1 }
 0x3d0   : > { %7093 = vst [vmem:[#allocation2 + $0x48] sm:$0xff] %v11333_v10  ;;  %v6993_v48 = vadd.f32 %v16174_v25, %v6959_v16  ;;  %v16293_v44 = vsel %vm1797_vm0, %v7930_v60, %v7935_v12  ;;  %v16298_v35 = vsel %vm1797_vm0, %v7937_v18, %v7941_v45  ;;  %v8210_v22 = vshll.u32 %v16270_v46, 16 }
 0x3d1   : > { %v7014_v19 = vmax.f32 %v6992_v41, 0.0  ;;  %v16303_v49 = vsel %vm1797_vm0, %v7935_v12, %v7939_v24  ;;  %v8198_v6 = vshrl.u32 %v16273_v54, 16  ;;  %v8201_v23 = vshll.u32 %v16273_v54, 16 }
 0x3d2   : > { %v7015_v57 = vmax.f32 %v6993_v48, 0.0  ;;  %v8212_v39 = vrot.slane %v8210_v22, 2  ;;  %v8225_v11 = vshrl.u32 %v16275_v30, 16  ;;  %v8228_v36 = vshll.u32 %v16275_v30, 16 }
 0x3d3   : > { %v8200_v51 = vrot.slane %v8198_v6, 1  ;;  %v8203_v56 = vrot.slane %v8201_v23, 2  ;;  %v8216_v1 = vshrl.u32 %v16277_v21, 16  ;;  %v16316_v47 = vor.u32 %v8194_v26, %v8191_v4 }
 0x3d4   : > { %v11334_v13 = vpack.c.bf16 %v7015_v57, %v7014_v19  ;;  %v8213_v33 = vor.u32 %v8212_v39, %v8209_v14  ;;  %v8227_v0 = vrot.slane %v8225_v11, 1  ;;  %v8219_v17 = vshll.u32 %v16277_v21, 16  ;;  %v17192_v19 = vld [vmem:[#allocation11_spill] sm:$0xff] }
 0x3d5   : > { %v16319_v52 = vor.u32 %v8177_v3, %v8174_v38  ;;  %v8204_v61 = vor.u32 %v8203_v56, %v8200_v51  ;;  %v8230_v34 = vrot.slane %v8228_v36, 2  ;;  %v8218_v53 = vrot.slane %v8216_v1, 1  ;;  %v17195_v38 = vld [vmem:[#allocation14_spill] sm:$0xff] }
 0x3d6   : > { %7094 = vst [vmem:[#allocation2 + $0x50] sm:$0xff] %v11334_v13  ;;  %v16323_v63 = vsel %vm3244_vm2, %v16316_v47, %v8213_v33  ;;  %v8221_v10 = vrot.slane %v8219_v17, 2  ;;  %v17193_v13 = vld [vmem:[#allocation12_spill] sm:$0xff]  ;;  %v16351_v39 = vpack.c.bf16 %v16201_v20, %v6999_v62  ;;  %v17127_v11 = vrot.slane %v16244_v2, 2 }
 0x3d7   : > { %v16327_v41 = vsel %vm3244_vm2, %v16319_v52, %v8204_v61  ;;  %v16329_v48 = vor.u32 %v8230_v34, %v8227_v0  ;;  %v17126_v36 = vrot.slane %v16241_v27, 2  ;;  %v8475_v1 = vrot.slane %v16270_v46, 2 }
 0x3d8   : > { %v16332_v12 = vor.u32 %v8221_v10, %v8218_v53  ;;  %v8473_v0 = vrot.slane %v16273_v54, 2  ;;  %v17125_v17 = vrot.slane %v16275_v30, 2 }
 0x3d9   : > { %v16337_v55 = vsel %vm3244_vm2, %v8213_v33, %v16329_v48  ;;  %v16363_v62 = vsel %vm4082_vm3, %v17127_v11, %v8475_v1 }
 0x3da   : > { %v16343_v14 = vsel %vm3244_vm2, %v8204_v61, %v16332_v12  ;;  %v16373_v20 = vsel %vm4082_vm3, %v17126_v36, %v8473_v0  ;;  %v16378_v46 = vsel %vm4082_vm3, %v8475_v1, %v17125_v17  ;;  %v13076_v17 = vld [vmem:[%s17099_s3 + $0x30] sm:$0xff]  }
 0x3e2   : > { %v6881_v16 = vpop.f32.mrb[0].mxu0 }
 0x3e3   : > { %v11727_v57 = vadd.f32 %v6881_v16, %v17192_v19  ;;  %v6883_v18 = vpop.f32.mrb[1].mxu0  ;;  %v7242_v19 = vshll.u32 %v16234_v9, 16 }
 0x3e4   : > { %v11728_v50 = vadd.f32 %v6883_v18, %v17193_v13  ;;  %v6885_v29 = vpop.f32.mrb[2].mxu0 }
 0x3e5   : > { %v6972_v8 = vadd.f32 %v11727_v57, %v16171_v28  ;;  %v11729_v4 = vadd.f32 %v6885_v29, %v17194_v40  ;;  %v6887_v26 = vpop.f32.mrb[3].mxu0  ;;  %v7238_v40 = vshrl.u32 %v16351_v39, 16 }
 0x3e6   : > { %v6973_v22 = vadd.f32 %v11728_v50, %v16174_v25  ;;  %v11730_v3 = vadd.f32 %v6887_v26, %v17195_v38  ;;  %v7244_v38 = vrot.slane %v7242_v19, 1  ;;  %v13065_v19 = vld [vmem:[%s17099_s3 + $0x50] sm:$0xff]  }
 0x3e7   : > { %v6994_v6 = vmax.f32 %v6972_v8, 0.0  ;;  %v6974_v23 = vadd.f32 %v11729_v4, %v16171_v28  ;;  %v17124_v28 = vrot.slane %v16277_v21, 2 }
 0x3e8   : > { %v6995_v51 = vmax.f32 %v6973_v22, 0.0  ;;  %v6975_v56 = vadd.f32 %v11730_v3, %v16174_v25  ;;  %v16368_v25 = vpack.c.bf16 %v16192_v5, %v6998_v31  ;;  %v7226_v31 = vshll.u32 %v16351_v39, 16 }
 0x3e9   : > { %v6996_v33 = vmax.f32 %v6974_v23, 0.0  ;;  %v16383_v54 = vsel %vm4082_vm3, %v8473_v0, %v17124_v28  ;;  %v7659_v23 = vrot.slane %v16351_v39, 1 }
 0x3ea   : > { %v11324_v7 = vpack.c.bf16 %v6995_v51, %v6994_v6  ;;  %v6997_v61 = vmax.f32 %v6975_v56, 0.0  ;;  %v7214_v53 = vshll.u32 %v16368_v25, 16  ;;  %v7228_v57 = vrot.slane %v7226_v31, 1 }
 0x3eb   : > { %v16389_v5 = vpack.c.bf16 %v6996_v33, %v6994_v6  ;;  %v13062_v6 = vld [vmem:[%s17099_s3] sm:$0xff]   ;;  %v7258_v31 = vshll.u32 %v16257_v58, 16 }
 0x3ec   : > { %7084 = vst [vmem:[#allocation2] sm:$0xff] %v11324_v7  ;;  %v16385_v42 = vpack.c.bf16 %v6997_v61, %v6996_v33  ;;  %v16391_v34 = vpack.c.bf16 %v6997_v61, %v6995_v51  ;;  %v7216_v8 = vrot.slane %v7214_v53, 1  ;;  %v7240_v1 = vor.u32 %v7238_v40, %v7228_v57  ;;  %v13063_v33 = vld [vmem:[%s17099_s3 + $0x48] sm:$0xff]  }
 0x3ed   : > { %v7209_v16 = vshll.u32 %v16389_v5, 16  ;;  %v7207_v50 = vshrl.u32 %v16389_v5, 16  ;;  %v7234_v7 = vshll.u32 %v16237_v37, 16 }
 0x3ee   : > { %7085 = vst [vmem:[#allocation2 + $0x8] sm:$0xff] %v16385_v42  ;;  %v7221_v10 = vshll.u32 %v16391_v34, 16  ;;  %v7219_v18 = vshrl.u32 %v16391_v34, 16  ;;  %v7245_v61 = vsel %vm475_vm1, %v7240_v1, %v7244_v38 }
 0x3ef   : > { %v7211_v29 = vrot.slane %v7209_v16, 1  ;;  %v7135_v16 = vld [vmem:[#allocation2 + $0x40] sm:$0x11] }
 0x3f0   : > { %v7223_v13 = vrot.slane %v7221_v10, 1  ;;  %v13064_v10 = vld [vmem:[%s17099_s3 + $0x8] sm:$0xff]  }
 0x3f1   : > { %v7212_v22 = vor.u32 %v7211_v29, %v7207_v50  ;;  %v7260_v50 = vrot.slane %v7258_v31, 1  ;;  %v16429_v29 = vcombine.high %v7135_v16, %v7135_v16 }
 0x3f2   : > { %v7224_v26 = vor.u32 %v7223_v13, %v7219_v18  ;;  %v7236_v18 = vrot.slane %v7234_v7, 1  ;;  %v7254_v13 = vshrl.u32 %v16234_v9, 16  ;;  %v16448_v7 = vcombine.low %v7135_v16, %v7135_v16 }
 0x3f3   : > { %v16400_v4 = vld [vmem:[#allocation2] sm:$0xee]  ;;  %v7217_v56 = vsel %vm475_vm1, %v7212_v22, %v7216_v8  ;;  %v7274_v1 = vshll.u32 %v16429_v29, 16 }
 0x3f4   : > { %v10988_v3 = vcombine.high %v16400_v4, %v16385_v42  ;;  %v7229_v51 = vsel %vm475_vm1, %v7224_v26, %v7228_v57  ;;  %v7230_v57 = vshrl.u32 %v16368_v25, 16  ;;  %v13066_v26 = vld [vmem:[%s17099_s3 + $0x10] sm:$0xff]   ;;  %v7256_v22 = vor.u32 %v7254_v13, %v7244_v38  ;;  %v13069_v38 = vld [vmem:[%s17099_s3 + $0x60] sm:$0xff]  }
 0x3f5   : > { %7414 = vmatprep.mubr.bf16.mxu1 %v7229_v51  ;;  %v7250_v51 = vshll.u32 %v16259_v15, 16  ;;  %v7276_v31 = vrot.slane %v7274_v1, 1  ;;  %v13073_v1 = vld [vmem:[%s17099_s3 + $0x28] sm:$0xff]  }
 0x3f6   : > { %v7658_v0 = vrot.slane %v10988_v3, 1  ;;  %7415 = vmatmul.mubr.bf16.vlgmr.msra.gmra.mrb[64].mxu1 %v7217_v56  ;;  %v7232_v40 = vor.u32 %v7230_v57, %v7216_v8  ;;  %v13067_v3 = vld [vmem:[%s17099_s3 + $0x58] sm:$0xff]   ;;  %v7261_v56 = vsel %vm475_vm1, %v7256_v22, %v7260_v50  ;;  %v7266_v22 = vshll.u32 %v16448_v7, 16 }
 0x3f7   : > { %11376 = vmatpush3.bf16.msra.mxu1 %v13062_v6  ;;  %7422 = vmatprep.mubr.bf16.mxu1 %v7245_v61  ;;  %v13068_v8 = vld [vmem:[%s17099_s3 + $0x18] sm:$0xff]   ;;  %v7270_v61 = vshrl.u32 %v16257_v58, 16 }
 0x3f8   : > { %v16419_v53 = vsel %vm1797_vm0, %v7658_v0, %v7659_v23  ;;  %11377 = vmatprep.subr.bf16.mxu1 %v13063_v33  ;;  %v7237_v6 = vsel %vm475_vm1, %v7232_v40, %v7236_v18  ;;  %v7246_v33 = vshrl.u32 %v16237_v37, 16  ;;  %v7252_v0 = vrot.slane %v7250_v51, 1  ;;  %v16454_v57 = vld [vmem:[#allocation2 + $0x18] sm:$0xff]  ;;  %v13072_v40 = vld [vmem:[%s17099_s3 + $0x68] sm:$0xff]  }
 0x3f9   : > { %v7272_v13 = vor.u32 %v7270_v61, %v7260_v50  ;;  %v16466_v51 = vld [vmem:[#allocation2 + $0x34] ss:$8 sps:$4 sm:$0xff]   ;;  %v16480_v61 = vld [vmem:[#allocation2 + $0x40] ss:$8 sps:$4 sm:$0xff]  }
 0x3fa   : > { %v9287_v28 = vrot.slane %v16466_v51, 3 }
 0x3fb   : > { %11378 = vmatpush3.bf16.msra.mxu1 %v13064_v10  ;;  %v7248_v10 = vor.u32 %v7246_v33, %v7236_v18  ;;  %v7277_v18 = vsel %vm475_vm1, %v7272_v13, %v7276_v31  ;;  %v13074_v33 = vld [vmem:[%s17099_s3 + $0x70] sm:$0xff]  }
 0x3fc   : > { %11379 = vmatprep.subr.bf16.mxu1 %v13065_v19  ;;  %v13070_v19 = vld [vmem:[%s17099_s3 + $0x20] sm:$0xff]  }
 0x3fd   : > { %v7253_v16 = vsel %vm475_vm1, %v7248_v10, %v7252_v0  ;;  %v7262_v10 = vshrl.u32 %v16259_v15, 16 }
 0x3fe   : > { %7423 = vmatmul.mubr.bf16.gmra.mrb[68].mxu1 %v7237_v6  ;;  %v16464_v6 = vld [vmem:[#allocation2 + $0x20] ss:$8 sps:$4 sm:$0xff]  }
 0x3ff   : > { %11380 = vmatpush3.bf16.msra.mxu1 %v13066_v26  ;;  %7430 = vmatprep.mubr.bf16.mxu1 %v7261_v56  ;;  %v16459_v26 = vld [vmem:[#allocation2 + $0x24] ss:$8 sps:$4 sm:$0xff]   ;;  %v16468_v56 = vld [vmem:[#allocation2 + $0x30] ss:$8 sps:$4 sm:$0xff]  }
 0x400   : > { %11381 = vmatprep.subr.bf16.mxu1 %v13067_v3  ;;  %v9240_v3 = vld [vmem:[#allocation2 + $0x10] sm:$0x88]  ;;  %v9283_v31 = vrot.slane %v16459_v26, 3 }
 0x401   : > { %v11303_v50 = vcombine.low %v9240_v3, %v16454_v57 }
 0x403   : > { %11382 = vmatpush3.bf16.msra.mxu1 %v13068_v8  ;;  %v16474_v8 = vld [vmem:[#allocation2 + $0x44] ss:$8 sps:$4 sm:$0xff]  }
 0x404   : > { %11383 = vmatprep.subr.bf16.mxu1 %v13069_v38  ;;  %v11304_v38 = vcombine.high %v9240_v3, %v16454_v57  ;;  %v9285_v3 = vrot.slane %v16468_v56, 3  ;;  %v9291_v11 = vrot.slane %v16474_v8, 3 }
 0x406   : > { %7431 = vmatmul.mubr.bf16.gmra.mrb[72].mxu1 %v7253_v16  ;;  %v9282_v13 = vrot.slane %v11304_v38, 3  ;;  %v9279_v16 = vrot.slane %v11303_v50, 3  ;;  %v9289_v38 = vrot.slane %v16480_v61, 3 }
 0x407   : > { %11384 = vmatpush3.bf16.msra.mxu1 %v13070_v19  ;;  %7438 = vmatprep.mubr.bf16.mxu1 %v7277_v18  ;;  %v7268_v19 = vrot.slane %v7266_v22, 1  ;;  %v9280_v18 = vrot.slane %v16464_v6, 3  ;;  %v13077_v22 = vld [vmem:[%s17099_s3 + $0x78] sm:$0xff]  }
 0x408   : > { %11385 = vmatprep.subr.bf16.mxu1 %v13072_v40  ;;  %v7264_v40 = vor.u32 %v7262_v10, %v7252_v0  ;;  %v16491_v36 = vsel %vm6367_vm5, %v9282_v13, %v9283_v31  ;;  %v16516_v13 = vsel %vm6367_vm5, %v9285_v3, %v9289_v38 }
 0x409   : > { %v16498_v50 = vsel %vm6367_vm5, %v9279_v16, %v9280_v18  ;;  %v16504_v0 = vsel %vm6367_vm5, %v9280_v18, %v9285_v3  ;;  %v13083_v16 = vld [vmem:[%s17099_s3 + $0x150] sm:$0xff]   ;;  %v13086_v3 = vld [vmem:[%s17099_s3 + $0x118] sm:$0xff]  }
 0x40a   : > { %v7269_v10 = vsel %vm475_vm1, %v7264_v40, %v7268_v19  ;;  %v13079_v19 = vld [vmem:[%s17099_s3 + $0x140] sm:$0xff]   ;;  %v13084_v18 = vld [vmem:[%s17099_s3 + $0x110] sm:$0xff]  }
 0x40b   : > { %11386 = vmatpush3.bf16.msra.mxu1 %v13073_v1  ;;  %v16501_v1 = vsel %vm6367_vm5, %v9283_v31, %v9287_v28  ;;  %v13078_v31 = vld [vmem:[%s17099_s3 + $0x38] sm:$0xff]   ;;  %v13087_v40 = vld [vmem:[%s17099_s3 + $0x160] sm:$0xff]  }
 0x40c   : > { %11387 = vmatprep.subr.bf16.mxu1 %v13074_v33  ;;  %v16511_v33 = vsel %vm6367_vm5, %v9287_v28, %v9291_v11  ;;  %v13080_v28 = vld [vmem:[%s17099_s3 + $0x100] sm:$0xff]  }
 0x40e   : > { %7439 = vmatmul.mubr.bf16.gmra.mrb[76].mxu1 %v7269_v10  ;;  %v13089_v10 = vld [vmem:[%s17099_s3 + $0x168] sm:$0xff]  }
 0x40f   : > { %11388 = vmatpush3.bf16.msra.mxu1 %v13076_v17  ;;  %7583 = vmatprep.mubr.bf16.mxu1 %v16391_v34  ;;  %v13081_v17 = vld [vmem:[%s17099_s3 + $0x148] sm:$0xff]  }
 0x410   : > { %11389 = vmatprep.subr.bf16.mxu1 %v13077_v22  ;;  %v13082_v34 = vld [vmem:[%s17099_s3 + $0x108] sm:$0xff]   ;;  %v13088_v22 = vld [vmem:[%s17099_s3 + $0x120] sm:$0xff]  }
 0x413   : > { %11390 = vmatpush3.bf16.msra.mxu1 %v13078_v31  ;;  %v13090_v31 = vld [vmem:[%s17099_s3 + $0x128] sm:$0xff]  }
 0x414   : > { %11415 = vmatprep.subr.bf16.mxu1 %v13079_v19  ;;  %v13091_v19 = vld [vmem:[%s17099_s3 + $0x170] sm:$0xff]  }
 0x416   : > { %7584 = vmatmul.mubr.bf16.vlgmr.msra.gmra.mrb[80].mxu1 %v16389_v5  ;;  %v13085_v5 = vld [vmem:[%s17099_s3 + $0x158] sm:$0xff]  }
 0x417   : > { %11416 = vmatpush3.bf16.msra.mxu1 %v13080_v28  ;;  %7591 = vmatprep.mubr.bf16.mxu1 %v16351_v39  ;;  %v13092_v28 = vld [vmem:[%s17099_s3 + $0x130] sm:$0xff]  }
 0x418   : > { %11417 = vmatprep.subr.bf16.mxu1 %v13081_v17  ;;  %v13093_v17 = vld [vmem:[%s17099_s3 + $0x178] sm:$0xff]   ;;  %v13100_v39 = vld [vmem:[%s17099_s3 + $0x190] sm:$0xff]  }
 0x41b   : > { %11418 = vmatpush3.bf16.msra.mxu1 %v13082_v34  ;;  %v10987_v34 = vcombine.low %v16400_v4, %v16385_v42  ;;  %v7656_v42 = vrot.slane %v16368_v25, 1  ;;  %v13096_v4 = vld [vmem:[%s17099_s3 + $0x180] sm:$0xff]  }
 0x41c   : > { %11419 = vmatprep.subr.bf16.mxu1 %v13083_v16  ;;  %v13094_v16 = vld [vmem:[%s17099_s3 + $0x138] sm:$0xff]  }
 0x41e   : > { %7592 = vmatmul.mubr.bf16.gmra.mrb[84].mxu1 %v16368_v25  ;;  %v13099_v25 = vld [vmem:[%s17099_s3 + $0x1d0] sm:$0xff]  }
 0x41f   : > { %11420 = vmatpush3.bf16.msra.mxu1 %v13084_v18  ;;  %7599 = vmatprep.mubr.bf16.mxu1 %v16234_v9  ;;  %v13095_v18 = vld [vmem:[%s17099_s3 + $0x1c0] sm:$0xff]  }
 0x420   : > { %11421 = vmatprep.subr.bf16.mxu1 %v13085_v5  ;;  %v7655_v5 = vrot.slane %v10987_v34, 1  ;;  %v7671_v34 = vrot.slane %v16429_v29, 1  ;;  %v13106_v29 = vld [vmem:[%s17099_s3 + $0x1a8] sm:$0xff]  }
 0x423   : > { %11422 = vmatpush3.bf16.msra.mxu1 %v13086_v3  ;;  %v7663_v3 = vrot.slane %v16234_v9, 1  ;;  %v13098_v9 = vld [vmem:[%s17099_s3 + $0x188] sm:$0xff]  }
 0x424   : > { %11423 = vmatprep.subr.bf16.mxu1 %v13087_v40  ;;  %v7657_v40 = vsel %vm1797_vm0, %v7655_v5, %v7656_v42  ;;  %v13105_v5 = vld [vmem:[%s17099_s3 + $0x1e8] sm:$0xff]  }
 0x426   : > { %7600 = vmatmul.mubr.bf16.gmra.mrb[88].mxu1 %v16237_v37 }
 0x427   : > { %11424 = vmatpush3.bf16.msra.mxu1 %v13088_v22  ;;  %7607 = vmatprep.mubr.bf16.mxu1 %v16257_v58  ;;  %v7664_v22 = vsel %vm1797_vm0, %v7659_v23, %v7663_v3  ;;  %v13101_v23 = vld [vmem:[%s17099_s3 + $0x1d8] sm:$0xff]  }
 0x428   : > { %11425 = vmatprep.subr.bf16.mxu1 %v13089_v10  ;;  %v7661_v10 = vrot.slane %v16237_v37, 1  ;;  %v13102_v37 = vld [vmem:[%s17099_s3 + $0x198] sm:$0xff]  }
 0x42b   : > { %11426 = vmatpush3.bf16.msra.mxu1 %v13090_v31  ;;  %v7667_v31 = vrot.slane %v16257_v58, 1  ;;  %v13103_v58 = vld [vmem:[%s17099_s3 + $0x1e0] sm:$0xff]  }
 0x42c   : > { %11427 = vmatprep.subr.bf16.mxu1 %v13091_v19  ;;  %v7662_v19 = vsel %vm1797_vm0, %v7656_v42, %v7661_v10 }
 0x42d   : > { %v7672_v42 = vsel %vm1797_vm0, %v7667_v31, %v7671_v34  ;;  %v7858_v34 = vld [vmem:[#allocation2 + $0x48] sm:$0x11] }
 0x42e   : > { %7608 = vmatmul.mubr.bf16.gmra.mrb[92].mxu1 %v16259_v15 }
 0x42f   : > { %11428 = vmatpush3.bf16.msra.mxu1 %v13092_v28  ;;  %7809 = vmatprep.mubr.bf16.mxu1 %v16419_v53  ;;  %v13097_v53 = vld [vmem:[%s17099_s3 + $0x1c8] sm:$0xff]   ;;  %v7668_v28 = vsel %vm1797_vm0, %v7663_v3, %v7667_v31  ;;  %v13110_v31 = vld [vmem:[%s17099_s3 + $0x1b8] sm:$0xff]  }
 0x430   : > { %11429 = vmatprep.subr.bf16.mxu1 %v13093_v17  ;;  %v7665_v17 = vrot.slane %v16259_v15, 1 }
 0x432   : > { %v7666_v3 = vsel %vm1797_vm0, %v7661_v10, %v7665_v17 }
 0x433   : > { %11430 = vmatpush3.bf16.msra.mxu1 %v13094_v16  ;;  %v13104_v16 = vld [vmem:[%s17099_s3 + $0x1a0] sm:$0xff]  }
 0x434   : > { %11455 = vmatprep.subr.bf16.mxu1 %v13095_v18  ;;  %v7850_v18 = vld [vmem:[#allocation2 + $0x8] sm:$0xee] }
 0x435   : > { %v11038_v15 = vcombine.high %v7850_v18, %v16199_v59  ;;  %v11037_v10 = vcombine.low %v7850_v18, %v16199_v59  ;;  %v13119_v18 = vld [vmem:[%s17099_s3 + $0x260] sm:$0xff]  }
 0x436   : > { %7810 = vmatmul.mubr.bf16.vlgmr.msra.gmra.mrb[96].mxu1 %v7657_v40 }
 0x437   : > { %11456 = vmatpush3.bf16.msra.mxu1 %v13096_v4  ;;  %7817 = vmatprep.mubr.bf16.mxu1 %v7664_v22  ;;  %v13107_v4 = vld [vmem:[%s17099_s3 + $0x1f0] sm:$0xff]   ;;  %v7932_v40 = vrot.slane %v11038_v15, 1 }
 0x438   : > { %11457 = vmatprep.subr.bf16.mxu1 %v13097_v53  ;;  %v7669_v53 = vrot.slane %v16448_v7, 1  ;;  %v13108_v22 = vld [vmem:[%s17099_s3 + $0x1b0] sm:$0xff]  }
 0x439   : > { %v7934_v7 = vsel %vm1797_vm0, %v7932_v40, %v7933_v32  ;;  %v13113_v32 = vld [vmem:[%s17099_s3 + $0x248] sm:$0xff]  }
 0x43b   : > { %11458 = vmatpush3.bf16.msra.mxu1 %v13098_v9  ;;  %v13109_v9 = vld [vmem:[%s17099_s3 + $0x1f8] sm:$0xff]  }
 0x43c   : > { %11459 = vmatprep.subr.bf16.mxu1 %v13099_v25  ;;  %v7670_v25 = vsel %vm1797_vm0, %v7665_v17, %v7669_v53  ;;  %v13116_v17 = vld [vmem:[%s17099_s3 + $0x210] sm:$0xff]  }
 0x43e   : > { %7818 = vmatmul.mubr.bf16.gmra.mrb[100].mxu1 %v7662_v19  ;;  %v13112_v19 = vld [vmem:[%s17099_s3 + $0x200] sm:$0xff]  }
 0x43f   : > { %11460 = vmatpush3.bf16.msra.mxu1 %v13100_v39  ;;  %7825 = vmatprep.mubr.bf16.mxu1 %v7668_v28  ;;  %v13111_v39 = vld [vmem:[%s17099_s3 + $0x240] sm:$0xff]  }
 0x440   : > { %11461 = vmatprep.subr.bf16.mxu1 %v13101_v23  ;;  %v7929_v23 = vrot.slane %v11037_v10, 1 }
 0x442   : > { %v7931_v28 = vsel %vm1797_vm0, %v7929_v23, %v7930_v60  ;;  %v13117_v60 = vld [vmem:[%s17099_s3 + $0x258] sm:$0xff]  }
 0x443   : > { %11462 = vmatpush3.bf16.msra.mxu1 %v13102_v37  ;;  %v13114_v37 = vld [vmem:[%s17099_s3 + $0x208] sm:$0xff]  }
 0x444   : > { %11463 = vmatprep.subr.bf16.mxu1 %v13103_v58  ;;  %v13115_v58 = vld [vmem:[%s17099_s3 + $0x250] sm:$0xff]  }
 0x446   : > { %7826 = vmatmul.mubr.bf16.gmra.mrb[104].mxu1 %v7666_v3  ;;  %v8181_v3 = vshrl.u32 %v11038_v15, 16 }
 0x447   : > { %11464 = vmatpush3.bf16.msra.mxu1 %v13104_v16  ;;  %7833 = vmatprep.mubr.bf16.mxu1 %v7672_v42  ;;  %v13118_v16 = vld [vmem:[%s17099_s3 + $0x218] sm:$0xff]   ;;  %v8184_v42 = vshll.u32 %v11038_v15, 16  ;;  %v13123_v15 = vld [vmem:[%s17099_s3 + $0x228] sm:$0xff]  }
 0x448   : > { %11465 = vmatprep.subr.bf16.mxu1 %v13105_v5  ;;  %v8183_v53 = vrot.slane %v8181_v3, 1 }
 0x449   : > { %v8186_v40 = vrot.slane %v8184_v42, 2 }
 0x44b   : > { %11466 = vmatpush3.bf16.msra.mxu1 %v13106_v29  ;;  %v11045_v29 = vcombine.low %v7858_v34, %v7858_v34 }
 0x44c   : > { %11467 = vmatprep.subr.bf16.mxu1 %v13107_v4 }
 0x44e   : > { %7834 = vmatmul.mubr.bf16.gmra.mrb[108].mxu1 %v7670_v25  ;;  %v8164_v25 = vshrl.u32 %v11037_v10, 16 }
 0x44f   : > { %11468 = vmatpush3.bf16.msra.mxu1 %v13108_v22  ;;  %8083 = vmatprep.mubr.bf16.mxu1 %v7934_v7  ;;  %v13124_v22 = vld [vmem:[%s17099_s3 + $0x270] sm:$0xff]   ;;  %v8187_v7 = vor.u32 %v8186_v40, %v8183_v53  ;;  %v13140_v40 = vld [vmem:[%s17099_s3 + $0x2e8] sm:$0xff]  }
 0x450   : > { %11469 = vmatprep.subr.bf16.mxu1 %v13109_v9  ;;  %v7943_v9 = vrot.slane %v11045_v29, 1  ;;  %v8166_v23 = vrot.slane %v8164_v25, 1 }
 0x453   : > { %11470 = vmatpush3.bf16.msra.mxu1 %v13110_v31  ;;  %v13127_v31 = vld [vmem:[%s17099_s3 + $0x278] sm:$0xff]  }
 0x454   : > { %11495 = vmatprep.subr.bf16.mxu1 %v13111_v39  ;;  %v7944_v39 = vsel %vm1797_vm0, %v7939_v24, %v7943_v9  ;;  %v13130_v24 = vld [vmem:[%s17099_s3 + $0x280] sm:$0xff]  }
 0x456   : > { %8084 = vmatmul.mubr.bf16.vlgmr.msra.gmra.mrb[112].mxu1 %v7931_v28  ;;  %v13129_v28 = vld [vmem:[%s17099_s3 + $0x2c0] sm:$0xff]  }
 0x457   : > { %11496 = vmatpush3.bf16.msra.mxu1 %v13112_v19  ;;  %8091 = vmatprep.mubr.bf16.mxu1 %v16288_v43  ;;  %v11046_v43 = vcombine.high %v7858_v34, %v7858_v34 }
 0x458   : > { %11497 = vmatprep.subr.bf16.mxu1 %v13113_v32  ;;  %v13128_v32 = vld [vmem:[%s17099_s3 + $0x238] sm:$0xff]  }
 0x459   : > { %v7945_v5 = vrot.slane %v11046_v43, 1  ;;  %v13133_v43 = vld [vmem:[%s17099_s3 + $0x2d0] sm:$0xff]  }
 0x45b   : > { %11498 = vmatpush3.bf16.msra.mxu1 %v13114_v37  ;;  %v7946_v4 = vsel %vm1797_vm0, %v7941_v45, %v7945_v5  ;;  %v13126_v45 = vld [vmem:[%s17099_s3 + $0x230] sm:$0xff]  }
 0x45c   : > { %11499 = vmatprep.subr.bf16.mxu1 %v13115_v58  ;;  %v8124_v58 = vld [vmem:[#allocation2 + $0x48] sm:$0x33] }
 0x45d   : > { %v16723_v34 = vcombine.high %v8124_v58, %v8124_v58  ;;  %v16740_v5 = vcombine.low %v8124_v58, %v8124_v58  ;;  %v13150_v58 = vld [vmem:[%s17099_s3 + $0x308] sm:$0xff]  }
 0x45e   : > { %8092 = vmatmul.mubr.bf16.gmra.mrb[116].mxu1 %v16293_v44  ;;  %v13120_v44 = vld [vmem:[%s17099_s3 + $0x220] sm:$0xff]  }
 0x45f   : > { %11500 = vmatpush3.bf16.msra.mxu1 %v13116_v17  ;;  %8099 = vmatprep.mubr.bf16.mxu1 %v16298_v35  ;;  %v13122_v35 = vld [vmem:[%s17099_s3 + $0x268] sm:$0xff]   ;;  %v8234_v29 = vshrl.u32 %v16740_v5, 16 }
 0x460   : > { %11501 = vmatprep.subr.bf16.mxu1 %v13117_v60  ;;  %v13132_v60 = vld [vmem:[%s17099_s3 + $0x288] sm:$0xff]  }
 0x463   : > { %11502 = vmatpush3.bf16.msra.mxu1 %v13118_v16  ;;  %v8243_v16 = vshrl.u32 %v16723_v34, 16 }
 0x464   : > { %11503 = vmatprep.subr.bf16.mxu1 %v13119_v18  ;;  %v8246_v18 = vshll.u32 %v16723_v34, 16 }
 0x465   : > { %v8245_v3 = vrot.slane %v8243_v16, 1  ;;  %v13156_v16 = vld [vmem:[%s17099_s3 + $0x320] sm:$0xff]  }
 0x466   : > { %8100 = vmatmul.mubr.bf16.gmra.mrb[120].mxu1 %v16303_v49  ;;  %v8167_v49 = vshll.u32 %v11037_v10, 16  ;;  %v8196_v10 = vsel %vm3244_vm2, %v8187_v7, %v16316_v47  ;;  %v13131_v47 = vld [vmem:[%s17099_s3 + $0x2c8] sm:$0xff]   ;;  %v8248_v42 = vrot.slane %v8246_v18, 2  ;;  %v13142_v7 = vld [vmem:[%s17099_s3 + $0x2f0] sm:$0xff]  }
 0x467   : > { %11504 = vmatpush3.bf16.msra.mxu1 %v13120_v44  ;;  %8107 = vmatprep.mubr.bf16.mxu1 %v7946_v4  ;;  %v13136_v44 = vld [vmem:[%s17099_s3 + $0x298] sm:$0xff]   ;;  %v8237_v4 = vshll.u32 %v16740_v5, 16 }
 0x468   : > { %11505 = vmatprep.subr.bf16.mxu1 %v13122_v35  ;;  %v8169_v19 = vrot.slane %v8167_v49, 2  ;;  %v13137_v35 = vld [vmem:[%s17099_s3 + $0x2e0] sm:$0xff]   ;;  %v8249_v53 = vor.u32 %v8248_v42, %v8245_v3  ;;  %v13141_v49 = vld [vmem:[%s17099_s3 + $0x2a8] sm:$0xff]   ;;  %v13160_v42 = vld [vmem:[%s17099_s3 + $0x330] sm:$0xff]  }
 0x46a   : > { %v8170_v37 = vor.u32 %v8169_v19, %v8166_v23  ;;  %v8250_v9 = vsel %vm3244_vm2, %v16329_v48, %v8249_v53  ;;  %v13144_v48 = vld [vmem:[%s17099_s3 + $0x2b0] sm:$0xff]   ;;  %v17196_v19 = vrot.slane %v16244_v2, 2  ;;  %v13149_v2 = vld [vmem:[%s17099_s3 + $0x348] sm:$0xff]  }
 0x46b   : > { %11506 = vmatpush3.bf16.msra.mxu1 %v13123_v15  ;;  %v8236_v15 = vrot.slane %v8234_v29, 1  ;;  %v17199_v29 = vrot.slane %v16277_v21, 2  ;;  %v8742_v21 = vrot.slane %v16464_v6, 2 }
 0x46c   : > { %11507 = vmatprep.subr.bf16.mxu1 %v13124_v22  ;;  %v8179_v17 = vsel %vm3244_vm2, %v8170_v37, %v16319_v52  ;;  %v13134_v52 = vld [vmem:[%s17099_s3 + $0x290] sm:$0xff]   ;;  %v8239_v22 = vrot.slane %v8237_v4, 2 }
 0x46e   : > { %8108 = vmatmul.mubr.bf16.gmra.mrb[124].mxu1 %v7944_v39 }
 0x46f   : > { %11508 = vmatpush3.bf16.msra.mxu1 %v13126_v45  ;;  %8387 = vmatprep.mubr.bf16.mxu1 %v8196_v10  ;;  %v8240_v45 = vor.u32 %v8239_v22, %v8236_v15  ;;  %v13172_v22 = vld [vmem:[%s17099_s3 + $0x3c8] sm:$0xff]  }
 0x470   : > { %11509 = vmatprep.subr.bf16.mxu1 %v13127_v31 }
 0x471   : > { %v8241_v39 = vsel %vm3244_vm2, %v16332_v12, %v8240_v45  ;;  %v17197_v12 = vrot.slane %v16241_v27, 2  ;;  %v13152_v27 = vld [vmem:[%s17099_s3 + $0x310] sm:$0xff]   ;;  %v8747_v45 = vrot.slane %v16468_v56, 2 }
 0x473   : > { %11510 = vmatpush3.bf16.msra.mxu1 %v13128_v32  ;;  %v13146_v32 = vld [vmem:[%s17099_s3 + $0x2b8] sm:$0xff]  }
 0x474   : > { %11535 = vmatprep.subr.bf16.mxu1 %v13129_v28  ;;  %v13147_v28 = vld [vmem:[%s17099_s3 + $0x340] sm:$0xff]  }
 0x476   : > { %8388 = vmatmul.mubr.bf16.vlgmr.msra.gmra.mrb[128].mxu1 %v8179_v17  ;;  %v13153_v17 = vld [vmem:[%s17099_s3 + $0x358] sm:$0xff]  }
 0x477   : > { %11536 = vmatpush3.bf16.msra.mxu1 %v13130_v24  ;;  %8395 = vmatprep.mubr.bf16.mxu1 %v16323_v63  ;;  %v13135_v63 = vld [vmem:[%s17099_s3 + $0x2d8] sm:$0xff]  }
 0x478   : > { %11537 = vmatprep.subr.bf16.mxu1 %v13131_v47  ;;  %v13151_v47 = vld [vmem:[%s17099_s3 + $0x350] sm:$0xff]  }
 0x47b   : > { %11538 = vmatpush3.bf16.msra.mxu1 %v13132_v60  ;;  %v13155_v60 = vld [vmem:[%s17099_s3 + $0x360] sm:$0xff]  }
 0x47c   : > { %11539 = vmatprep.subr.bf16.mxu1 %v13133_v43  ;;  %v8483_v43 = vrot.slane %v16723_v34, 2  ;;  %v13158_v34 = vld [vmem:[%s17099_s3 + $0x328] sm:$0xff]  }
 0x47e   : > { %8396 = vmatmul.mubr.bf16.gmra.mrb[132].mxu1 %v16327_v41  ;;  %v13138_v41 = vld [vmem:[%s17099_s3 + $0x2a0] sm:$0xff]  }
 0x47f   : > { %11540 = vmatpush3.bf16.msra.mxu1 %v13134_v52  ;;  %8403 = vmatprep.mubr.bf16.mxu1 %v16337_v55  ;;  %v8428_v55 = vld [vmem:[#allocation2 + $0x8] sm:$0xcc]  ;;  %v8662_v52 = vld [vmem:[#allocation2 + $0x10] sm:$0xcc] }
 0x480   : > { %11541 = vmatprep.subr.bf16.mxu1 %v13135_v63  ;;  %v11146_v25 = vcombine.high %v8428_v55, %v16199_v59  ;;  %v11145_v23 = vcombine.low %v8428_v55, %v16199_v59  ;;  %v13148_v59 = vld [vmem:[%s17099_s3 + $0x300] sm:$0xff]   ;;  %v13159_v63 = vld [vmem:[%s17099_s3 + $0x370] sm:$0xff]   ;;  %v16834_v3 = vcombine.high %v8662_v52, %v16454_v57  ;;  %v16850_v53 = vcombine.low %v8662_v52, %v16454_v57 }
 0x481   : > { %v13168_v55 = vld [vmem:[%s17099_s3 + $0x3c0] sm:$0xff]  }
 0x482   : > { %v8470_v31 = vrot.slane %v11146_v25, 2  ;;  %v8467_v37 = vrot.slane %v11145_v23, 2  ;;  %v8741_v15 = vrot.slane %v16850_v53, 2  ;;  %v13169_v57 = vld [vmem:[%s17099_s3 + $0x380] sm:$0xff]   ;;  %v8748_v23 = vsel %vm4082_vm3, %v8742_v21, %v8747_v45 }
 0x483   : > { %11542 = vmatpush3.bf16.msra.mxu1 %v13136_v44  ;;  %v8744_v44 = vrot.slane %v16834_v3, 2 }
 0x484   : > { %11543 = vmatprep.subr.bf16.mxu1 %v13137_v35  ;;  %v8472_v10 = vsel %vm4082_vm3, %v8470_v31, %v17196_v19  ;;  %v8469_v24 = vsel %vm4082_vm3, %v8467_v37, %v17197_v12  ;;  %v13166_v35 = vld [vmem:[%s17099_s3 + $0x378] sm:$0xff]   ;;  %v8753_v31 = vrot.slane %v16474_v8, 2  ;;  %v8751_v37 = vrot.slane %v16480_v61, 2 }
 0x485   : > { %v9004_v12 = vshll.u32 %v16459_v26, 16 }
 0x486   : > { %8404 = vmatmul.mubr.bf16.gmra.mrb[136].mxu1 %v16343_v14  ;;  %v13145_v14 = vld [vmem:[%s17099_s3 + $0x2f8] sm:$0xff]  }
 0x487   : > { %11544 = vmatpush3.bf16.msra.mxu1 %v13138_v41  ;;  %8411 = vmatprep.mubr.bf16.mxu1 %v8250_v9  ;;  %v13167_v41 = vld [vmem:[%s17099_s3 + $0x338] sm:$0xff]   ;;  %v8743_v9 = vsel %vm4082_vm3, %v8741_v15, %v8742_v21 }
 0x488   : > { %11545 = vmatprep.subr.bf16.mxu1 %v13140_v40  ;;  %v8749_v40 = vrot.slane %v16466_v51, 2  ;;  %v13190_v21 = vld [vmem:[%s17099_s3 + $0x3f8] sm:$0xff]  }
 0x48a   : > { %v8754_v19 = vsel %vm4082_vm3, %v8749_v40, %v8753_v31 }
 0x48b   : > { %11546 = vmatpush3.bf16.msra.mxu1 %v13141_v49  ;;  %v13173_v49 = vld [vmem:[%s17099_s3 + $0x388] sm:$0xff]  }
 0x48c   : > { %11547 = vmatprep.subr.bf16.mxu1 %v13142_v7  ;;  %v13174_v7 = vld [vmem:[%s17099_s3 + $0x3d0] sm:$0xff]  }
 0x48e   : > { %8412 = vmatmul.mubr.bf16.gmra.mrb[140].mxu1 %v8241_v39  ;;  %v13179_v39 = vld [vmem:[%s17099_s3 + $0x3d8] sm:$0xff]  }
 0x48f   : > { %11548 = vmatpush3.bf16.msra.mxu1 %v13144_v48  ;;  %8621 = vmatprep.mubr.bf16.mxu1 %v8472_v10  ;;  %v13176_v48 = vld [vmem:[%s17099_s3 + $0x390] sm:$0xff]  }
 0x490   : > { %11549 = vmatprep.subr.bf16.mxu1 %v13145_v14  ;;  %v8670_v14 = vld [vmem:[#allocation2 + $0x50] sm:$0x33] }
 0x491   : > { %v11204_v10 = vcombine.high %v8670_v14, %v8670_v14 }
 0x493   : > { %11550 = vmatpush3.bf16.msra.mxu1 %v13146_v32  ;;  %v13180_v32 = vld [vmem:[%s17099_s3 + $0x398] sm:$0xff]  }
 0x494   : > { %11575 = vmatprep.subr.bf16.mxu1 %v13147_v28  ;;  %v13181_v28 = vld [vmem:[%s17099_s3 + $0x3e0] sm:$0xff]  }
 0x496   : > { %8622 = vmatmul.mubr.bf16.vlgmr.msra.gmra.mrb[144].mxu1 %v8469_v24  ;;  %v13183_v24 = vld [vmem:[%s17099_s3 + $0x3a0] sm:$0xff]  }
 0x497   : > { %11576 = vmatpush3.bf16.msra.mxu1 %v13148_v59  ;;  %8629 = vmatprep.mubr.bf16.mxu1 %v16363_v62  ;;  %v13154_v62 = vld [vmem:[%s17099_s3 + $0x318] sm:$0xff]   ;;  %v8757_v59 = vrot.slane %v11204_v10, 2  ;;  %v9037_v10 = vshrl.u32 %v16474_v8, 16 }
 0x498   : > { %11577 = vmatprep.subr.bf16.mxu1 %v13149_v2  ;;  %v9001_v2 = vshrl.u32 %v16459_v26, 16 }
 0x49b   : > { %11578 = vmatpush3.bf16.msra.mxu1 %v13150_v58  ;;  %v13185_v58 = vld [vmem:[%s17099_s3 + $0x3e8] sm:$0xff]  }
 0x49c   : > { %11579 = vmatprep.subr.bf16.mxu1 %v13151_v47  ;;  %v8993_v47 = vshrl.u32 %v16834_v3, 16 }
 0x49e   : > { %8630 = vmatmul.mubr.bf16.gmra.mrb[148].mxu1 %v16373_v20  ;;  %v13157_v20 = vld [vmem:[%s17099_s3 + $0x368] sm:$0xff]  }
 0x49f   : > { %11580 = vmatpush3.bf16.msra.mxu1 %v13152_v27  ;;  %8637 = vmatprep.mubr.bf16.mxu1 %v16378_v46  ;;  %v17198_v46 = vrot.slane %v16275_v30, 2  ;;  %v8745_v30 = vrot.slane %v16459_v26, 2  ;;  %v8996_v27 = vshll.u32 %v16834_v3, 16  ;;  %v8758_v26 = vsel %vm4082_vm3, %v8753_v31, %v8757_v59 }
 0x4a0   : > { %11581 = vmatprep.subr.bf16.mxu1 %v13153_v17  ;;  %v8752_v17 = vsel %vm4082_vm3, %v8747_v45, %v8751_v37  ;;  %v8987_v3 = vshll.u32 %v16464_v6, 16  ;;  %v13192_v45 = vld [vmem:[%s17099_s3 + $0x440] sm:$0xff]  }
 0x4a1   : > { %v8484_v18 = vsel %vm4082_vm3, %v17198_v46, %v8483_v43  ;;  %v8750_v25 = vsel %vm4082_vm3, %v8745_v30, %v8749_v40  ;;  %v9006_v43 = vrot.slane %v9004_v12, 3  ;;  %v8995_v46 = vrot.slane %v8993_v47, 2  ;;  %v8936_v12 = vld [vmem:[#allocation2 + $0x50] sm:$0x77] }
 0x4a3   : > { %11582 = vmatpush3.bf16.msra.mxu1 %v13154_v62  ;;  %v11203_v62 = vcombine.low %v8670_v14, %v8670_v14  ;;  %v9010_v14 = vshrl.u32 %v16468_v56, 16 }
 0x4a4   : > { %11583 = vmatprep.subr.bf16.mxu1 %v13155_v60  ;;  %v9003_v60 = vrot.slane %v9001_v2, 2  ;;  %v13193_v2 = vld [vmem:[%s17099_s3 + $0x400] sm:$0xff]  }
 0x4a5   : > { %v8755_v52 = vrot.slane %v11203_v62, 2 }
 0x4a6   : > { %8638 = vmatmul.mubr.bf16.gmra.mrb[152].mxu1 %v16383_v54  ;;  %v8481_v54 = vrot.slane %v16740_v5, 2  ;;  %v8746_v5 = vsel %vm4082_vm3, %v8744_v44, %v8745_v30  ;;  %v9007_v30 = vor.u32 %v9006_v43, %v9003_v60  ;;  %v9022_v44 = vshll.u32 %v16466_v51, 16 }
 0x4a7   : > { %11584 = vmatpush3.bf16.msra.mxu1 %v13156_v16  ;;  %8645 = vmatprep.mubr.bf16.mxu1 %v8484_v18  ;;  %v13186_v16 = vld [vmem:[%s17099_s3 + $0x3a8] sm:$0xff]   ;;  %v8998_v18 = vrot.slane %v8996_v27, 3  ;;  %v8756_v40 = vsel %vm4082_vm3, %v8751_v37, %v8755_v52  ;;  %v9012_v27 = vrot.slane %v9010_v14, 2  ;;  %v16950_v43 = vcombine.high %v8936_v12, %v8936_v12 }
 0x4a8   : > { %11585 = vmatprep.subr.bf16.mxu1 %v13157_v20  ;;  %v8482_v4 = vsel %vm4082_vm3, %v17199_v29, %v8481_v54  ;;  %v13187_v20 = vld [vmem:[%s17099_s3 + $0x3f0] sm:$0xff]   ;;  %v9031_v52 = vshll.u32 %v16480_v61, 16 }
 0x4ab   : > { %11586 = vmatpush3.bf16.msra.mxu1 %v13158_v34 }
 0x4ac   : > { %11587 = vmatprep.subr.bf16.mxu1 %v13159_v63  ;;  %v8984_v63 = vshrl.u32 %v16464_v6, 16  ;;  %v8999_v6 = vor.u32 %v8998_v18, %v8995_v46 }
 0x4ae   : > { %8646 = vmatmul.mubr.bf16.gmra.mrb[156].mxu1 %v8482_v4  ;;  %v13189_v4 = vld [vmem:[%s17099_s3 + $0x3b0] sm:$0xff]   ;;  %v8986_v15 = vrot.slane %v8984_v63, 2 }
 0x4af   : > { %11588 = vmatpush3.bf16.msra.mxu1 %v13160_v42  ;;  %8895 = vmatprep.mubr.bf16.mxu1 %v8746_v5  ;;  %v9019_v42 = vshrl.u32 %v16466_v51, 16  ;;  %v8976_v5 = vshrl.u32 %v16850_v53, 16 }
 0x4b0   : > { %11589 = vmatprep.subr.bf16.mxu1 %v13166_v35 }
 0x4b3   : > { %11590 = vmatpush3.bf16.msra.mxu1 %v13167_v41  ;;  %v8979_v41 = vshll.u32 %v16850_v53, 16  ;;  %v13191_v53 = vld [vmem:[%s17099_s3 + $0x3b8] sm:$0xff]  }
 0x4b4   : > { %11615 = vmatprep.subr.bf16.mxu1 %v13168_v55 }
 0x4b6   : > { %8896 = vmatmul.mubr.bf16.vlgmr.msra.gmra.mrb[160].mxu1 %v8743_v9  ;;  %v9021_v9 = vrot.slane %v9019_v42, 2 }
 0x4b7   : > { %11616 = vmatpush3.bf16.msra.mxu1 %v13169_v57  ;;  %8903 = vmatprep.mubr.bf16.mxu1 %v8750_v25  ;;  %v8989_v57 = vrot.slane %v8987_v3, 3  ;;  %v9024_v25 = vrot.slane %v9022_v44, 3 }
 0x4b8   : > { %11617 = vmatprep.subr.bf16.mxu1 %v13172_v22  ;;  %v9008_v22 = vsel %vm5529_vm4, %v8999_v6, %v9007_v30 }
 0x4bb   : > { %11618 = vmatpush3.bf16.msra.mxu1 %v13173_v49  ;;  %v8978_v49 = vrot.slane %v8976_v5, 2  ;;  %v13198_v5 = vld [vmem:[%s17099_s3 + $0x458] sm:$0xff]  }
 0x4bc   : > { %11619 = vmatprep.subr.bf16.mxu1 %v13174_v7  ;;  %v8981_v7 = vrot.slane %v8979_v41, 3  ;;  %v16970_v41 = vcombine.low %v8936_v12, %v8936_v12 }
 0x4be   : > { %8904 = vmatmul.mubr.bf16.gmra.mrb[164].mxu1 %v8748_v23  ;;  %v8982_v59 = vor.u32 %v8981_v7, %v8978_v49  ;;  %v9046_v7 = vshrl.u32 %v16970_v41, 16 }
 0x4bf   : > { %11620 = vmatpush3.bf16.msra.mxu1 %v13176_v48  ;;  %8911 = vmatprep.mubr.bf16.mxu1 %v8754_v19  ;;  %v8990_v48 = vor.u32 %v8989_v57, %v8986_v15  ;;  %v9025_v19 = vor.u32 %v9024_v25, %v9021_v9  ;;  %v13199_v9 = vld [vmem:[%s17099_s3 + $0x418] sm:$0xff]   ;;  %v13200_v25 = vld [vmem:[%s17099_s3 + $0x460] sm:$0xff]  }
 0x4c0   : > { %11621 = vmatprep.subr.bf16.mxu1 %v13179_v39  ;;  %v9013_v39 = vshll.u32 %v16468_v56, 16  ;;  %v13194_v56 = vld [vmem:[%s17099_s3 + $0x448] sm:$0xff]  }
 0x4c1   : > { %v8991_v47 = vsel %vm5529_vm4, %v8982_v59, %v8990_v48  ;;  %v9026_v62 = vsel %vm5529_vm4, %v9007_v30, %v9025_v19  ;;  %v9058_v30 = vshll.u32 %v16950_v43, 16  ;;  %v9048_v59 = vrot.slane %v9046_v7, 2 }
 0x4c3   : > { %11622 = vmatpush3.bf16.msra.mxu1 %v13180_v32  ;;  %v9040_v32 = vshll.u32 %v16474_v8, 16 }
 0x4c4   : > { %11623 = vmatprep.subr.bf16.mxu1 %v13181_v28 }
 0x4c5   : > { %v9042_v60 = vrot.slane %v9040_v32, 3 }
 0x4c6   : > { %8912 = vmatmul.mubr.bf16.gmra.mrb[168].mxu1 %v8752_v17  ;;  %v9015_v17 = vrot.slane %v9013_v39, 3 }
 0x4c7   : > { %11624 = vmatpush3.bf16.msra.mxu1 %v13183_v24  ;;  %8919 = vmatprep.mubr.bf16.mxu1 %v8758_v26  ;;  %v9039_v26 = vrot.slane %v9037_v10, 2  ;;  %v13203_v10 = vld [vmem:[%s17099_s3 + $0x468] sm:$0xff]  }
 0x4c8   : > { %11625 = vmatprep.subr.bf16.mxu1 %v13185_v58  ;;  %v9016_v18 = vor.u32 %v9015_v17, %v9012_v27 }
 0x4c9   : > { %v11351_v34 = vpop.f32.mrb[64].mxu1  ;;  %v9043_v3 = vor.u32 %v9042_v60, %v9039_v26  ;;  %v13207_v60 = vld [vmem:[%s17099_s3 + $0x430] sm:$0xff]  }
 0x4ca   : > { %v11352_v54 = vpop.f32.mrb[65].mxu1  ;;  %v9017_v6 = vsel %vm5529_vm4, %v8990_v48, %v9016_v18 }
 0x4cb   : > { %v16914_v35 = vadd.f32 %v11352_v54, %v11351_v34  ;;  %11626 = vmatpush3.bf16.msra.mxu1 %v13186_v16  ;;  %v11354_v29 = vpop.f32.mrb[66].mxu1  ;;  %v13195_v16 = vld [vmem:[%s17099_s3 + $0x408] sm:$0xff]   ;;  %v9028_v34 = vshrl.u32 %v16480_v61, 16  ;;  %v9055_v54 = vshrl.u32 %v16950_v43, 16  ;;  %v9044_v15 = vsel %vm5529_vm4, %v9025_v19, %v9043_v3 }
 0x4cc   : > { %v11355_v55 = vpop.f32.mrb[67].mxu1  ;;  %11627 = vmatprep.subr.bf16.mxu1 %v13187_v20  ;;  %v13196_v20 = vld [vmem:[%s17099_s3 + $0x450] sm:$0xff]  }
 0x4cd   : > { %v16924_v51 = vadd.f32 %v11355_v55, %v11354_v29  ;;  %v13197_v29 = vld [vmem:[%s17099_s3 + $0x410] sm:$0xff]   ;;  %v9057_v57 = vrot.slane %v9055_v54, 2 }
 0x4ce   : > { %8920 = vmatmul.mubr.bf16.gmra.mrb[172].mxu1 %v8756_v40  ;;  %v9033_v40 = vrot.slane %v9031_v52, 3 }
 0x4cf   : > { %11628 = vmatpush3.bf16.msra.mxu1 %v13189_v4  ;;  %9199 = vmatprep.mubr.bf16.mxu1 %v9008_v22  ;;  %v9060_v22 = vrot.slane %v9058_v30, 3 }
 0x4d0   : > { %11629 = vmatprep.subr.bf16.mxu1 %v13190_v21  ;;  %v9030_v21 = vrot.slane %v9028_v34, 2 }
 0x4d1   : > { %v11357_v31 = vpop.f32.mrb[68].mxu1  ;;  %v9061_v48 = vor.u32 %v9060_v22, %v9057_v57 }
 0x4d2   : > { %v11358_v23 = vpop.f32.mrb[69].mxu1  ;;  %v9034_v49 = vor.u32 %v9033_v40, %v9030_v21 }
 0x4d3   : > { %v16938_v28 = vadd.f32 %v11358_v23, %v11357_v31  ;;  %11630 = vmatpush3.bf16.msra.mxu1 %v13191_v53  ;;  %v11360_v37 = vpop.f32.mrb[70].mxu1  ;;  %v13201_v23 = vld [vmem:[%s17099_s3 + $0x420] sm:$0xff]   ;;  %v9062_v12 = vsel %vm5529_vm4, %v9043_v3, %v9061_v48 }
 0x4d4   : > { %v11361_v24 = vpop.f32.mrb[71].mxu1  ;;  %11655 = vmatprep.subr.bf16.mxu1 %v13192_v45  ;;  %v9049_v45 = vshll.u32 %v16970_v41, 16 }
 0x4d5   : > { %v16946_v58 = vadd.f32 %v11361_v24, %v11360_v37  ;;  %v9035_v37 = vsel %vm5529_vm4, %v9016_v18, %v9034_v49  ;;  %v13204_v24 = vld [vmem:[%s17099_s3 + $0x428] sm:$0xff]  }
 0x4d6   : > { %9200 = vmatmul.mubr.bf16.vlgmr.msra.gmra.mrb[176].mxu1 %v8991_v47 }
 0x4d7   : > { %11656 = vmatpush3.bf16.msra.mxu1 %v13193_v2  ;;  %9207 = vmatprep.mubr.bf16.mxu1 %v9026_v62  ;;  %v9051_v2 = vrot.slane %v9049_v45, 3 }
 0x4d8   : > { %11657 = vmatprep.subr.bf16.mxu1 %v13194_v56  ;;  %v13205_v56 = vld [vmem:[%s17099_s3 + $0x470] sm:$0xff]  }
 0x4d9   : > { %v11363_v46 = vpop.f32.mrb[72].mxu1  ;;  %v9052_v27 = vor.u32 %v9051_v2, %v9048_v59 }
 0x4da   : > { %v11364_v63 = vpop.f32.mrb[73].mxu1 }
 0x4db   : > { %v16962_v42 = vadd.f32 %v11364_v63, %v11363_v46  ;;  %11658 = vmatpush3.bf16.msra.mxu1 %v13195_v16  ;;  %v11366_v44 = vpop.f32.mrb[74].mxu1  ;;  %v9053_v34 = vsel %vm5529_vm4, %v9034_v49, %v9052_v27  ;;  %v13211_v63 = vld [vmem:[%s17099_s3 + $0x438] sm:$0xff]  }
 0x4dc   : > { %v11367_v4 = vpop.f32.mrb[75].mxu1  ;;  %11659 = vmatprep.subr.bf16.mxu1 %v13196_v20  ;;  %v13210_v20 = vld [vmem:[%s17099_s3 + $0x478] sm:$0xff]  }
 0x4dd   : > { %v16972_v55 = vadd.f32 %v11367_v4, %v11366_v44 }
 0x4de   : > { %9208 = vmatmul.mubr.bf16.gmra.mrb[180].mxu1 %v9017_v6 }
 0x4df   : > { %11660 = vmatpush3.bf16.msra.mxu1 %v13197_v29  ;;  %9215 = vmatprep.mubr.bf16.mxu1 %v9044_v15 }
 0x4e0   : > { %11661 = vmatprep.subr.bf16.mxu1 %v13198_v5 }
 0x4e1   : > { %v11369_v53 = vpop.f32.mrb[76].mxu1 }
 0x4e2   : > { %v11370_v31 = vpop.f32.mrb[77].mxu1 }
 0x4e3   : > { %v16984_v14 = vadd.f32 %v11370_v31, %v11369_v53  ;;  %11662 = vmatpush3.bf16.msra.mxu1 %v13199_v9  ;;  %v11372_v39 = vpop.f32.mrb[78].mxu1 }
 0x4e4   : > { %v11373_v19 = vpop.f32.mrb[79].mxu1  ;;  %11663 = vmatprep.subr.bf16.mxu1 %v13200_v25 }
 0x4e5   : > { %v11374_v32 = vadd.f32 %v11373_v19, %v11372_v39 }
 0x4e6   : > { %9216 = vmatmul.mubr.bf16.gmra.mrb[184].mxu1 %v9035_v37 }
 0x4e7   : > { %11664 = vmatpush3.bf16.msra.mxu1 %v13201_v23  ;;  %9223 = vmatprep.mubr.bf16.mxu1 %v9062_v12 }
 0x4e8   : > { %11665 = vmatprep.subr.bf16.mxu1 %v13203_v10 }
 0x4e9   : > { %v11391_v47 = vpop.f32.mrb[80].mxu1 }
 0x4ea   : > { %v11392_v17 = vpop.f32.mrb[81].mxu1 }
 0x4eb   : > { %v11393_v62 = vadd.f32 %v11392_v17, %v11391_v47  ;;  %11666 = vmatpush3.bf16.msra.mxu1 %v13204_v24  ;;  %v11394_v26 = vpop.f32.mrb[82].mxu1 }
 0x4ec   : > { %v11395_v16 = vpop.f32.mrb[83].mxu1  ;;  %11667 = vmatprep.subr.bf16.mxu1 %v13205_v56 }
 0x4ed   : > { %v7586_v46 = vadd.f32 %v11393_v62, %v16914_v35  ;;  %v11396_v18 = vadd.f32 %v11395_v16, %v11394_v26 }
 0x4ee   : > { %9224 = vmatmul.mubr.bf16.gmra.mrb[188].mxu1 %v9053_v34 }
 0x4ef   : > { %v7589_v52 = vadd.f32 %v11396_v18, %v16924_v51  ;;  %11668 = vmatpush3.bf16.msra.mxu1 %v13207_v60  ;;  %9433 = vmatprep.mubr.bf16.mxu1 %v16491_v36 }
 0x4f0   : > { %11669 = vmatprep.subr.bf16.mxu1 %v13210_v20 }
 0x4f1   : > { %v11397_v3 = vpop.f32.mrb[84].mxu1 }
 0x4f2   : > { %v11398_v54 = vpop.f32.mrb[85].mxu1 }
 0x4f3   : > { %v11399_v30 = vadd.f32 %v11398_v54, %v11397_v3  ;;  %11670 = vmatpush3.bf16.msra.mxu1 %v13211_v63  ;;  %v11400_v44 = vpop.f32.mrb[86].mxu1 }
 0x4f4   : > { %v11401_v35 = vpop.f32.mrb[87].mxu1 }
 0x4f5   : > { %v7594_v29 = vadd.f32 %v11399_v30, %v16938_v28  ;;  %v11402_v4 = vadd.f32 %v11401_v35, %v11400_v44 }
 0x4f6   : > { %9434 = vmatmul.mubr.bf16.vlgmr.msra.gmra.mrb[192].mxu1 %v16498_v50 }
 0x4f7   : > { %v7597_v51 = vadd.f32 %v11402_v4, %v16946_v58  ;;  %9441 = vmatprep.mubr.bf16.mxu1 %v16501_v1  ;;  %v9295_v58 = vrot.slane %v16950_v43, 3 }
 0x4f9   : > { %v11403_v36 = vpop.f32.mrb[88].mxu1 }
 0x4fa   : > { %v11404_v5 = vpop.f32.mrb[89].mxu1 }
 0x4fb   : > { %v11405_v6 = vadd.f32 %v11404_v5, %v11403_v36  ;;  %v11406_v21 = vpop.f32.mrb[90].mxu1 }
 0x4fc   : > { %v11407_v40 = vpop.f32.mrb[91].mxu1 }
 0x4fd   : > { %v7602_v15 = vadd.f32 %v11405_v6, %v16962_v42  ;;  %v11408_v57 = vadd.f32 %v11407_v40, %v11406_v21 }
 0x4fe   : > { %9442 = vmatmul.mubr.bf16.gmra.mrb[196].mxu1 %v16504_v0  ;;  %v9296_v0 = vsel %vm6367_vm5, %v9291_v11, %v9295_v58 }
 0x4ff   : > { %v7605_v22 = vadd.f32 %v11408_v57, %v16972_v55  ;;  %9449 = vmatprep.mubr.bf16.mxu1 %v16511_v33  ;;  %v9293_v33 = vrot.slane %v16970_v41, 3 }
 0x501   : > { %v11409_v28 = vpop.f32.mrb[92].mxu1 }
 0x502   : > { %v11410_v50 = vpop.f32.mrb[93].mxu1 }
 0x503   : > { %v11411_v9 = vadd.f32 %v11410_v50, %v11409_v28  ;;  %v11412_v1 = vpop.f32.mrb[94].mxu1 }
 0x504   : > { %v11413_v25 = vpop.f32.mrb[95].mxu1 }
 0x505   : > { %v7610_v53 = vadd.f32 %v11411_v9, %v16984_v14  ;;  %v11414_v49 = vadd.f32 %v11413_v25, %v11412_v1  ;;  %v9294_v14 = vsel %vm6367_vm5, %v9289_v38, %v9293_v33 }
 0x506   : > { %9450 = vmatmul.mubr.bf16.gmra.mrb[200].mxu1 %v16516_v13 }
 0x507   : > { %v7613_v42 = vadd.f32 %v11414_v49, %v11374_v32  ;;  %9457 = vmatprep.mubr.bf16.mxu1 %v9296_v0 }
 0x509   : > { %v11431_v55 = vpop.f32.mrb[96].mxu1 }
 0x50a   : > { %v11432_v7 = vpop.f32.mrb[97].mxu1 }
 0x50b   : > { %v11433_v45 = vadd.f32 %v11432_v7, %v11431_v55  ;;  %v11434_v43 = vpop.f32.mrb[98].mxu1 }
 0x50c   : > { %v11435_v31 = vpop.f32.mrb[99].mxu1 }
 0x50d   : > { %v7842_v48 = vadd.f32 %v11433_v45, %v7586_v46  ;;  %v11436_v39 = vadd.f32 %v11435_v31, %v11434_v43 }
 0x50e   : > { %9458 = vmatmul.mubr.bf16.gmra.mrb[204].mxu1 %v9294_v14 }
 0x50f   : > { %v7843_v13 = vadd.f32 %v11436_v39, %v7589_v52 }
 0x511   : > { %v11437_v8 = vpop.f32.mrb[100].mxu1 }
 0x512   : > { %v11438_v23 = vpop.f32.mrb[101].mxu1 }
 0x513   : > { %v11439_v11 = vadd.f32 %v11438_v23, %v11437_v8  ;;  %v11440_v19 = vpop.f32.mrb[102].mxu1 }
 0x514   : > { %v11441_v10 = vpop.f32.mrb[103].mxu1 }
 0x515   : > { %v7844_v32 = vadd.f32 %v11439_v11, %v7594_v29  ;;  %v11442_v37 = vadd.f32 %v11441_v10, %v11440_v19 }
 0x517   : > { %v7845_v41 = vadd.f32 %v11442_v37, %v7597_v51 }
 0x519   : > { %v11443_v59 = vpop.f32.mrb[104].mxu1 }
 0x51a   : > { %v11444_v2 = vpop.f32.mrb[105].mxu1 }
 0x51b   : > { %v11445_v12 = vadd.f32 %v11444_v2, %v11443_v59  ;;  %v11446_v24 = vpop.f32.mrb[106].mxu1 }
 0x51c   : > { %v11447_v56 = vpop.f32.mrb[107].mxu1 }
 0x51d   : > { %v7846_v47 = vadd.f32 %v11445_v12, %v7602_v15  ;;  %v11448_v27 = vadd.f32 %v11447_v56, %v11446_v24 }
 0x51f   : > { %v7847_v61 = vadd.f32 %v11448_v27, %v7605_v22 }
 0x521   : > { %v11449_v17 = vpop.f32.mrb[108].mxu1 }
 0x522   : > { %v11450_v38 = vpop.f32.mrb[109].mxu1 }
 0x523   : > { %v11451_v62 = vadd.f32 %v11450_v38, %v11449_v17  ;;  %v11452_v26 = vpop.f32.mrb[110].mxu1 }
 0x524   : > { %v11453_v60 = vpop.f32.mrb[111].mxu1 }
 0x525   : > { %v7848_v16 = vadd.f32 %v11451_v62, %v7610_v53  ;;  %v11454_v20 = vadd.f32 %v11453_v60, %v11452_v26 }
 0x527   : > { %v7849_v46 = vadd.f32 %v11454_v20, %v7613_v42 }
 0x529   : > { %v11471_v18 = vpop.f32.mrb[112].mxu1 }
 0x52a   : > { %v11472_v34 = vpop.f32.mrb[113].mxu1 }
 0x52b   : > { %v11473_v52 = vadd.f32 %v11472_v34, %v11471_v18  ;;  %v11474_v63 = vpop.f32.mrb[114].mxu1 }
 0x52c   : > { %v11475_v3 = vpop.f32.mrb[115].mxu1 }
 0x52d   : > { %v8116_v54 = vadd.f32 %v11473_v52, %v7842_v48  ;;  %v11476_v30 = vadd.f32 %v11475_v3, %v11474_v63 }
 0x52f   : > { %v8117_v44 = vadd.f32 %v11476_v30, %v7843_v13 }
 0x531   : > { %v11477_v35 = vpop.f32.mrb[116].mxu1 }
 0x532   : > { %v11478_v29 = vpop.f32.mrb[117].mxu1 }
 0x533   : > { %v11479_v4 = vadd.f32 %v11478_v29, %v11477_v35  ;;  %v11480_v51 = vpop.f32.mrb[118].mxu1 }
 0x534   : > { %v11481_v36 = vpop.f32.mrb[119].mxu1 }
 0x535   : > { %v8118_v5 = vadd.f32 %v11479_v4, %v7844_v32  ;;  %v11482_v6 = vadd.f32 %v11481_v36, %v11480_v51 }
 0x537   : > { %v8119_v21 = vadd.f32 %v11482_v6, %v7845_v41 }
 0x539   : > { %v11483_v40 = vpop.f32.mrb[120].mxu1 }
 0x53a   : > { %v11484_v15 = vpop.f32.mrb[121].mxu1 }
 0x53b   : > { %v11485_v57 = vadd.f32 %v11484_v15, %v11483_v40  ;;  %v11486_v22 = vpop.f32.mrb[122].mxu1 }
 0x53c   : > { %v11487_v28 = vpop.f32.mrb[123].mxu1 }
 0x53d   : > { %v8120_v50 = vadd.f32 %v11485_v57, %v7846_v47  ;;  %v11488_v58 = vadd.f32 %v11487_v28, %v11486_v22 }
 0x53f   : > { %v8121_v9 = vadd.f32 %v11488_v58, %v7847_v61 }
 0x541   : > { %v11489_v1 = vpop.f32.mrb[124].mxu1 }
 0x542   : > { %v11490_v25 = vpop.f32.mrb[125].mxu1 }
 0x543   : > { %v11491_v53 = vadd.f32 %v11490_v25, %v11489_v1  ;;  %v11492_v49 = vpop.f32.mrb[126].mxu1 }
 0x544   : > { %v11493_v0 = vpop.f32.mrb[127].mxu1 }
 0x545   : > { %v8122_v42 = vadd.f32 %v11491_v53, %v7848_v16  ;;  %v11494_v55 = vadd.f32 %v11493_v0, %v11492_v49 }
 0x547   : > { %v8123_v33 = vadd.f32 %v11494_v55, %v7849_v46 }
 0x549   : > { %v11511_v7 = vpop.f32.mrb[128].mxu1 }
 0x54a   : > { %v11512_v45 = vpop.f32.mrb[129].mxu1 }
 0x54b   : > { %v11513_v43 = vadd.f32 %v11512_v45, %v11511_v7  ;;  %v11514_v31 = vpop.f32.mrb[130].mxu1 }
 0x54c   : > { %v11515_v48 = vpop.f32.mrb[131].mxu1 }
 0x54d   : > { %v8420_v39 = vadd.f32 %v11513_v43, %v8116_v54  ;;  %v11516_v14 = vadd.f32 %v11515_v48, %v11514_v31 }
 0x54f   : > { %v8421_v13 = vadd.f32 %v11516_v14, %v8117_v44 }
 0x551   : > { %v11517_v8 = vpop.f32.mrb[132].mxu1 }
 0x552   : > { %v11518_v23 = vpop.f32.mrb[133].mxu1 }
 0x553   : > { %v11519_v11 = vadd.f32 %v11518_v23, %v11517_v8  ;;  %v11520_v19 = vpop.f32.mrb[134].mxu1 }
 0x554   : > { %v11521_v10 = vpop.f32.mrb[135].mxu1 }
 0x555   : > { %v8422_v32 = vadd.f32 %v11519_v11, %v8118_v5  ;;  %v11522_v37 = vadd.f32 %v11521_v10, %v11520_v19 }
 0x557   : > { %v8423_v41 = vadd.f32 %v11522_v37, %v8119_v21 }
 0x559   : > { %v11523_v59 = vpop.f32.mrb[136].mxu1 }
 0x55a   : > { %v11524_v2 = vpop.f32.mrb[137].mxu1 }
 0x55b   : > { %v11525_v12 = vadd.f32 %v11524_v2, %v11523_v59  ;;  %v11526_v24 = vpop.f32.mrb[138].mxu1 }
 0x55c   : > { %v11527_v56 = vpop.f32.mrb[139].mxu1 }
 0x55d   : > { %v8424_v47 = vadd.f32 %v11525_v12, %v8120_v50  ;;  %v11528_v27 = vadd.f32 %v11527_v56, %v11526_v24 }
 0x55f   : > { %v8425_v61 = vadd.f32 %v11528_v27, %v8121_v9 }
 0x561   : > { %v11529_v17 = vpop.f32.mrb[140].mxu1 }
 0x562   : > { %v11530_v38 = vpop.f32.mrb[141].mxu1 }
 0x563   : > { %v11531_v62 = vadd.f32 %v11530_v38, %v11529_v17  ;;  %v11532_v26 = vpop.f32.mrb[142].mxu1 }
 0x564   : > { %v11533_v60 = vpop.f32.mrb[143].mxu1 }
 0x565   : > { %v8426_v16 = vadd.f32 %v11531_v62, %v8122_v42  ;;  %v11534_v20 = vadd.f32 %v11533_v60, %v11532_v26 }
 0x567   : > { %v8427_v46 = vadd.f32 %v11534_v20, %v8123_v33 }
 0x569   : > { %v11551_v18 = vpop.f32.mrb[144].mxu1 }
 0x56a   : > { %v11552_v34 = vpop.f32.mrb[145].mxu1 }
 0x56b   : > { %v11553_v52 = vadd.f32 %v11552_v34, %v11551_v18  ;;  %v11554_v63 = vpop.f32.mrb[146].mxu1 }
 0x56c   : > { %v11555_v3 = vpop.f32.mrb[147].mxu1 }
 0x56d   : > { %v8654_v54 = vadd.f32 %v11553_v52, %v8420_v39  ;;  %v11556_v30 = vadd.f32 %v11555_v3, %v11554_v63 }
 0x56f   : > { %v8655_v44 = vadd.f32 %v11556_v30, %v8421_v13 }
 0x571   : > { %v11557_v35 = vpop.f32.mrb[148].mxu1 }
 0x572   : > { %v11558_v29 = vpop.f32.mrb[149].mxu1 }
 0x573   : > { %v11559_v4 = vadd.f32 %v11558_v29, %v11557_v35  ;;  %v11560_v51 = vpop.f32.mrb[150].mxu1 }
 0x574   : > { %v11561_v36 = vpop.f32.mrb[151].mxu1 }
 0x575   : > { %v8656_v5 = vadd.f32 %v11559_v4, %v8422_v32  ;;  %v11562_v6 = vadd.f32 %v11561_v36, %v11560_v51 }
 0x577   : > { %v8657_v21 = vadd.f32 %v11562_v6, %v8423_v41 }
 0x579   : > { %v11563_v40 = vpop.f32.mrb[152].mxu1 }
 0x57a   : > { %v11564_v15 = vpop.f32.mrb[153].mxu1 }
 0x57b   : > { %v11565_v57 = vadd.f32 %v11564_v15, %v11563_v40  ;;  %v11566_v22 = vpop.f32.mrb[154].mxu1 }
 0x57c   : > { %v11567_v28 = vpop.f32.mrb[155].mxu1 }
 0x57d   : > { %v8658_v50 = vadd.f32 %v11565_v57, %v8424_v47  ;;  %v11568_v58 = vadd.f32 %v11567_v28, %v11566_v22 }
 0x57f   : > { %v8659_v9 = vadd.f32 %v11568_v58, %v8425_v61 }
 0x581   : > { %v11569_v1 = vpop.f32.mrb[156].mxu1 }
 0x582   : > { %v11570_v25 = vpop.f32.mrb[157].mxu1 }
 0x583   : > { %v11571_v53 = vadd.f32 %v11570_v25, %v11569_v1  ;;  %v11572_v49 = vpop.f32.mrb[158].mxu1 }
 0x584   : > { %v11573_v0 = vpop.f32.mrb[159].mxu1 }
 0x585   : > { %v8660_v42 = vadd.f32 %v11571_v53, %v8426_v16  ;;  %v11574_v55 = vadd.f32 %v11573_v0, %v11572_v49 }
 0x587   : > { %v8661_v33 = vadd.f32 %v11574_v55, %v8427_v46 }
 0x589   : > { %v11591_v7 = vpop.f32.mrb[160].mxu1 }
 0x58a   : > { %v11592_v45 = vpop.f32.mrb[161].mxu1 }
 0x58b   : > { %v11593_v43 = vadd.f32 %v11592_v45, %v11591_v7  ;;  %v11594_v31 = vpop.f32.mrb[162].mxu1 }
 0x58c   : > { %v11595_v48 = vpop.f32.mrb[163].mxu1 }
 0x58d   : > { %v8928_v39 = vadd.f32 %v11593_v43, %v8654_v54  ;;  %v11596_v14 = vadd.f32 %v11595_v48, %v11594_v31  ;;  %v17038_v48 = vld [vmem:[%s17100_s4] ss:$0 sm:$0xff] }
 0x58f   : > { %v8929_v13 = vadd.f32 %v11596_v14, %v8655_v44 }
 0x591   : > { %v11597_v8 = vpop.f32.mrb[164].mxu1 }
 0x592   : > { %v11598_v23 = vpop.f32.mrb[165].mxu1 }
 0x593   : > { %v11599_v11 = vadd.f32 %v11598_v23, %v11597_v8  ;;  %v11600_v19 = vpop.f32.mrb[166].mxu1 }
 0x594   : > { %v11601_v10 = vpop.f32.mrb[167].mxu1 }
 0x595   : > { %v8930_v32 = vadd.f32 %v11599_v11, %v8656_v5  ;;  %v11602_v37 = vadd.f32 %v11601_v10, %v11600_v19 }
 0x597   : > { %v8931_v41 = vadd.f32 %v11602_v37, %v8657_v21 }
 0x599   : > { %v11603_v59 = vpop.f32.mrb[168].mxu1 }
 0x59a   : > { %v11604_v2 = vpop.f32.mrb[169].mxu1 }
 0x59b   : > { %v11605_v12 = vadd.f32 %v11604_v2, %v11603_v59  ;;  %v11606_v24 = vpop.f32.mrb[170].mxu1 }
 0x59c   : > { %v11607_v56 = vpop.f32.mrb[171].mxu1 }
 0x59d   : > { %v8932_v47 = vadd.f32 %v11605_v12, %v8658_v50  ;;  %v11608_v27 = vadd.f32 %v11607_v56, %v11606_v24 }
 0x59f   : > { %v8933_v61 = vadd.f32 %v11608_v27, %v8659_v9 }
 0x5a1   : > { %v11609_v17 = vpop.f32.mrb[172].mxu1 }
 0x5a2   : > { %v11610_v38 = vpop.f32.mrb[173].mxu1 }
 0x5a3   : > { %v11611_v62 = vadd.f32 %v11610_v38, %v11609_v17  ;;  %v11612_v26 = vpop.f32.mrb[174].mxu1 }
 0x5a4   : > { %v11613_v60 = vpop.f32.mrb[175].mxu1 }
 0x5a5   : > { %v8934_v16 = vadd.f32 %v11611_v62, %v8660_v42  ;;  %v11614_v20 = vadd.f32 %v11613_v60, %v11612_v26 }
 0x5a7   : > { %v8935_v46 = vadd.f32 %v11614_v20, %v8661_v33 }
 0x5a9   : > { %v11631_v18 = vpop.f32.mrb[176].mxu1 }
 0x5aa   : > { %v11632_v34 = vpop.f32.mrb[177].mxu1 }
 0x5ab   : > { %v11633_v52 = vadd.f32 %v11632_v34, %v11631_v18  ;;  %v11634_v63 = vpop.f32.mrb[178].mxu1 }
 0x5ac   : > { %v11635_v3 = vpop.f32.mrb[179].mxu1 }
 0x5ad   : > { %v9232_v54 = vadd.f32 %v11633_v52, %v8928_v39  ;;  %v11636_v30 = vadd.f32 %v11635_v3, %v11634_v63 }
 0x5af   : > { %v9233_v44 = vadd.f32 %v11636_v30, %v8929_v13 }
 0x5b1   : > { %v11637_v35 = vpop.f32.mrb[180].mxu1 }
 0x5b2   : > { %v11638_v29 = vpop.f32.mrb[181].mxu1 }
 0x5b3   : > { %v11639_v4 = vadd.f32 %v11638_v29, %v11637_v35  ;;  %v11640_v51 = vpop.f32.mrb[182].mxu1 }
 0x5b4   : > { %v11641_v36 = vpop.f32.mrb[183].mxu1 }
 0x5b5   : > { %v9234_v5 = vadd.f32 %v11639_v4, %v8930_v32  ;;  %v11642_v6 = vadd.f32 %v11641_v36, %v11640_v51 }
 0x5b7   : > { %v9235_v21 = vadd.f32 %v11642_v6, %v8931_v41 }
 0x5b9   : > { %v11643_v40 = vpop.f32.mrb[184].mxu1 }
 0x5ba   : > { %v11644_v15 = vpop.f32.mrb[185].mxu1 }
 0x5bb   : > { %v11645_v57 = vadd.f32 %v11644_v15, %v11643_v40  ;;  %v11646_v22 = vpop.f32.mrb[186].mxu1 }
 0x5bc   : > { %v11647_v28 = vpop.f32.mrb[187].mxu1 }
 0x5bd   : > { %v9236_v50 = vadd.f32 %v11645_v57, %v8932_v47  ;;  %v11648_v58 = vadd.f32 %v11647_v28, %v11646_v22 }
 0x5bf   : > { %v9237_v9 = vadd.f32 %v11648_v58, %v8933_v61 }
 0x5c1   : > { %v11649_v1 = vpop.f32.mrb[188].mxu1 }
 0x5c2   : > { %v11650_v25 = vpop.f32.mrb[189].mxu1 }
 0x5c3   : > { %v11651_v53 = vadd.f32 %v11650_v25, %v11649_v1  ;;  %v11652_v49 = vpop.f32.mrb[190].mxu1 }
 0x5c4   : > { %v11653_v0 = vpop.f32.mrb[191].mxu1 }
 0x5c5   : > { %v17031_v42 = vadd.f32 %v11651_v53, %v8934_v16  ;;  %v11654_v55 = vadd.f32 %v11653_v0, %v11652_v49 }
 0x5c7   : > { %v17033_v33 = vadd.f32 %v11654_v55, %v8935_v46 }
 0x5c9   : > { %v11671_v7 = vpop.f32.mrb[192].mxu1 }
 0x5ca   : > { %v11672_v45 = vpop.f32.mrb[193].mxu1 }
 0x5cb   : > { %v11673_v43 = vadd.f32 %v11672_v45, %v11671_v7  ;;  %v11674_v31 = vpop.f32.mrb[194].mxu1 }
 0x5cc   : > { %v11675_v39 = vpop.f32.mrb[195].mxu1 }
 0x5cd   : > { %v9466_v14 = vadd.f32 %v11673_v43, %v9232_v54  ;;  %v11676_v13 = vadd.f32 %v11675_v39, %v11674_v31 }
 0x5cf   : > { %v9481_v8 = vadd.f32 %v17038_v48, %v9466_v14  ;;  %v9467_v23 = vadd.f32 %v11676_v13, %v9233_v44 }
 0x5d1   : > { %v9489_v11 = vmax.f32 %v9481_v8, 0.0  ;;  %v9482_v19 = vadd.f32 %v17038_v48, %v9467_v23  ;;  %v11677_v10 = vpop.f32.mrb[196].mxu1 }
 0x5d2   : > { %v11678_v32 = vpop.f32.mrb[197].mxu1 }
 0x5d3   : > { %v9490_v37 = vmax.f32 %v9482_v19, 0.0  ;;  %v11679_v41 = vadd.f32 %v11678_v32, %v11677_v10  ;;  %v11680_v59 = vpop.f32.mrb[198].mxu1  ;;  %v9506_v2 = vrot.slane %v9489_v11, 1  ;;  %v9538_v12 = vrot.slane %v9489_v11, 2 }
 0x5d4   : > { %v11681_v24 = vpop.f32.mrb[199].mxu1 }
 0x5d5   : > { %v9507_v56 = vrot.slane %v9490_v37, 1  ;;  %v9539_v47 = vrot.slane %v9490_v37, 2  ;;  %v9468_v27 = vadd.f32 %v11679_v41, %v9234_v5  ;;  %v11682_v61 = vadd.f32 %v11681_v24, %v11680_v59 }
 0x5d7   : > { %v9508_v17 = vsel %vm1797_vm0, %v9506_v2, %v9507_v56  ;;  %v9540_v38 = vsel %vm4082_vm3, %v9538_v12, %v9539_v47  ;;  %v9483_v62 = vadd.f32 %v17038_v48, %v9468_v27  ;;  %v9469_v26 = vadd.f32 %v11682_v61, %v9235_v21 }
 0x5d8   : > { %v9529_v60 = vmax.f32 %v9489_v11, %v9508_v17 }
 0x5d9   : > { %v9491_v16 = vmax.f32 %v9483_v62, 0.0  ;;  %v9484_v20 = vadd.f32 %v17038_v48, %v9469_v26  ;;  %v11683_v46 = vpop.f32.mrb[200].mxu1 }
 0x5da   : > { %v17046_v18 = vmax.f32 %v9529_v60, %v9540_v38  ;;  %v11684_v34 = vpop.f32.mrb[201].mxu1 }
 0x5db   : > { %v9509_v52 = vrot.slane %v9491_v16, 1  ;;  %v9541_v63 = vrot.slane %v9491_v16, 2  ;;  %v9492_v3 = vmax.f32 %v9484_v20, 0.0  ;;  %v11685_v54 = vadd.f32 %v11684_v34, %v11683_v46  ;;  %v11686_v30 = vpop.f32.mrb[202].mxu1 }
 0x5dc   : > { %v11687_v44 = vpop.f32.mrb[203].mxu1 }
 0x5dd   : > { %v9510_v35 = vsel %vm1797_vm0, %v9507_v56, %v9509_v52  ;;  %v9542_v29 = vsel %vm4082_vm3, %v9539_v47, %v9541_v63  ;;  %v9511_v4 = vrot.slane %v9492_v3, 1  ;;  %v9543_v51 = vrot.slane %v9492_v3, 2 }
 0x5de   : > { %v9530_v36 = vmax.f32 %v9490_v37, %v9510_v35  ;;  %v9470_v5 = vadd.f32 %v11685_v54, %v9236_v50  ;;  %v11688_v6 = vadd.f32 %v11687_v44, %v11686_v30 }
 0x5df   : > { %v9512_v21 = vsel %vm1797_vm0, %v9509_v52, %v9511_v4  ;;  %v9544_v40 = vsel %vm4082_vm3, %v9541_v63, %v9543_v51 }
 0x5e0   : > { %v9562_v15 = vmax.f32 %v9530_v36, %v9542_v29  ;;  %v9531_v57 = vmax.f32 %v9491_v16, %v9512_v21  ;;  %v9485_v22 = vadd.f32 %v17038_v48, %v9470_v5  ;;  %v9471_v28 = vadd.f32 %v11688_v6, %v9237_v9 }
 0x5e1   : > { %v11689_v58 = vpop.f32.mrb[204].mxu1 }
 0x5e2   : > { %v17053_v1 = vmax.f32 %v9531_v57, %v9544_v40  ;;  %v9493_v25 = vmax.f32 %v9485_v22, 0.0  ;;  %v9486_v53 = vadd.f32 %v17038_v48, %v9471_v28  ;;  %v11690_v49 = vpop.f32.mrb[205].mxu1  ;;  %v9575_v50 = vrot.slane %v9562_v15, 2 }
 0x5e3   : > { %v11691_v0 = vadd.f32 %v11690_v49, %v11689_v58  ;;  %v11692_v55 = vpop.f32.mrb[206].mxu1 }
 0x5e4   : > { %v9576_v7 = vrot.slane %v17053_v1, 2  ;;  %v9513_v45 = vrot.slane %v9493_v25, 1  ;;  %v9545_v43 = vrot.slane %v9493_v25, 2  ;;  %v11693_v31 = vpop.f32.mrb[207].mxu1  ;;  %v9494_v39 = vmax.f32 %v9486_v53, 0.0 }
 0x5e5   : > { %v9472_v14 = vadd.f32 %v11691_v0, %v17031_v42  ;;  %v11694_v9 = vadd.f32 %v11693_v31, %v11692_v55  ;;  %v9598_v47 = vrot.slane %v17053_v1, 4 }
 0x5e6   : > { %v9577_v13 = vsel %vm4082_vm3, %v9575_v50, %v9576_v7  ;;  %v9514_v8 = vsel %vm1797_vm0, %v9511_v4, %v9513_v45  ;;  %v9546_v23 = vsel %vm4082_vm3, %v9543_v51, %v9545_v43  ;;  %v9515_v10 = vrot.slane %v9494_v39, 1 }
 0x5e7   : > { %v9591_v11 = vmax.f32 %v17046_v18, %v9577_v13  ;;  %v9532_v19 = vmax.f32 %v9492_v3, %v9514_v8  ;;  %v9547_v32 = vrot.slane %v9494_v39, 2  ;;  %v9487_v37 = vadd.f32 %v17038_v48, %v9472_v14 }
 0x5e8   : > { %v9473_v41 = vadd.f32 %v11694_v9, %v17033_v33  ;;  %v9516_v2 = vsel %vm1797_vm0, %v9513_v45, %v9515_v10 }
 0x5e9   : > { %v9564_v59 = vmax.f32 %v9532_v19, %v9546_v23  ;;  %v9548_v42 = vsel %vm4082_vm3, %v9545_v43, %v9547_v32  ;;  %v9533_v12 = vmax.f32 %v9493_v25, %v9516_v2  ;;  %v9495_v24 = vmax.f32 %v9487_v37, 0.0 }
 0x5ea   : > { %v9488_v56 = vadd.f32 %v17038_v48, %v9473_v41 }
 0x5eb   : > { %v9578_v27 = vrot.slane %v9564_v59, 2  ;;  %v9599_v61 = vrot.slane %v9564_v59, 4  ;;  %v9565_v17 = vmax.f32 %v9533_v12, %v9548_v42  ;;  %v9517_v38 = vrot.slane %v9495_v24, 1 }
 0x5ec   : > { %v9549_v62 = vrot.slane %v9495_v24, 2  ;;  %v9496_v26 = vmax.f32 %v9488_v56, 0.0 }
 0x5ed   : > { %v9579_v33 = vsel %vm4082_vm3, %v9576_v7, %v9578_v27  ;;  %v9600_v60 = vsel %vm9597_vm6, %v9598_v47, %v9599_v61  ;;  %v9580_v20 = vrot.slane %v9565_v17, 2  ;;  %v9601_v46 = vrot.slane %v9565_v17, 4 }
 0x5ee   : > { %v9592_v16 = vmax.f32 %v9562_v15, %v9579_v33  ;;  %v9518_v48 = vsel %vm1797_vm0, %v9515_v10, %v9517_v38  ;;  %v9550_v34 = vsel %vm4082_vm3, %v9547_v32, %v9549_v62  ;;  %v9614_v52 = vmax.f32 %v9591_v11, %v9600_v60 }
 0x5ef   : > { %v9534_v18 = vmax.f32 %v9494_v39, %v9518_v48  ;;  %v9519_v63 = vrot.slane %v9496_v26, 1  ;;  %v9581_v3 = vsel %vm4082_vm3, %v9578_v27, %v9580_v20  ;;  %v9602_v54 = vsel %vm9597_vm6, %v9599_v61, %v9601_v46 }
 0x5f0   : > { %v9551_v30 = vrot.slane %v9496_v26, 2  ;;  %v9593_v35 = vmax.f32 %v17053_v1, %v9581_v3  ;;  %v9615_v29 = vmax.f32 %v9592_v16, %v9602_v54  ;;  %9619 = vst [vmem:[%s17074_s10] sm:$0xff] %v9614_v52 }
 0x5f1   : > { %v9566_v44 = vmax.f32 %v9534_v18, %v9550_v34  ;;  %v9520_v4 = vsel %vm1797_vm0, %v9517_v38, %v9519_v63  ;;  %v9536_v36 = vmax.f32 %v9496_v26, %v9519_v63 }
 0x5f2   : > { %v9535_v51 = vmax.f32 %v9495_v24, %v9520_v4  ;;  %v9552_v5 = vsel %vm4082_vm3, %v9549_v62, %v9551_v30  ;;  %9620 = vst [vmem:[%s17074_s10 + $0x8] sm:$0xff] %v9615_v29 }
 0x5f3   : > { %v9582_v6 = vrot.slane %v9566_v44, 2  ;;  %v9603_v21 = vrot.slane %v9566_v44, 4  ;;  %v9568_v15 = vmax.f32 %v9536_v36, %v9551_v30 }
 0x5f4   : > { %v9567_v40 = vmax.f32 %v9535_v51, %v9552_v5 }
 0x5f5   : > { %v9583_v57 = vsel %vm4082_vm3, %v9580_v20, %v9582_v6  ;;  %v9604_v22 = vsel %vm9597_vm6, %v9601_v46, %v9603_v21  ;;  %v9607_v53 = vrot.slane %v9568_v15, 4 }
 0x5f6   : > { %v9594_v28 = vmax.f32 %v9564_v59, %v9583_v57  ;;  %v9616_v58 = vmax.f32 %v9593_v35, %v9604_v22  ;;  %v9584_v1 = vrot.slane %v9567_v40, 2  ;;  %v9605_v25 = vrot.slane %v9567_v40, 4 }
 0x5f8   : > { %9621 = vst [vmem:[%s17074_s10 + $0x10] sm:$0xff] %v9616_v58  ;;  %v9585_v49 = vsel %vm4082_vm3, %v9582_v6, %v9584_v1  ;;  %v9606_v0 = vsel %vm9597_vm6, %v9603_v21, %v9605_v25  ;;  %v9608_v50 = vsel %vm9597_vm6, %v9605_v25, %v9607_v53 }
 0x5f9   : > { %v9595_v55 = vmax.f32 %v9565_v17, %v9585_v49  ;;  %v9617_v7 = vmax.f32 %v9594_v28, %v9606_v0 }
 0x5fb   : > { %v9618_v45 = vmax.f32 %v9595_v55, %v9608_v50  ;;  %9622 = vst [vmem:[%s17074_s10 + $0x18] sm:$0xff] %v9617_v7 }
 0x5fd   : > { %9623 = vst [vmem:[%s17074_s10 + $0x20] sm:$0xff] %v9618_v45 }
 0x5fe PF: > { %s15_s18 = sadd.s32 1, %s13256_s18  }
 0x5ff   : > { %p12_p4 = scmp.ge.s32.totalorder %s15_s18, 4  }
 0x601   :  { %14 = sbr.rel (!%p12_p4) target bundleno = 1 (0x1), region = 86 }

</bundles_post_ra>
